<compile_context>
chip_gen: v7x
topology: tpu7x:2x2x1
jax: 0.10.0
libtpu: 0.0.40
codegen_flags: <defaults>
</compile_context>

<pallas_src>
import functools
import numpy as np

import jax
import jax.numpy as jnp
from jax.experimental import pallas as pl
from jax.experimental.pallas import tpu as pltpu

NEG_INF = -9.0e15
WINDOW_SIZES = (1, 2, 3)


def _gsa_kernel(meta_ref, x_ref, w_ref, o_ref, *, alpha, out_dim, block_b,
                max_turn_pad, n_windows):
    """One grid step = `block_b` examples processed as one block-diagonal batch.

    meta_ref : VMEM (N, 128) int32, N = block_b*max_turn_pad; column w (< n_windows)
               holds the window-(w+1) count of the example owning that row.
    x_ref    : VMEM (N, D) f32   local semantic vectors, rows grouped per example.
    w_ref    : VMEM (D, DPO) f32 W in cols [:out_dim], W@a1 in col out_dim,
               W@a2 in col out_dim+1, zero elsewhere.
    o_ref    : VMEM (block_b, DPO) f32 merged n-gram vector per example
               (cols >= out_dim are don't-care padding).
    """
    TB, MT = block_b, max_turn_pad
    N = TB * MT
    shift = MT.bit_length() - 1                    # log2(MT); MT is a power of two

    x = x_ref[...]                                 # (N, D)
    w_ext = w_ref[...]                             # (D, DPO)
    DPO = w_ext.shape[1]

    # One shared projection for the whole block; a1/a2 ride along as two extra
    # columns of w_ext so the GAT scores are plain lane slices of h.
    h = jnp.dot(x, w_ext, preferred_element_type=jnp.float32)          # (N, DPO)

    # ---- vectorized per-row metadata (no scalar reads in the hot loop) ----
    meta = meta_ref[...]                                               # (N, 128) i32
    cnt_cols = [meta[:, w:w + 1] for w in range(n_windows)]            # (N, 1) each
    lrow = jax.lax.broadcasted_iota(jnp.int32, (N, 1), 0) & (MT - 1)   # row idx in example

    # 1 / n_valid windows per example (clamped >= 1: all-empty example -> 0, not NaN)
    n_valid = sum((c > 0).astype(jnp.float32) for c in cnt_cols)       # (N, 1)
    inv_nvalid = pl.reciprocal(jnp.maximum(n_valid, 1.0), approx=True)

    # Loop-invariant (N,N) helpers, built once from iotas (VPU only):
    #  * block-diagonal additive mask: rows may only attend within their own example
    #  * identity mask, used to reorient the f2 score column to lane orientation
    #    with a multiply + sublane sum instead of a (N,1)->(1,N) transpose.
    q_idx = jax.lax.broadcasted_iota(jnp.int32, (N, N), 0)
    k_idx = jax.lax.broadcasted_iota(jnp.int32, (N, N), 1)
    same_ex_bias = jnp.where((q_idx >> shift) == (k_idx >> shift), 0.0, NEG_INF)
    eye = (q_idx == k_idx).astype(jnp.float32)                          # (N, N)

    # Pooling matrix: P0[b, r] = 1 if row r belongs to block-local example b.
    # One MXU matmul with P0 replaces block_b sublane reductions + a concat store.
    b_idx = jax.lax.broadcasted_iota(jnp.int32, (TB, N), 0)
    r_ex = jax.lax.broadcasted_iota(jnp.int32, (TB, N), 1) >> shift
    p0 = (b_idx == r_ex).astype(jnp.float32)                            # (TB, N)

    out_acc = jnp.zeros((TB, DPO), jnp.float32)
    shifted_sum = h          # running sum_{j<w} roll(h, -j): one pooled variant live
    for widx in range(n_windows):                    # static unroll over 3 window sizes
        if widx > 0:
            # roll by N-widx == roll by -widx: row r picks up row r+widx.  Rows
            # contaminated by wrapping / crossing an example boundary always satisfy
            # lrow >= count (guaranteed by MT >= max_turn, asserted in the wrapper)
            # and are masked out below, so this is a drop-in for the shifted sum.
            shifted_sum = shifted_sum + pltpu.roll(h, shift=N - widx, axis=0)
        h_w = shifted_sum * (1.0 / (widx + 1))        # (N, DPO) size-(widx+1) mean pool

        cnt = cnt_cols[widx]                          # (N, 1) int32
        valid = lrow < cnt                            # (N, 1) pooled-window validity

        # GAT scores: f1/f2 are lane slices (folded a1/a2 columns).  Key validity
        # is folded into f2 before reorientation, so no (N,N) validity mask exists.
        f1 = h_w[:, out_dim:out_dim + 1]                                 # (N, 1)
        f2m = jnp.where(valid, h_w[:, out_dim + 1:out_dim + 2], NEG_INF)  # (N, 1)
        f2_row = jnp.sum(eye * f2m, axis=0, keepdims=True)               # (1, N) == f2m^T

        e = f1 + f2_row                               # (N, N)
        e = jnp.where(e > 0.0, e, alpha * e)          # LeakyReLU(alpha)
        e = e + same_ex_bias                          # block-diagonal mask

        # One masked softmax over the whole block (row max kept for safety; it is a
        # single lane-reduce per window on the batched, lane-full score matrix).
        m = jnp.max(e, axis=1, keepdims=True)
        p = jnp.exp(e - m)
        att = p * pl.reciprocal(jnp.sum(p, axis=1, keepdims=True), approx=True)

        # bf16 MXU operands (f32 accumulate) for the big attention matmul.
        h_prime = jnp.dot(att.astype(jnp.bfloat16), h_w.astype(jnp.bfloat16),
                          preferred_element_type=jnp.float32)            # (N, DPO)

        # Per-example mean over the first `cnt` rows, gated by cnt>0 and already
        # divided by n_valid: invalid rows get weight 0, so a single pooling matmul
        # yields this window's contribution to the merged vector.
        inv_cnt = pl.reciprocal(jnp.maximum(cnt, 1).astype(jnp.float32), approx=True)
        rowscale = jnp.where(valid, inv_cnt * inv_nvalid, 0.0)           # (N, 1)
        out_acc = out_acc + jnp.dot(p0, h_prime * rowscale,
                                    preferred_element_type=jnp.float32)  # (TB, DPO)

    o_ref[...] = out_acc                              # single dense (TB, DPO) store


def global_semantics_aggregator(local_sem, input_turns, W, a1, a2, alpha):
    """local_sem: (S, B, D) f32 (seq, batch, embed); input_turns: per-example max turn."""
    S, B, D = local_sem.shape
    # TODO(synk): input_turns is consumed on the host (as in the PyTorch module); keep it
    # host-side metadata and rely on the pow2 MT bucketing to avoid per-shape recompiles.
    turns = np.asarray(input_turns, np.int64)
    max_turn = int(turns.max()) + 1

    MT = max(8, int(pl.next_power_of_2(max_turn)))     # per-example turn axis, pow2, >=8
    assert MT >= max_turn, "pooling-shift invariant: MT must cover max_turn"
    DPO = max(128, ((D + 2 + 127) // 128) * 128)       # output lanes (+2 cols for a1/a2)

    # Examples per grid step: target TB*MT == 128 rows (full v5e MXU M-dim / full lane
    # width for the block-diagonal scores), but keep >= 2 grid steps when the batch
    # allows so ("parallel",) can use both v7x TensorCores.  For very long MT, TB
    # bottoms out at 8 (output sublane tile); cap MT bucketing in production so the
    # (TB*MT)^2 f32 score blocks stay small against v7x's 64 MiB VMEM.
    TB = max(8, 128 // MT)
    while TB > 8 and pl.cdiv(B, TB) < 2:
        TB //= 2
    B_pad = ((B + TB - 1) // TB) * TB
    N = TB * MT

    # (S, B, D) -> (B_pad*MT, D), zero-padded; no lane padding of the embed axis.
    x = jnp.transpose(local_sem, (1, 0, 2)).astype(jnp.float32)     # (B, S, D)
    use = min(S, MT)
    xb = jnp.zeros((B_pad, MT, D), jnp.float32).at[:B, :use, :].set(x[:, :use, :])
    x2d = xb.reshape(B_pad * MT, D)
    # TODO(synk): at production sizes cast x2d / w_ext to bf16 (halves x HBM traffic and
    # speeds the x@W_ext MXU pass); kept f32 here to hold the strict f32-reference check.

    # W_ext: W plus the folded a1/a2 projection columns (W@a1, W@a2).
    W = jnp.asarray(W, jnp.float32)
    w_ext = jnp.zeros((D, DPO), jnp.float32)
    w_ext = w_ext.at[:, :D].set(W)
    w_ext = w_ext.at[:, D].set(jnp.matmul(W, jnp.reshape(a1, (D,)).astype(jnp.float32)))
    w_ext = w_ext.at[:, D + 1].set(jnp.matmul(W, jnp.reshape(a2, (D,)).astype(jnp.float32)))

    # Per-row metadata (vector path): column w holds the window-(w+1) count of the
    # example owning that row; padded examples get 0 counts.
    ws = np.asarray(WINDOW_SIZES, np.int64)[:, None]
    turns_pad = np.full((B_pad,), -1, np.int64)
    turns_pad[:B] = turns
    counts = np.maximum(turns_pad[None, :] - ws + 2, 0).astype(np.int32)   # (3, B_pad)
    meta_np = np.zeros((B_pad * MT, 128), np.int32)
    for w in range(len(WINDOW_SIZES)):
        meta_np[:, w] = np.repeat(counts[w], MT)
    meta = jnp.asarray(meta_np)

    kernel = functools.partial(_gsa_kernel, alpha=float(alpha), out_dim=D,
                               block_b=TB, max_turn_pad=MT,
                               n_windows=len(WINDOW_SIZES))

    out = pl.pallas_call(
        kernel,
        out_shape=jax.ShapeDtypeStruct((B_pad, DPO), jnp.float32),
        grid_spec=pltpu.PrefetchScalarGridSpec(
            num_scalar_prefetch=0,
            grid=(B_pad // TB,),
            in_specs=[
                pl.BlockSpec((N, 128), lambda g: (g, 0)),   # meta rows for this block
                pl.BlockSpec((N, D), lambda g: (g, 0)),     # x rows for this block
                pl.BlockSpec((D, DPO), lambda g: (0, 0)),   # W_ext (shared)
            ],
            out_specs=pl.BlockSpec((TB, DPO), lambda g: (g, 0)),
        ),
        compiler_params=pltpu.CompilerParams(dimension_semantics=("parallel",)),
    )(meta, x2d, w_ext)

    return out[:B, :D]


def _reference_forward(local_sem, input_turns, W, a1, a2, alpha):
    """Pure numpy transcription of the PyTorch forward() for verification."""
    x = np.transpose(local_sem, (1, 0, 2)).astype(np.float32)   # (B, S, D)
    B, S, D = x.shape
    turns = [int(t) for t in input_turns]
    max_turn = int(max(turns)) + 1
    ngram = np.zeros((len(WINDOW_SIZES), B, D), np.float32)
    cnt_list = []
    for widx, w in enumerate(WINDOW_SIZES):
        pooled = np.zeros((B, max_turn, D), np.float32)
        cnt = np.zeros((B,), np.int64)
        for bt in range(B):
            t = 0
            while w + t - 1 <= turns[bt]:
                pooled[bt, t] = x[bt, t:t + w].mean(0)
                t += 1
            cnt[bt] = t
        cnt_list.append(cnt)
        for bt in range(B):
            h = pooled[bt] @ W
            f1 = h @ a1
            f2 = h @ a2
            e = f1 + f2.T
            e = np.where(e > 0, e, alpha * e)
            mask = np.zeros((max_turn, max_turn), np.float32)
            nc = int(cnt[bt])
            mask[:nc, :nc] = 1.0
            att = np.where(mask > 0, e, NEG_INF)
            att = att - att.max(1, keepdims=True)
            att = np.exp(att)
            att = att / att.sum(1, keepdims=True)
            hp = att @ h
            hp = hp[:nc] if nc != 0 else hp
            ngram[widx, bt] = hp.mean(0)
    out = np.zeros((B, D), np.float32)
    for bt in range(B):
        valid = sum(1 for c in cnt_list if c[bt] > 0)
        out[bt] = ngram[:valid, bt].mean(0)
    return out


if __name__ == "__main__":
    B, S, D = 32, 8, 32       # batch, sequence (max_turn), embed == input_dim == output_dim
    alpha = 0.2
    # per-example max turn index; covers 0..7 so count==0 windows (w=2,3) are exercised.
    # B=32 -> TB=16, TB*MT=128 (full MXU/lane tile) and grid=(2,) (two v7x TC steps).
    input_turns = [(7 * bt + 3) % 8 for bt in range(B)]

    key = jax.random.PRNGKey(0)
    kx, kw, k1, k2 = jax.random.split(key, 4)
    gain = float(np.sqrt(2.0))

    def xavier(k, shape):
        bound = gain * np.sqrt(6.0 / (shape[0] + shape[1]))
        return jax.random.uniform(k, shape, jnp.float32, -bound, bound)

    W = xavier(kw, (D, D))          # nn.Parameter W   (input_dim, output_dim)
    a1 = xavier(k1, (D, 1))         # nn.Parameter a1  (output_dim, 1)
    a2 = xavier(k2, (D, 1))         # nn.Parameter a2  (output_dim, 1)
    local_sem = jax.random.normal(kx, (S, B, D), jnp.float32)   # (seq, batch, embed)

    out = global_semantics_aggregator(local_sem, input_turns, W, a1, a2, alpha)
    out = jax.block_until_ready(out)

    ref = _reference_forward(np.asarray(local_sem), input_turns,
                             np.asarray(W), np.asarray(a1), np.asarray(a2), alpha)
    # 1.5e-2 tolerance: bf16 att@h MXU operands + approx-reciprocal softmax denominator
    # vs. the pure-f32 reference.
    if not np.allclose(np.asarray(out), ref, rtol=1.5e-2, atol=1.5e-2):
        raise AssertionError(
            f"kernel/reference mismatch, max abs err={np.abs(np.asarray(out) - ref).max()}")
    print("KERNEL_OK")
</pallas_src>

<mosaic_0001>
module attributes {stable_mosaic.version = 11 : i64} {
  func.func @_gsa_kernel(%arg0: i32, %arg1: memref<128x128xi32, #tpu.memory_space<vmem>>, %arg2: memref<128x32xf32, #tpu.memory_space<vmem>>, %arg3: memref<32x128xf32, #tpu.memory_space<vmem>>, %arg4: memref<16x128xf32, #tpu.memory_space<vmem>>) attributes {dimension_semantics = [#tpu.dimension_semantics<parallel>], iteration_bounds = array<i64: 2>, scalar_prefetch = 0 : i64, scratch_operands = 0 : i64, tpu.core_type = #tpu.core_type<tc>, window_params = [{transform_indices = @transform_0, window_bounds = array<i64: 128, 128>}, {transform_indices = @transform_1, window_bounds = array<i64: 128, 32>}, {pipeline_mode = #tpu.pipeline_mode<synchronous>, transform_indices = @transform_2, window_bounds = array<i64: 32, 128>}, {transform_indices = @transform_3, window_bounds = array<i64: 16, 128>}]} {
    %c0 = arith.constant 0 : index
    %c0_0 = arith.constant 0 : index
    %0 = vector.load %arg2[%c0, %c0_0] : memref<128x32xf32, #tpu.memory_space<vmem>>, vector<128x32xf32>
    %c0_1 = arith.constant 0 : index
    %c0_2 = arith.constant 0 : index
    %1 = vector.load %arg3[%c0_1, %c0_2] : memref<32x128xf32, #tpu.memory_space<vmem>>, vector<32x128xf32>
    %cst = arith.constant dense<0.000000e+00> : vector<128x128xf32>
    %2 = tpu.matmul %0, %1, %cst {dimension_numbers = #tpu.dot_dimension_numbers<[1], [0], [0], [1], [0, 0, 1, 1], [], []>} : vector<128x32xf32>, vector<32x128xf32>, vector<128x128xf32> -> vector<128x128xf32>
    %c0_3 = arith.constant 0 : index
    %c0_4 = arith.constant 0 : index
    %3 = vector.load %arg1[%c0_3, %c0_4] : memref<128x128xi32, #tpu.memory_space<vmem>>, vector<128x128xi32>
    %4 = vector.extract_strided_slice %3 {offsets = [0, 0], sizes = [128, 1], strides = [1, 1]} : vector<128x128xi32> to vector<128x1xi32>
    %5 = vector.extract_strided_slice %3 {offsets = [0, 1], sizes = [128, 1], strides = [1, 1]} : vector<128x128xi32> to vector<128x1xi32>
    %6 = vector.extract_strided_slice %3 {offsets = [0, 2], sizes = [128, 1], strides = [1, 1]} : vector<128x128xi32> to vector<128x1xi32>
    %7 = tpu.iota {dimensions = array<i32: 0>} : vector<128x1xi32>
    %c7_i32 = arith.constant 7 : i32
    %8 = vector.broadcast %c7_i32 : i32 to vector<128x1xi32>
    %9 = arith.andi %7, %8 : vector<128x1xi32>
    %c0_i32 = arith.constant 0 : i32
    %10 = vector.broadcast %c0_i32 : i32 to vector<128x1xi32>
    %11 = arith.cmpi sgt, %4, %10 : vector<128x1xi32>
    %12 = arith.extui %11 : vector<128x1xi1> to vector<128x1xi32>
    %13 = arith.sitofp %12 : vector<128x1xi32> to vector<128x1xf32>
    %cst_5 = arith.constant 0.000000e+00 : f32
    %14 = vector.broadcast %cst_5 : f32 to vector<128x1xf32>
    %15 = arith.addf %14, %13 : vector<128x1xf32>
    %c0_i32_6 = arith.constant 0 : i32
    %16 = vector.broadcast %c0_i32_6 : i32 to vector<128x1xi32>
    %17 = arith.cmpi sgt, %5, %16 : vector<128x1xi32>
    %18 = arith.extui %17 : vector<128x1xi1> to vector<128x1xi32>
    %19 = arith.sitofp %18 : vector<128x1xi32> to vector<128x1xf32>
    %20 = arith.addf %15, %19 : vector<128x1xf32>
    %c0_i32_7 = arith.constant 0 : i32
    %21 = vector.broadcast %c0_i32_7 : i32 to vector<128x1xi32>
    %22 = arith.cmpi sgt, %6, %21 : vector<128x1xi32>
    %23 = arith.extui %22 : vector<128x1xi1> to vector<128x1xi32>
    %24 = arith.sitofp %23 : vector<128x1xi32> to vector<128x1xf32>
    %25 = arith.addf %20, %24 : vector<128x1xf32>
    %cst_8 = arith.constant 1.000000e+00 : f32
    %26 = vector.broadcast %cst_8 : f32 to vector<128x1xf32>
    %27 = arith.maximumf %25, %26 : vector<128x1xf32>
    %28 = tpu.reciprocal %27 {approx = true} : vector<128x1xf32> -> vector<128x1xf32>
    %29 = tpu.iota {dimensions = array<i32: 0>} : vector<128x128xi32>
    %30 = tpu.iota {dimensions = array<i32: 1>} : vector<128x128xi32>
    %c3_i32 = arith.constant 3 : i32
    %31 = vector.broadcast %c3_i32 : i32 to vector<128x128xi32>
    %32 = arith.shrsi %29, %31 : vector<128x128xi32>
    %c3_i32_9 = arith.constant 3 : i32
    %33 = vector.broadcast %c3_i32_9 : i32 to vector<128x128xi32>
    %34 = arith.shrsi %30, %33 : vector<128x128xi32>
    %35 = arith.cmpi eq, %32, %34 : vector<128x128xi32>
    %cst_10 = arith.constant 0.000000e+00 : f32
    %cst_11 = arith.constant -9.000000e+15 : f32
    %36 = vector.broadcast %cst_10 : f32 to vector<128x128xf32>
    %37 = vector.broadcast %cst_11 : f32 to vector<128x128xf32>
    %38 = arith.select %35, %36, %37 : vector<128x128xi1>, vector<128x128xf32>
    %39 = arith.cmpi eq, %29, %30 : vector<128x128xi32>
    %40 = arith.extui %39 : vector<128x128xi1> to vector<128x128xi32>
    %41 = arith.sitofp %40 : vector<128x128xi32> to vector<128x128xf32>
    %42 = tpu.iota {dimensions = array<i32: 0>} : vector<16x128xi32>
    %43 = tpu.iota {dimensions = array<i32: 1>} : vector<16x128xi32>
    %c3_i32_12 = arith.constant 3 : i32
    %44 = vector.broadcast %c3_i32_12 : i32 to vector<16x128xi32>
    %45 = arith.shrsi %43, %44 : vector<16x128xi32>
    %46 = arith.cmpi eq, %42, %45 : vector<16x128xi32>
    %47 = arith.extui %46 : vector<16x128xi1> to vector<16x128xi32>
    %48 = arith.sitofp %47 : vector<16x128xi32> to vector<16x128xf32>
    %cst_13 = arith.constant 0.000000e+00 : f32
    %49 = vector.broadcast %cst_13 : f32 to vector<16x128xf32>
    %cst_14 = arith.constant 1.000000e+00 : f32
    %50 = vector.broadcast %cst_14 : f32 to vector<128x128xf32>
    %51 = arith.mulf %2, %50 : vector<128x128xf32>
    %52 = arith.cmpi slt, %9, %4 : vector<128x1xi32>
    %53 = vector.extract_strided_slice %51 {offsets = [0, 32], sizes = [128, 1], strides = [1, 1]} : vector<128x128xf32> to vector<128x1xf32>
    %54 = vector.extract_strided_slice %51 {offsets = [0, 33], sizes = [128, 1], strides = [1, 1]} : vector<128x128xf32> to vector<128x1xf32>
    %cst_15 = arith.constant -9.000000e+15 : f32
    %55 = vector.broadcast %cst_15 : f32 to vector<128x1xf32>
    %56 = arith.select %52, %54, %55 : vector<128x1xi1>, vector<128x1xf32>
    %57 = vector.broadcast %56 : vector<128x1xf32> to vector<128x128xf32>
    %58 = arith.mulf %41, %57 : vector<128x128xf32>
    %cst_16 = arith.constant dense<0.000000e+00> : vector<128xf32>
    %59 = vector.multi_reduction <add>, %58, %cst_16 [0] : vector<128x128xf32> to vector<128xf32>
    %60 = vector.shape_cast %59 : vector<128xf32> to vector<1x128xf32>
    %61 = vector.broadcast %53 : vector<128x1xf32> to vector<128x128xf32>
    %62 = vector.broadcast %60 : vector<1x128xf32> to vector<128x128xf32>
    %63 = arith.addf %61, %62 : vector<128x128xf32>
    %cst_17 = arith.constant 0.000000e+00 : f32
    %64 = vector.broadcast %cst_17 : f32 to vector<128x128xf32>
    %65 = arith.cmpf ogt, %63, %64 : vector<128x128xf32>
    %cst_18 = arith.constant 2.000000e-01 : f32
    %66 = vector.broadcast %cst_18 : f32 to vector<128x128xf32>
    %67 = arith.mulf %66, %63 : vector<128x128xf32>
    %68 = arith.select %65, %63, %67 : vector<128x128xi1>, vector<128x128xf32>
    %69 = arith.addf %68, %38 : vector<128x128xf32>
    %cst_19 = arith.constant dense<0xFF800000> : vector<128xf32>
    %70 = vector.multi_reduction <maximumf>, %69, %cst_19 [1] : vector<128x128xf32> to vector<128xf32>
    %71 = vector.shape_cast %70 : vector<128xf32> to vector<128x1xf32>
    %72 = vector.broadcast %71 : vector<128x1xf32> to vector<128x128xf32>
    %73 = arith.subf %69, %72 : vector<128x128xf32>
    %74 = math.exp %73 : vector<128x128xf32>
    %cst_20 = arith.constant dense<0.000000e+00> : vector<128xf32>
    %75 = vector.multi_reduction <add>, %74, %cst_20 [1] : vector<128x128xf32> to vector<128xf32>
    %76 = vector.shape_cast %75 : vector<128xf32> to vector<128x1xf32>
    %77 = tpu.reciprocal %76 {approx = true} : vector<128x1xf32> -> vector<128x1xf32>
    %78 = vector.broadcast %77 : vector<128x1xf32> to vector<128x128xf32>
    %79 = arith.mulf %74, %78 : vector<128x128xf32>
    %80 = arith.truncf %79 : vector<128x128xf32> to vector<128x128xbf16>
    %81 = arith.truncf %51 : vector<128x128xf32> to vector<128x128xbf16>
    %cst_21 = arith.constant dense<0.000000e+00> : vector<128x128xf32>
    %82 = tpu.matmul %80, %81, %cst_21 {dimension_numbers = #tpu.dot_dimension_numbers<[1], [0], [0], [1], [0, 0, 1, 1], [], []>} : vector<128x128xbf16>, vector<128x128xbf16>, vector<128x128xf32> -> vector<128x128xf32>
    %c1_i32 = arith.constant 1 : i32
    %83 = vector.broadcast %c1_i32 : i32 to vector<128x1xi32>
    %84 = arith.maxsi %4, %83 : vector<128x1xi32>
    %85 = arith.sitofp %84 : vector<128x1xi32> to vector<128x1xf32>
    %86 = tpu.reciprocal %85 {approx = true} : vector<128x1xf32> -> vector<128x1xf32>
    %87 = arith.mulf %86, %28 : vector<128x1xf32>
    %cst_22 = arith.constant 0.000000e+00 : f32
    %88 = vector.broadcast %cst_22 : f32 to vector<128x1xf32>
    %89 = arith.select %52, %87, %88 : vector<128x1xi1>, vector<128x1xf32>
    %90 = vector.broadcast %89 : vector<128x1xf32> to vector<128x128xf32>
    %91 = arith.mulf %82, %90 : vector<128x128xf32>
    %cst_23 = arith.constant dense<0.000000e+00> : vector<16x128xf32>
    %92 = tpu.matmul %48, %91, %cst_23 {dimension_numbers = #tpu.dot_dimension_numbers<[1], [0], [0], [1], [0, 0, 1, 1], [], []>} : vector<16x128xf32>, vector<128x128xf32>, vector<16x128xf32> -> vector<16x128xf32>
    %93 = arith.addf %49, %92 : vector<16x128xf32>
    %c127_i32 = arith.constant 127 : i32
    %94 = tpu.dynamic_rotate %2 by %c127_i32 dim 0 : vector<128x128xf32>, i32 -> vector<128x128xf32>
    %95 = arith.addf %2, %94 : vector<128x128xf32>
    %cst_24 = arith.constant 5.000000e-01 : f32
    %96 = vector.broadcast %cst_24 : f32 to vector<128x128xf32>
    %97 = arith.mulf %95, %96 : vector<128x128xf32>
    %98 = arith.cmpi slt, %9, %5 : vector<128x1xi32>
    %99 = vector.extract_strided_slice %97 {offsets = [0, 32], sizes = [128, 1], strides = [1, 1]} : vector<128x128xf32> to vector<128x1xf32>
    %100 = vector.extract_strided_slice %97 {offsets = [0, 33], sizes = [128, 1], strides = [1, 1]} : vector<128x128xf32> to vector<128x1xf32>
    %cst_25 = arith.constant -9.000000e+15 : f32
    %101 = vector.broadcast %cst_25 : f32 to vector<128x1xf32>
    %102 = arith.select %98, %100, %101 : vector<128x1xi1>, vector<128x1xf32>
    %103 = vector.broadcast %102 : vector<128x1xf32> to vector<128x128xf32>
    %104 = arith.mulf %41, %103 : vector<128x128xf32>
    %cst_26 = arith.constant dense<0.000000e+00> : vector<128xf32>
    %105 = vector.multi_reduction <add>, %104, %cst_26 [0] : vector<128x128xf32> to vector<128xf32>
    %106 = vector.shape_cast %105 : vector<128xf32> to vector<1x128xf32>
    %107 = vector.broadcast %99 : vector<128x1xf32> to vector<128x128xf32>
    %108 = vector.broadcast %106 : vector<1x128xf32> to vector<128x128xf32>
    %109 = arith.addf %107, %108 : vector<128x128xf32>
    %cst_27 = arith.constant 0.000000e+00 : f32
    %110 = vector.broadcast %cst_27 : f32 to vector<128x128xf32>
    %111 = arith.cmpf ogt, %109, %110 : vector<128x128xf32>
    %cst_28 = arith.constant 2.000000e-01 : f32
    %112 = vector.broadcast %cst_28 : f32 to vector<128x128xf32>
    %113 = arith.mulf %112, %109 : vector<128x128xf32>
    %114 = arith.select %111, %109, %113 : vector<128x128xi1>, vector<128x128xf32>
    %115 = arith.addf %114, %38 : vector<128x128xf32>
    %cst_29 = arith.constant dense<0xFF800000> : vector<128xf32>
    %116 = vector.multi_reduction <maximumf>, %115, %cst_29 [1] : vector<128x128xf32> to vector<128xf32>
    %117 = vector.shape_cast %116 : vector<128xf32> to vector<128x1xf32>
    %118 = vector.broadcast %117 : vector<128x1xf32> to vector<128x128xf32>
    %119 = arith.subf %115, %118 : vector<128x128xf32>
    %120 = math.exp %119 : vector<128x128xf32>
    %cst_30 = arith.constant dense<0.000000e+00> : vector<128xf32>
    %121 = vector.multi_reduction <add>, %120, %cst_30 [1] : vector<128x128xf32> to vector<128xf32>
    %122 = vector.shape_cast %121 : vector<128xf32> to vector<128x1xf32>
    %123 = tpu.reciprocal %122 {approx = true} : vector<128x1xf32> -> vector<128x1xf32>
    %124 = vector.broadcast %123 : vector<128x1xf32> to vector<128x128xf32>
    %125 = arith.mulf %120, %124 : vector<128x128xf32>
    %126 = arith.truncf %125 : vector<128x128xf32> to vector<128x128xbf16>
    %127 = arith.truncf %97 : vector<128x128xf32> to vector<128x128xbf16>
    %cst_31 = arith.constant dense<0.000000e+00> : vector<128x128xf32>
    %128 = tpu.matmul %126, %127, %cst_31 {dimension_numbers = #tpu.dot_dimension_numbers<[1], [0], [0], [1], [0, 0, 1, 1], [], []>} : vector<128x128xbf16>, vector<128x128xbf16>, vector<128x128xf32> -> vector<128x128xf32>
    %c1_i32_32 = arith.constant 1 : i32
    %129 = vector.broadcast %c1_i32_32 : i32 to vector<128x1xi32>
    %130 = arith.maxsi %5, %129 : vector<128x1xi32>
    %131 = arith.sitofp %130 : vector<128x1xi32> to vector<128x1xf32>
    %132 = tpu.reciprocal %131 {approx = true} : vector<128x1xf32> -> vector<128x1xf32>
    %133 = arith.mulf %132, %28 : vector<128x1xf32>
    %cst_33 = arith.constant 0.000000e+00 : f32
    %134 = vector.broadcast %cst_33 : f32 to vector<128x1xf32>
    %135 = arith.select %98, %133, %134 : vector<128x1xi1>, vector<128x1xf32>
    %136 = vector.broadcast %135 : vector<128x1xf32> to vector<128x128xf32>
    %137 = arith.mulf %128, %136 : vector<128x128xf32>
    %cst_34 = arith.constant dense<0.000000e+00> : vector<16x128xf32>
    %138 = tpu.matmul %48, %137, %cst_34 {dimension_numbers = #tpu.dot_dimension_numbers<[1], [0], [0], [1], [0, 0, 1, 1], [], []>} : vector<16x128xf32>, vector<128x128xf32>, vector<16x128xf32> -> vector<16x128xf32>
    %139 = arith.addf %93, %138 : vector<16x128xf32>
    %c126_i32 = arith.constant 126 : i32
    %140 = tpu.dynamic_rotate %2 by %c126_i32 dim 0 : vector<128x128xf32>, i32 -> vector<128x128xf32>
    %141 = arith.addf %95, %140 : vector<128x128xf32>
    %cst_35 = arith.constant 0.333333343 : f32
    %142 = vector.broadcast %cst_35 : f32 to vector<128x128xf32>
    %143 = arith.mulf %141, %142 : vector<128x128xf32>
    %144 = arith.cmpi slt, %9, %6 : vector<128x1xi32>
    %145 = vector.extract_strided_slice %143 {offsets = [0, 32], sizes = [128, 1], strides = [1, 1]} : vector<128x128xf32> to vector<128x1xf32>
    %146 = vector.extract_strided_slice %143 {offsets = [0, 33], sizes = [128, 1], strides = [1, 1]} : vector<128x128xf32> to vector<128x1xf32>
    %cst_36 = arith.constant -9.000000e+15 : f32
    %147 = vector.broadcast %cst_36 : f32 to vector<128x1xf32>
    %148 = arith.select %144, %146, %147 : vector<128x1xi1>, vector<128x1xf32>
    %149 = vector.broadcast %148 : vector<128x1xf32> to vector<128x128xf32>
    %150 = arith.mulf %41, %149 : vector<128x128xf32>
    %cst_37 = arith.constant dense<0.000000e+00> : vector<128xf32>
    %151 = vector.multi_reduction <add>, %150, %cst_37 [0] : vector<128x128xf32> to vector<128xf32>
    %152 = vector.shape_cast %151 : vector<128xf32> to vector<1x128xf32>
    %153 = vector.broadcast %145 : vector<128x1xf32> to vector<128x128xf32>
    %154 = vector.broadcast %152 : vector<1x128xf32> to vector<128x128xf32>
    %155 = arith.addf %153, %154 : vector<128x128xf32>
    %cst_38 = arith.constant 0.000000e+00 : f32
    %156 = vector.broadcast %cst_38 : f32 to vector<128x128xf32>
    %157 = arith.cmpf ogt, %155, %156 : vector<128x128xf32>
    %cst_39 = arith.constant 2.000000e-01 : f32
    %158 = vector.broadcast %cst_39 : f32 to vector<128x128xf32>
    %159 = arith.mulf %158, %155 : vector<128x128xf32>
    %160 = arith.select %157, %155, %159 : vector<128x128xi1>, vector<128x128xf32>
    %161 = arith.addf %160, %38 : vector<128x128xf32>
    %cst_40 = arith.constant dense<0xFF800000> : vector<128xf32>
    %162 = vector.multi_reduction <maximumf>, %161, %cst_40 [1] : vector<128x128xf32> to vector<128xf32>
    %163 = vector.shape_cast %162 : vector<128xf32> to vector<128x1xf32>
    %164 = vector.broadcast %163 : vector<128x1xf32> to vector<128x128xf32>
    %165 = arith.subf %161, %164 : vector<128x128xf32>
    %166 = math.exp %165 : vector<128x128xf32>
    %cst_41 = arith.constant dense<0.000000e+00> : vector<128xf32>
    %167 = vector.multi_reduction <add>, %166, %cst_41 [1] : vector<128x128xf32> to vector<128xf32>
    %168 = vector.shape_cast %167 : vector<128xf32> to vector<128x1xf32>
    %169 = tpu.reciprocal %168 {approx = true} : vector<128x1xf32> -> vector<128x1xf32>
    %170 = vector.broadcast %169 : vector<128x1xf32> to vector<128x128xf32>
    %171 = arith.mulf %166, %170 : vector<128x128xf32>
    %172 = arith.truncf %171 : vector<128x128xf32> to vector<128x128xbf16>
    %173 = arith.truncf %143 : vector<128x128xf32> to vector<128x128xbf16>
    %cst_42 = arith.constant dense<0.000000e+00> : vector<128x128xf32>
    %174 = tpu.matmul %172, %173, %cst_42 {dimension_numbers = #tpu.dot_dimension_numbers<[1], [0], [0], [1], [0, 0, 1, 1], [], []>} : vector<128x128xbf16>, vector<128x128xbf16>, vector<128x128xf32> -> vector<128x128xf32>
    %c1_i32_43 = arith.constant 1 : i32
    %175 = vector.broadcast %c1_i32_43 : i32 to vector<128x1xi32>
    %176 = arith.maxsi %6, %175 : vector<128x1xi32>
    %177 = arith.sitofp %176 : vector<128x1xi32> to vector<128x1xf32>
    %178 = tpu.reciprocal %177 {approx = true} : vector<128x1xf32> -> vector<128x1xf32>
    %179 = arith.mulf %178, %28 : vector<128x1xf32>
    %cst_44 = arith.constant 0.000000e+00 : f32
    %180 = vector.broadcast %cst_44 : f32 to vector<128x1xf32>
    %181 = arith.select %144, %179, %180 : vector<128x1xi1>, vector<128x1xf32>
    %182 = vector.broadcast %181 : vector<128x1xf32> to vector<128x128xf32>
    %183 = arith.mulf %174, %182 : vector<128x128xf32>
    %cst_45 = arith.constant dense<0.000000e+00> : vector<16x128xf32>
    %184 = tpu.matmul %48, %183, %cst_45 {dimension_numbers = #tpu.dot_dimension_numbers<[1], [0], [0], [1], [0, 0, 1, 1], [], []>} : vector<16x128xf32>, vector<128x128xf32>, vector<16x128xf32> -> vector<16x128xf32>
    %185 = arith.addf %139, %184 : vector<16x128xf32>
    %c0_46 = arith.constant 0 : index
    %c0_47 = arith.constant 0 : index
    %186 = vector.load %arg4[%c0_46, %c0_47] : memref<16x128xf32, #tpu.memory_space<vmem>>, vector<16x128xf32>
    tpu.vector_store %arg4[%c0_46, %c0_47], %185 {strides = array<i32>} : memref<16x128xf32, #tpu.memory_space<vmem>>, vector<16x128xf32>,
    return
  }
  func.func @transform_0(%arg0: i32) -> (i32, i32) {
    %c0_i32 = arith.constant 0 : i32
    %c0_i32_0 = arith.constant 0 : i32
    return %arg0, %c0_i32 : i32, i32
  }
  func.func @transform_1(%arg0: i32) -> (i32, i32) {
    %c0_i32 = arith.constant 0 : i32
    %c0_i32_0 = arith.constant 0 : i32
    return %arg0, %c0_i32 : i32, i32
  }
  func.func @transform_2(%arg0: i32) -> (i32, i32) {
    %c0_i32 = arith.constant 0 : i32
    %c0_i32_0 = arith.constant 0 : i32
    %c0_i32_1 = arith.constant 0 : i32
    return %c0_i32, %c0_i32_0 : i32, i32
  }
  func.func @transform_3(%arg0: i32) -> (i32, i32) {
    %c0_i32 = arith.constant 0 : i32
    %c0_i32_0 = arith.constant 0 : i32
    return %arg0, %c0_i32 : i32, i32
  }
}

</mosaic_0001>

<bundles_post_ra>
// kernel: tpu_custom_call.1
= control target key start
LH: loop header
LB: loop body
LE: loop exit
PB: predicated region body
PF: predicated region fallthrough
CT: control target
= control target key end

     0   :  { %8 = vsyncpa [#allocation3], 0  ;;  %s7227_s0 = inlined_call_operand.vmem [shape: s32[256,128], index: 0, kind: input, shape index: {}]   ;;  %s7228_s1 = inlined_call_operand.vmem [shape: f32[256,32], index: 1, kind: input, shape index: {}]   ;;  %s7229_s2 = inlined_call_operand.vmem [shape: f32[32,128], index: 2, kind: input, shape index: {}]   ;;  %s7230_s3 = inlined_call_operand.hbm [shape: f32[32,128], index: 3, kind: output, shape index: {}]  }
   0x1   :  { %10 = vsyncpa [#allocation3 + $0x1], 0  ;;  %s4756_s12 = smov 0   ;;  %s4758_s13 = smov 0  }
   0x2   :  { %s4760_s14 = smov 0   ;;  %s4762_s15 = smov 0  }
   0x3 LB: > { %s4777_s16 = sadd.s32 4294967295, %s4717_s15   ;;  %s3620_s17 = sadd.s32 4294967294, %s4717_s15   ;;  %s4717_s15 = sphi %s4762_s15, %s7727_s15   ;;  %s4713_s14 = sphi %s4760_s14, %s7726_s14   ;;  %s4709_s13 = sphi %s4758_s13, %s7725_s13   ;;  %s4705_s12 = sphi %s4756_s12, %s7724_s12  }
   0x4   : > { %s4781_s18 = sadd.s32 1, %s4717_s15   ;;  %s96_s19 = sadd.s32 1, %s4713_s14 }
   0x5   : > { %s93_s20 = ssub.s32 %s4717_s15, %s4781_s18  ;;  %p106_p0 = scmp.ne.s32.totalorder %s4713_s14, %s4709_s13 }
   0x6   : > { %p94_p1 = scmp.eq.s32.totalorder %s93_s20, 0  ;;  %p107_p2 = scmp.eq.s32.totalorder %s4777_s16, 1 }
   0x7   : > { %p112_p3 = scmp.ne.s32.totalorder %s4709_s13, %s4705_s12  ;;  %p113_p4 = scmp.eq.s32.totalorder %s3620_s17, 1 }
   0x8   : > { %s4792_s21 = scalar_select %p94_p1, %s4713_s14, %s96_s19  }
   0x9   : > { %p4794_p5 = por %p107_p2, %p106_p0  ;;  %p4798_p6 = por %p113_p4, %p112_p3 }
   0xa   : > { %p3623_p7 = scmp.ge.s32.totalorder %s4717_s15, 1  ;;  %p152_p8 = scmp.lt.s32.totalorder %s4717_s15, 3 }
   0xc   : > { %p153_p9 = pnand %p3623_p7, %p152_p8 }
   0xe   : > { %156 = sbr.rel (%p153_p9) target bundleno = 1567 (0x61f), region = 32 }
  0x15   : > { %v211_v0 = vld [vmem:[%s7229_s2] sm:$0xff]  ;;  %v212_v1 = vld [vmem:[%s7229_s2 + $0x8] sm:$0xff]  ;;  %v213_v2 = vld [vmem:[%s7229_s2 + $0x10] sm:$0xff]  ;;  %s3625_s30 = sshll.u32 %s4777_s16, 4  ;;  %v7234_v6 = vmov 32   ;;  %vm215_vm0 = vcmask 261120  }
  0x16   : > { %v4046_v3 = vpack.c.bf16 %v212_v1, %v211_v0  ;;  %v214_v4 = vld [vmem:[%s7229_s2 + $0x18] sm:$0xff]  ;;  %p182_p10 = scmp.lt.s32.totalorder %s3625_s30, 31  ;;  %4289 = vset.pattern.permute.xlu0 %v7234_v6  ;;  %4290 = vset.pattern.permute.xlu1 %v7234_v6  ;;  %v7231_v16 = vmov 0.0   ;;  %s4721_s19 = smov 127   ;;  %v7233_v0 = vlaneseq }
  0x17   : > { %v4050_v5 = vpack.c.bf16 %v214_v4, %v213_v2  ;;  %s4722_s20 = smov 126   ;;  %s4723_s24 = smov 95  }
  0x18   : > { %4047 = vmatprep.subr.bf16.mxu0 %v4046_v3  ;;  %s7729_s30 = smov (!%p182_p10, %s3625_s30), 31  ;;  %v4994_v1 = vshrl.u32 %v7233_v0, 7  ;;  %s4724_s25 = smov 96  }
  0x19   : > { %4049 = vmatpush3.bf16.msra.mxu0 %v4046_v3  ;;  %s3626_s6 = sshll.u32 %s7729_s30, 3  ;;  %s4725_s26 = smov 97  }
  0x1a   : > { %4051 = vmatprep.subr.bf16.mxu0 %v4050_v5  ;;  %s4822_s9 = scalar_lea.vmem %s7228_s1, %s3626_s6  ;;  %s4830_s17 = scalar_lea.vmem %s7227_s0, %s3626_s6  ;;  %7403 = vst [vmem:[#allocation24_spill] sm:$0xff] %v4994_v1 }
  0x1b   : > { %v195_v7 = vld [vmem:[%s4822_s9] sm:$0xff]  ;;  %v196_v8 = vld [vmem:[%s4822_s9 + $0x8] sm:$0xff]  ;;  %v197_v9 = vld [vmem:[%s4822_s9 + $0x10] sm:$0xff]  ;;  %s4730_s27 = smov 1   ;;  %s4731_s28 = smov 2  }
  0x1c   : > { %3821 = vmatprep.mubr.msk.f32.mxu0 %vm215_vm0, %v195_v7  ;;  %v198_v10 = vld [vmem:[%s4822_s9 + $0x18] sm:$0xff]  ;;  %v4837_v11 = vld [vmem:[%s4830_s17] sm:$0xff]  ;;  %v4840_v12 = vld [vmem:[%s4830_s17 + $0x8] sm:$0xff]  ;;  %s178_s29 = sand.u32 1, %s4709_s13   ;;  %s3690_s6 = sshll.u32 %s4777_s16, 8 }
  0x1d   : > { %4053 = vmatpush3.bf16.msra.mxu0 %v4050_v5  ;;  %v199_v13 = vld [vmem:[%s4822_s9 + $0x20] sm:$0xff]  ;;  %vm458_vm1 = vcmp.gt.s32.totalorder %v4837_v11, 0  ;;  %vm459_vm2 = vcmp.gt.s32.totalorder %v4840_v12, 0  ;;  %v4849_v15 = vld [vmem:[%s4830_s17 + $0x28] sm:$0xff]  ;;  %v4870_v22 = vld [vmem:[%s4830_s17 + $0x10] sm:$0xff]  ;;  %s3624_s30 = sshll.u32 %s178_s29, 4 }
  0x1e   : > { %v4846_v14 = vld [vmem:[%s4830_s17 + $0x20] sm:$0xff]  ;;  %v4852_v17 = vsel %vm458_vm1, 1.0, %v7231_v16  ;;  %v4855_v18 = vsel %vm459_vm2, 1.0, %v7231_v16  ;;  %v200_v20 = vld [vmem:[%s4822_s9 + $0x28] sm:$0xff]  ;;  %vm463_vm4 = vcmp.gt.s32.totalorder %v4849_v15, 0  ;;  %v4873_v23 = vld [vmem:[%s4830_s17 + $0x18] sm:$0xff] }
  0x1f   : > { %7384 = vst [vmem:[#allocation5_spill] sm:$0xff] %v4852_v17  ;;  %7385 = vst [vmem:[#allocation6_spill] sm:$0xff] %v4855_v18  ;;  %v4860_v19 = vpack.i.bf16 %v4855_v18, %v4852_v17  ;;  %vm462_vm3 = vcmp.gt.s32.totalorder %v4846_v14, 0  ;;  %v201_v24 = vld [vmem:[%s4822_s9 + $0x30] sm:$0xff]  ;;  %v4879_v25 = vsel %vm463_vm4, 1.0, %v7231_v16  ;;  %vm460_vm5 = vcmp.gt.s32.totalorder %v4870_v22, 0 }
  0x20   : > { %3822 = vmatmul.mubr.msk.f32.vlgmr.msra.gmra.mrb[0].mxu0 %vm215_vm0, %v196_v8  ;;  %v4867_v21 = vsel %vm462_vm3, 1.0, %v7231_v16  ;;  %7387 = vst [vmem:[#allocation8_spill] sm:$0xff] %v4879_v25  ;;  %vm461_vm6 = vcmp.gt.s32.totalorder %v4873_v23, 0  ;;  %v4889_v27 = vld [vmem:[%s4830_s17 + $0x30] sm:$0xff]  ;;  %v4892_v28 = vld [vmem:[%s4830_s17 + $0x38] sm:$0xff]  ;;  %v4899_v30 = vsel %vm460_vm5, 1.0, %v7231_v16 }
  0x21   : > { %3824 = vmatprep.mubr.msk.f32.mxu0 %vm215_vm0, %v197_v9  ;;  %7386 = vst [vmem:[#allocation7_spill] sm:$0xff] %v4867_v21  ;;  %4210 = vrot.lane.b32.xlu0 %v4860_v19, %s4721_s19  ;;  %v4883_v26 = vpack.i.bf16 %v4879_v25, %v4867_v21  ;;  %v202_v29 = vld [vmem:[%s4822_s9 + $0x38] sm:$0xff]  ;;  %7388 = vst [vmem:[#allocation9_spill] sm:$0xff] %v4899_v30  ;;  %v4902_v31 = vsel %vm461_vm6, 1.0, %v7231_v16  ;;  %v203_v32 = vld [vmem:[%s4822_s9 + $0x40] sm:$0xff]  ;;  %vm464_vm7 = vcmp.gt.s32.totalorder %v4889_v27, 0 }
  0x22   : > { %7389 = vst [vmem:[#allocation10_spill] sm:$0xff] %v4902_v31  ;;  %v4214_v33 = vpack.i.bf16 %v4902_v31, %v4899_v30  ;;  %vm465_vm8 = vcmp.gt.s32.totalorder %v4892_v28, 0  ;;  %v4910_v34 = vld [vmem:[%s4830_s17 + $0x40] sm:$0xff]  ;;  %v4913_v35 = vld [vmem:[%s4830_s17 + $0x48] sm:$0xff]  ;;  %v4918_v36 = vsel %vm464_vm7, 1.0, %v7231_v16  ;;  %v419_v40 = vld [vmem:[%s4830_s17 + $0x50] sm:$0xff] }
  0x23   : > { %4220 = vrot.lane.b32.xlu1 %v4883_v26, %s4721_s19  ;;  %7390 = vst [vmem:[#allocation11_spill] sm:$0xff] %v4910_v34  ;;  %7391 = vst [vmem:[#allocation12_spill] sm:$0xff] %v4918_v36  ;;  %v4921_v37 = vsel %vm465_vm8, 1.0, %v7231_v16  ;;  %v204_v38 = vld [vmem:[%s4822_s9 + $0x48] sm:$0xff]  ;;  %v205_v41 = vld [vmem:[%s4822_s9 + $0x50] sm:$0xff]  ;;  %vm466_vm9 = vcmp.gt.s32.totalorder %v4910_v34, 0 }
  0x24   : > { %3825 = vmatmul.mubr.msk.f32.gmra.mrb[2].mxu0 %vm215_vm0, %v198_v10  ;;  %7392 = vst [vmem:[#allocation13_spill] sm:$0xff] %v4921_v37  ;;  %v4224_v39 = vpack.i.bf16 %v4921_v37, %v4918_v36  ;;  %vm467_vm10 = vcmp.gt.s32.totalorder %v4913_v35, 0  ;;  %v4932_v42 = vld [vmem:[%s4830_s17 + $0x58] sm:$0xff]  ;;  %v4936_v43 = vsel %vm466_vm9, 1.0, %v7231_v16  ;;  %vm468_vm11 = vcmp.gt.s32.totalorder %v419_v40, 0  ;;  %v421_v47 = vld [vmem:[%s4830_s17 + $0x60] sm:$0xff] }
  0x25   : > { %3827 = vmatprep.mubr.msk.f32.mxu0 %vm215_vm0, %v199_v13  ;;  %4215 = vrot.lane.b32.xlu0 %v4214_v33, %s4721_s19  ;;  %7393 = vst [vmem:[#allocation14_spill] sm:$0xff] %v4932_v42  ;;  %7394 = vst [vmem:[#allocation15_spill] sm:$0xff] %v4936_v43  ;;  %v4939_v44 = vsel %vm467_vm10, 1.0, %v7231_v16  ;;  %v206_v46 = vld [vmem:[%s4822_s9 + $0x58] sm:$0xff]  ;;  %vm469_vm12 = vcmp.gt.s32.totalorder %v4932_v42, 0  ;;  %v207_v48 = vld [vmem:[%s4822_s9 + $0x60] sm:$0xff] }
  0x26   : > { %7395 = vst [vmem:[#allocation16_spill] sm:$0xff] %v4939_v44  ;;  %v4229_v45 = vpack.i.bf16 %v4939_v44, %v4936_v43  ;;  %v4951_v49 = vsel %vm468_vm11, 1.0, %v7231_v16  ;;  %v4954_v50 = vsel %vm469_vm12, 1.0, %v7231_v16  ;;  %v4957_v51 = vld [vmem:[%s4830_s17 + $0x68] sm:$0xff]  ;;  %vm470_vm13 = vcmp.gt.s32.totalorder %v421_v47, 0  ;;  %v423_v55 = vld [vmem:[%s4830_s17 + $0x70] sm:$0xff] }
  0x27   : > { %4225 = vrot.lane.b32.xlu1 %v4224_v39, %s4721_s19  ;;  %7396 = vst [vmem:[#allocation17_spill] sm:$0xff] %v4951_v49  ;;  %7397 = vst [vmem:[#allocation18_spill] sm:$0xff] %v4954_v50  ;;  %v4234_v52 = vpack.i.bf16 %v4954_v50, %v4951_v49  ;;  %v208_v53 = vld [vmem:[%s4822_s9 + $0x68] sm:$0xff]  ;;  %vm471_vm14 = vcmp.gt.s32.totalorder %v4957_v51, 0  ;;  %v4967_v54 = vsel %vm470_vm13, 1.0, %v7231_v16  ;;  %v424_v56 = vld [vmem:[%s4830_s17 + $0x78] sm:$0xff] }
  0x28   : > { %3828 = vmatmul.mubr.msk.f32.gmra.mrb[4].mxu0 %vm215_vm0, %v200_v20  ;;  %7398 = vst [vmem:[#allocation19_spill] sm:$0xff] %v4957_v51  ;;  %7399 = vst [vmem:[#allocation20_spill] sm:$0xff] %v4967_v54  ;;  %v209_v57 = vld [vmem:[%s4822_s9 + $0x70] sm:$0xff]  ;;  %v4973_v58 = vsel %vm471_vm14, 1.0, %v7231_v16  ;;  %vm472_vm15 = vcmp.gt.s32.totalorder %v423_v55, 0  ;;  %vm473_vm1 = vcmp.gt.s32.totalorder %v424_v56, 0 }
  0x29   : > { %3830 = vmatprep.mubr.msk.f32.mxu0 %vm215_vm0, %v201_v24  ;;  %4230 = vrot.lane.b32.xlu0 %v4229_v45, %s4721_s19  ;;  %7400 = vst [vmem:[#allocation21_spill] sm:$0xff] %v4973_v58  ;;  %v4239_v59 = vpack.i.bf16 %v4973_v58, %v4967_v54  ;;  %v210_v60 = vld [vmem:[%s4822_s9 + $0x78] sm:$0xff]  ;;  %v4982_v61 = vsel %vm472_vm15, 1.0, %v7231_v16  ;;  %v4985_v62 = vsel %vm473_vm1, 1.0, %v7231_v16  ;;  %vm2630_vm2 = vcmp.lt.s32.totalorder %v4994_v1, 6  ;;  %s180_s4 = scalar_lea.vmem [#allocation2], %s3624_s30  ;;  %s7184_s9 = scalar_lea.hbm %s7230_s3, %s3690_s6 }
  0x2a   : > { %7401 = vst [vmem:[#allocation22_spill] sm:$0xff] %v4982_v61  ;;  %7402 = vst [vmem:[#allocation23_spill] sm:$0xff] %v4985_v62  ;;  %v4244_v63 = vpack.i.bf16 %v4985_v62, %v4982_v61  ;;  %s3546_s5 = sshll.u32 %s180_s4, 4  ;;  %s7186_s10 = scalar_lea.sflag [#allocation3], %s178_s29  ;;  %s7179_s5 = int_to_ptr.vmem [resolvable:$true] %s3546_s5 }
  0x2b   : > { %4235 = vrot.lane.b32.xlu1 %v4234_v52, %s4721_s19  ;;  %s4655_s11 = scalar_lea.vmem %s7179_s5, 256  ;;  %s4733_s16 = smov [#allocation2]  }
  0x2c   : > { %3831 = vmatmul.mubr.msk.f32.gmra.mrb[6].mxu0 %vm215_vm0, %v202_v29  ;;  %p4656_p11 = scmp.ne.s32.totalorder %s7179_s5, %s4655_s11 }
  0x2d   : > { %3833 = vmatprep.mubr.msk.f32.mxu0 %vm215_vm0, %v203_v32  ;;  %4240 = vrot.lane.b32.xlu0 %v4239_v59, %s4721_s19 }
  0x2e   : > { %p4657_p12 = pnand %p4656_p11, %p4794_p5 }
  0x2f   : > { %4245 = vrot.lane.b32.xlu1 %v4244_v63, %s4721_s19 }
  0x30   : > { %3834 = vmatmul.mubr.msk.f32.gmra.mrb[8].mxu0 %vm215_vm0, %v204_v38  ;;  %p4658_p13 = pneg %p4657_p12 }
  0x31   : > { %3836 = vmatprep.mubr.msk.f32.mxu0 %vm215_vm0, %v205_v41  ;;  %4250 = vrot.lane.b32.xlu0 %v4860_v19, %s4722_s20 }
  0x33   : > { %4255 = vrot.lane.b32.xlu1 %v4214_v33, %s4722_s20 }
  0x34   : > { %3837 = vmatmul.mubr.msk.f32.gmra.mrb[10].mxu0 %vm215_vm0, %v206_v46 }
  0x35   : > { %3839 = vmatprep.mubr.msk.f32.mxu0 %vm215_vm0, %v207_v48  ;;  %4260 = vrot.lane.b32.xlu0 %v4883_v26, %s4722_s20 }
  0x37   : > { %4265 = vrot.lane.b32.xlu1 %v4224_v39, %s4722_s20 }
  0x38   : > { %3840 = vmatmul.mubr.msk.f32.gmra.mrb[12].mxu0 %vm215_vm0, %v208_v53 }
  0x39   : > { %3842 = vmatprep.mubr.msk.f32.mxu0 %vm215_vm0, %v209_v57  ;;  %4270 = vrot.lane.b32.xlu0 %v4229_v45, %s4722_s20 }
  0x3b   : > { %4275 = vrot.lane.b32.xlu1 %v4234_v52, %s4722_s20 }
  0x3c   : > { %3843 = vmatmul.mubr.msk.f32.gmra.mrb[14].mxu0 %vm215_vm0, %v210_v60  ;;  %vm1625_vm0 = vcmp.lt.s32.totalorder %v4994_v1, 7 }
  0x3d   : > { %4280 = vrot.lane.b32.xlu0 %v4239_v59, %s4722_s20 }
  0x3f   : > { %4285 = vrot.lane.b32.xlu1 %v4244_v63, %s4722_s20 }
  0xf3   : > { %v3823_v2 = vpop.f32.mrb[0].mxu0 }
  0xf4   : > { %v4996_v3 = vpop.f32.mrb[1].mxu0  ;;  %837 = vrot.lane.b32.xlu1 %v3823_v2, %s4723_s24  ;;  %1021 = vperm.xlu0 %4289, %v3823_v2   ;;  %v1610_v4 = vrot.slane %v3823_v2, 1  ;;  %v2615_v5 = vrot.slane %v3823_v2, 2 }
  0xf5   : > { %v1312_v7 = vpack.c.bf16 %v3823_v2, %v4996_v3  ;;  %v7237_v8 = vrot.slane %v4996_v3, 1  ;;  %v7236_v9 = vrot.slane %v4996_v3, 2  ;;  %v7405_v17 = vrot.slane %v4996_v3, 1 }
  0xf7   : > { %v3826_v10 = vpop.f32.mrb[2].mxu0  ;;  %3845 = vmatprep.subr.bf16.mxu1 %v1312_v7  ;;  %v1640_v13 = vsel %vm1625_vm0, %v7237_v8, %v1610_v4  ;;  %v2645_v19 = vsel %vm2630_vm2, %v7236_v9, %v2615_v5 }
  0xf8   : > { %v1612_v20 = vrot.slane %v3826_v10, 1  ;;  %v5012_v24 = vpop.f32.mrb[3].mxu0  ;;  %3846 = vmatpush3.bf16.msra.mxu1 %v1312_v7  ;;  %1017 = vperm.xlu1 %4290, %v4996_v3   ;;  %v1642_v26 = vadd.f32 %v1640_v13, %v4996_v3  ;;  %v2617_v29 = vrot.slane %v3826_v10, 2 }
  0xf9   : > { %v1611_v32 = vrot.slane %v5012_v24, 1  ;;  %v2616_v33 = vrot.slane %v5012_v24, 2  ;;  %835 = vrot.lane.b32.xlu0 %v4996_v3, %s4723_s24  ;;  %v1313_v38 = vpack.c.bf16 %v3826_v10, %v5012_v24 }
  0xfa   : > { %v2647_v39 = vadd.f32 %v2645_v19, %v1642_v26  ;;  %v5035_v53 = vmul.f32 0.5, %v1642_v26 }
  0xfb   : > { %v5021_v40 = vpop.f32.mrb[4].mxu0  ;;  %3847 = vmatprep.subr.bf16.mxu1 %v1313_v38  ;;  %v1639_v41 = vsel %vm1625_vm0, %v1610_v4, %v1611_v32  ;;  %v1638_v45 = vsel %vm1625_vm0, %v1611_v32, %v1612_v20  ;;  %v2644_v46 = vsel %vm2630_vm2, %v2615_v5, %v2616_v33  ;;  %v2643_v47 = vsel %vm2630_vm2, %v2616_v33, %v2617_v29 }
  0xfc   : > { %v1614_v48 = vrot.slane %v5021_v40, 1  ;;  %v5032_v52 = vpop.f32.mrb[5].mxu0  ;;  %841 = vrot.lane.b32.xlu1 %v3826_v10, %s4723_s24  ;;  %3848 = vmatpush3.bf16.msra.mxu1 %v1313_v38  ;;  %v1643_v55 = vadd.f32 %v3823_v2, %v1639_v41  ;;  %v1644_v56 = vadd.f32 %v1638_v45, %v5012_v24  ;;  %v2619_v63 = vrot.slane %v5021_v40, 2 }
  0xfd   : > { %v1613_v57 = vrot.slane %v5032_v52, 1  ;;  %839 = vrot.lane.b32.xlu0 %v5012_v24, %s4723_s24  ;;  %v1314_v59 = vpack.c.bf16 %v5021_v40, %v5032_v52  ;;  %v2618_v60 = vrot.slane %v5032_v52, 2  ;;  %v5047_v5 = vmul.f32 0.33333334, %v2647_v39 }
  0xfe   : > { %v5045_v4 = vmul.f32 0.5, %v1643_v55  ;;  %v2648_v7 = vadd.f32 %v2644_v46, %v1643_v55  ;;  %v5049_v2 = vadd.f32 %v2643_v47, %v1644_v56  ;;  %v5070_v47 = vmul.f32 0.5, %v1644_v56 }
  0xff   : > { %v5051_v13 = vpop.f32.mrb[6].mxu0  ;;  %v1637_v19 = vsel %vm1625_vm0, %v1612_v20, %v1613_v57  ;;  %3849 = vmatprep.subr.bf16.mxu1 %v1314_v59  ;;  %v1636_v26 = vsel %vm1625_vm0, %v1613_v57, %v1614_v48  ;;  %v2641_v32 = vsel %vm2630_vm2, %v2618_v60, %v2619_v63  ;;  %v2642_v33 = vsel %vm2630_vm2, %v2617_v29, %v2618_v60 }
 0x100   : > { %v1616_v38 = vrot.slane %v5051_v13, 1  ;;  %v5062_v39 = vpop.f32.mrb[7].mxu0  ;;  %1029 = vperm.xlu1 %4290, %v3826_v10   ;;  %v2167_v41 = vpack.c.bf16 %v5045_v4, %v5035_v53  ;;  %v1645_v45 = vadd.f32 %v3826_v10, %v1637_v19  ;;  %3850 = vmatpush3.bf16.msra.mxu1 %v1314_v59  ;;  %v1646_v20 = vadd.f32 %v1636_v26, %v5032_v52 }
 0x101   : > { %v1615_v46 = vrot.slane %v5062_v39, 1  ;;  %1690 = vrot.lane.b32.xlu0 %v5035_v53, %s4724_s25  ;;  %v1315_v29 = vpack.c.bf16 %v5051_v13, %v5062_v39  ;;  %v5074_v55 = vmul.f32 0.33333334, %v2648_v7  ;;  %v2620_v16 = vrot.slane %v5062_v39, 2 }
 0x102   : > { %3877 = vmatprep.subr.bf16.mxu0 %v2167_v41  ;;  %v5076_v57 = vmul.f32 0.5, %v1645_v45  ;;  %v5078_v10 = vmul.f32 0.5, %v1646_v20  ;;  %v5080_v59 = vadd.f32 %v2641_v32, %v1646_v20  ;;  %v5082_v60 = vadd.f32 %v2642_v33, %v1645_v45 }
 0x103   : > { %v5084_v19 = vpop.f32.mrb[8].mxu0  ;;  %3878 = vmatpush3.bf16.msra.mxu0 %v2167_v41  ;;  %v1635_v56 = vsel %vm1625_vm0, %v1614_v48, %v1615_v46  ;;  %v1634_v26 = vsel %vm1625_vm0, %v1615_v46, %v1616_v38  ;;  %3851 = vmatprep.subr.bf16.mxu1 %v1315_v29  ;;  %v5092_v7 = vpack.c.bf16 %v5074_v55, %v5047_v5  ;;  %v2621_v6 = vrot.slane %v5051_v13, 2 }
 0x104   : > { %v1618_v32 = vrot.slane %v5084_v19, 1  ;;  %v5096_v33 = vpop.f32.mrb[9].mxu0  ;;  %1025 = vperm.xlu1 %4290, %v5012_v24   ;;  %v2168_v41 = vpack.c.bf16 %v5076_v57, %v5070_v47  ;;  %v1647_v48 = vadd.f32 %v5021_v40, %v1635_v56  ;;  %v1648_v45 = vadd.f32 %v1634_v26, %v5062_v39  ;;  %3852 = vmatpush3.bf16.msra.mxu1 %v1315_v29 }
 0x105   : > { %7404 = vst [vmem:[#allocation25_spill] sm:$0xff] %v5092_v7  ;;  %v1617_v20 = vrot.slane %v5096_v33, 1  ;;  %843 = vrot.lane.b32.xlu0 %v5032_v52, %s4723_s24  ;;  %v1316_v46 = vpack.c.bf16 %v5084_v19, %v5096_v33  ;;  %v2640_v56 = vsel %vm2630_vm2, %v2619_v63, %v2620_v16  ;;  %v2622_v62 = vrot.slane %v5096_v33, 2 }
 0x106   : > { %3879 = vmatprep.subr.bf16.mxu0 %v2168_v41  ;;  %v5108_v0 = vmul.f32 0.5, %v1647_v48  ;;  %v5110_v24 = vmul.f32 0.5, %v1648_v45  ;;  %v5121_v8 = vadd.f32 %v2640_v56, %v1647_v48  ;;  %v2639_v56 = vsel %vm2630_vm2, %v2620_v16, %v2621_v6 }
 0x107   : > { %v5115_v26 = vpop.f32.mrb[10].mxu0  ;;  %3880 = vmatpush3.bf16.msra.mxu0 %v2168_v41  ;;  %v1633_v29 = vsel %vm1625_vm0, %v1616_v38, %v1617_v20  ;;  %v1632_v9 = vsel %vm1625_vm0, %v1617_v20, %v1618_v32  ;;  %3853 = vmatprep.subr.bf16.mxu1 %v1316_v46  ;;  %v5143_v44 = vadd.f32 %v2639_v56, %v1648_v45 }
 0x108   : > { %v1620_v58 = vrot.slane %v5115_v26, 1  ;;  %v5125_v61 = vpop.f32.mrb[11].mxu0  ;;  %845 = vrot.lane.b32.xlu1 %v5021_v40, %s4723_s24  ;;  %v2169_v63 = vpack.c.bf16 %v5108_v0, %v5078_v10  ;;  %v1649_v38 = vadd.f32 %v5051_v13, %v1633_v29  ;;  %v1650_v41 = vadd.f32 %v1632_v9, %v5096_v33  ;;  %3854 = vmatpush3.bf16.msra.mxu1 %v1316_v46 }
 0x109   : > { %v1619_v48 = vrot.slane %v5125_v61, 1  ;;  %1033 = vperm.xlu0 %4289, %v5032_v52   ;;  %v1317_v20 = vpack.c.bf16 %v5115_v26, %v5125_v61  ;;  %v2623_v9 = vrot.slane %v5084_v19, 2  ;;  %v2638_v16 = vsel %vm2630_vm2, %v2621_v6, %v2622_v62 }
 0x10a   : > { %3881 = vmatprep.subr.bf16.mxu0 %v2169_v63  ;;  %v5139_v50 = vmul.f32 0.5, %v1649_v38  ;;  %v5141_v54 = vmul.f32 0.5, %v1650_v41  ;;  %v2624_v49 = vrot.slane %v5125_v61, 2 }
 0x10b   : > { %v5146_v46 = vpop.f32.mrb[12].mxu0  ;;  %3882 = vmatpush3.bf16.msra.mxu0 %v2169_v63  ;;  %v1631_v52 = vsel %vm1625_vm0, %v1618_v32, %v1619_v48  ;;  %v1630_v29 = vsel %vm1625_vm0, %v1619_v48, %v1620_v58  ;;  %3855 = vmatprep.subr.bf16.mxu1 %v1317_v20 }
 0x10c   : > { %v1622_v45 = vrot.slane %v5146_v46, 1  ;;  %v5156_v56 = vpop.f32.mrb[13].mxu0  ;;  %1037 = vperm.xlu1 %4290, %v5021_v40   ;;  %v2170_v63 = vpack.c.bf16 %v5139_v50, %v5110_v24  ;;  %v1651_v32 = vadd.f32 %v5084_v19, %v1631_v52  ;;  %v1652_v37 = vadd.f32 %v1630_v29, %v5125_v61  ;;  %3856 = vmatpush3.bf16.msra.mxu1 %v1317_v20 }
 0x10d   : > { %v1621_v48 = vrot.slane %v5156_v56, 1  ;;  %2695 = vrot.lane.b32.xlu0 %v5047_v5, %s4725_s26  ;;  %v1318_v6 = vpack.c.bf16 %v5146_v46, %v5156_v56  ;;  %v2637_v40 = vsel %vm2630_vm2, %v2622_v62, %v2623_v9  ;;  %v5176_v20 = vadd.f32 %v2638_v16, %v1649_v38 }
 0x10e   : > { %3883 = vmatprep.subr.bf16.mxu0 %v2170_v63  ;;  %v5170_v43 = vmul.f32 0.5, %v1651_v32  ;;  %v5172_v25 = vmul.f32 0.5, %v1652_v37  ;;  %v5174_v52 = vadd.f32 %v2637_v40, %v1650_v41  ;;  %v2625_v62 = vrot.slane %v5115_v26, 2 }
 0x10f   : > { %v5178_v29 = vpop.f32.mrb[14].mxu0  ;;  %3884 = vmatpush3.bf16.msra.mxu0 %v2170_v63  ;;  %v1629_v36 = vsel %vm1625_vm0, %v1620_v58, %v1621_v48  ;;  %v1628_v31 = vsel %vm1625_vm0, %v1621_v48, %v1622_v45  ;;  %3857 = vmatprep.subr.bf16.mxu1 %v1318_v6  ;;  %v2636_v21 = vsel %vm2630_vm2, %v2623_v9, %v2624_v49  ;;  %v2626_v51 = vrot.slane %v5156_v56, 2 }
 0x110   : > { %v1624_v41 = vrot.slane %v5178_v29, 1  ;;  %v5188_v40 = vpop.f32.mrb[15].mxu0  ;;  %1872 = vperm.xlu1 %4290, %v5035_v53   ;;  %v2171_v38 = vpack.c.bf16 %v5170_v43, %v5141_v54  ;;  %v1653_v58 = vadd.f32 %v5115_v26, %v1629_v36  ;;  %v1654_v16 = vadd.f32 %v1628_v31, %v5156_v56  ;;  %3858 = vmatpush3.bf16.msra.mxu1 %v1318_v6 }
 0x111   : > { %v1623_v63 = vrot.slane %v5188_v40, 1  ;;  %1694 = vrot.lane.b32.xlu0 %v5070_v47, %s4724_s25  ;;  %v1319_v9 = vpack.c.bf16 %v5178_v29, %v5188_v40  ;;  %v2635_v31 = vsel %vm2630_vm2, %v2624_v49, %v2625_v62 }
 0x112   : > { %3885 = vmatprep.subr.bf16.mxu0 %v2171_v38  ;;  %v5200_v48 = vmul.f32 0.5, %v1653_v58  ;;  %v5202_v53 = vmul.f32 0.5, %v1654_v16  ;;  %v1641_v36 = vsel %vm1625_vm0, %v1624_v41, %v7405_v17 }
 0x113   : > { %3886 = vmatpush3.bf16.msra.mxu0 %v2171_v38  ;;  %v1627_v6 = vsel %vm1625_vm0, %v1622_v45, %v1623_v63  ;;  %v1626_v30 = vsel %vm1625_vm0, %v1623_v63, %v1624_v41  ;;  %v1657_v18 = vadd.f32 %v5178_v29, %v1641_v36  ;;  %3859 = vmatprep.subr.bf16.mxu1 %v1319_v9  ;;  %v2627_v45 = vrot.slane %v5146_v46, 2 }
 0x114   : > { %2877 = vperm.xlu1 %4290, %v5047_v5   ;;  %v2172_v17 = vpack.c.bf16 %v5200_v48, %v5172_v25  ;;  %v1655_v34 = vadd.f32 %v5146_v46, %v1627_v6  ;;  %v1656_v49 = vadd.f32 %v1626_v30, %v5188_v40  ;;  %3860 = vmatpush3.bf16.msra.mxu1 %v1319_v9 }
 0x115   : > { %1876 = vperm.xlu0 %4289, %v5045_v4   ;;  %v5223_v41 = vmul.f32 0.5, %v1657_v18  ;;  %v5225_v38 = vadd.f32 %v2635_v31, %v1652_v37  ;;  %v5227_v63 = vadd.f32 %v2636_v21, %v1651_v32  ;;  %v2634_v5 = vsel %vm2630_vm2, %v2625_v62, %v2626_v51 }
 0x116   : > { %3887 = vmatprep.subr.bf16.mxu0 %v2172_v17  ;;  %v5231_v36 = vmul.f32 0.5, %v1655_v34  ;;  %v5233_v6 = vmul.f32 0.5, %v1656_v49  ;;  %v2633_v30 = vsel %vm2630_vm2, %v2626_v51, %v2627_v45  ;;  %v5237_v9 = vadd.f32 %v2634_v5, %v1653_v58 }
 0x117   : > { %3888 = vmatpush3.bf16.msra.mxu0 %v2172_v17  ;;  %v5239_v42 = vadd.f32 %v2633_v30, %v1654_v16  ;;  %v2628_v37 = vrot.slane %v5188_v40, 2  ;;  %v2666_v32 = vmul.f32 0.33333334, %v5082_v60  ;;  %v2629_v62 = vrot.slane %v5178_v29, 2 }
 0x118   : > { %849 = vrot.lane.b32.xlu1 %v5051_v13, %s4723_s24  ;;  %v2173_v21 = vpack.c.bf16 %v5231_v36, %v5202_v53  ;;  %v2665_v51 = vmul.f32 0.33333334, %v5049_v2  ;;  %v2174_v16 = vpack.c.bf16 %v5223_v41, %v5233_v6  ;;  %v7406_v17 = vrot.slane %v4996_v3, 2  ;;  %v5304_v3 = vpop.permute.xlu0 %4210 }
 0x119   : > { %847 = vrot.lane.b32.xlu0 %v5062_v39, %s4723_s24  ;;  %v2632_v58 = vsel %vm2630_vm2, %v2627_v45, %v2628_v37  ;;  %v2631_v31 = vsel %vm2630_vm2, %v2628_v37, %v2629_v62  ;;  %7410 = vst [vmem:[#allocation29_spill] sm:$0xff] %v5304_v3  ;;  %v7477_v3 = vmov 0 }
 0x11a   : > { %3889 = vmatprep.subr.bf16.mxu0 %v2173_v21  ;;  %v2646_v60 = vsel %vm2630_vm2, %v2629_v62, %v7406_v17  ;;  %v5261_v5 = vadd.f32 %v2632_v58, %v1655_v34  ;;  %v5263_v30 = vadd.f32 %v2631_v31, %v1656_v49  ;;  %v5268_v45 = vpack.c.bf16 %v2666_v32, %v2665_v51  ;;  %v5301_v34 = vpop.permute.xlu1 %4220 }
 0x11b   : > { %3890 = vmatpush3.bf16.msra.mxu0 %v2173_v21  ;;  %v5265_v2 = vadd.f32 %v2646_v60, %v1657_v18  ;;  %v5289_v18 = vmul.f32 0.33333334, %v5080_v59  ;;  %7409 = vst [vmem:[#allocation28_spill] sm:$0xff] %v5301_v34  ;;  %v5353_v59 = vmul.f32 0.33333334, %v5174_v52  ;;  %v442_v58 = vand.u32 7, %v4994_v1 }
 0x11c   : > { %3891 = vmatprep.subr.bf16.mxu0 %v2174_v16  ;;  %1045 = vperm.xlu1 %4290, %v5051_v13   ;;  %7407 = vst [vmem:[#allocation26_spill] sm:$0xff] %v5268_v45  ;;  %v5313_v13 = vpop.permute.xlu0 %4215  ;;  %v5391_v49 = vmul.f32 0.33333334, %v5225_v38  ;;  %v5455_v17 = vadd.s32 8, %v4994_v1 }
 0x11d   : > { %1041 = vperm.xlu0 %4289, %v5062_v39   ;;  %7408 = vst [vmem:[#allocation27_spill] sm:$0xff] %v5289_v18  ;;  %7412 = vst [vmem:[#allocation31_spill] sm:$0xff] %v5313_v13  ;;  %v5317_v39 = vmul.f32 0.33333334, %v5143_v44  ;;  %v5464_v45 = vmul.f32 0.33333334, %v5265_v2  ;;  %vm5467_vm3 = vcmp.lt.s32.totalorder %v442_v58, %v4837_v11 }
 0x11e   : > { %7422 = vst [vmem:[#allocation41_spill] sm:$0xff] %v5353_v59  ;;  %7429 = vst [vmem:[#allocation48_spill] sm:$0xff] %v5391_v49  ;;  %v7442_v11 = vmov 0   ;;  %v5484_v2 = vadd.s32 16, %v4994_v1  ;;  %v5487_v58 = vmul.f32 0.33333334, %v5261_v5 }
 0x11f   : > { %3892 = vmatpush3.bf16.msra.mxu0 %v2174_v16  ;;  %7413 = vst [vmem:[#allocation32_spill] sm:$0xff] %v5317_v39  ;;  %v5447_v16 = vadd.s32 24, %v4994_v1  ;;  %7436 = vst [vmem:[#allocation55_spill] sm:$0xff] %v5455_v17  ;;  %v5626_v13 = vadd.s32 64, %v4994_v1 }
 0x120   : > { %3979 = vmatprep.subr.bf16.mxu0 %v5092_v7  ;;  %1692 = vrot.lane.b32.xlu1 %v5045_v4, %s4724_s25  ;;  %v5309_v4 = vpop.permute.xlu1 %4225  ;;  %7438 = vst [vmem:[#allocation57_spill] sm:$0xff] %v5464_v45  ;;  %7443 = vst [vmem:[#allocation59_spill] sm:$0xff] %v5487_v58 }
 0x121   : > { %2699 = vrot.lane.b32.xlu0 %v2665_v51, %s4725_s26  ;;  %7411 = vst [vmem:[#allocation30_spill] sm:$0xff] %v5309_v4  ;;  %v445_v7 = vand.u32 7, %v5447_v16 }
 0x123   : > { %vm5490_vm4 = vcmp.lt.s32.totalorder %v445_v7, %v4873_v23  ;;  %v444_v23 = vand.u32 7, %v5484_v2 }
 0x124   : > { %1880 = vperm.xlu1 %4290, %v5070_v47   ;;  %v5320_v47 = vpop.permute.xlu1 %4235 }
 0x125   : > { %2881 = vperm.xlu0 %4289, %v5074_v55   ;;  %7414 = vst [vmem:[#allocation33_spill] sm:$0xff] %v5320_v47  ;;  %vm5526_vm7 = vcmp.lt.s32.totalorder %v444_v23, %v4870_v22 }
 0x128   : > { %2697 = vrot.lane.b32.xlu1 %v5074_v55, %s4725_s26  ;;  %v5325_v55 = vmul.f32 0.33333334, %v5121_v8  ;;  %v5333_v44 = vpop.permute.xlu1 %4245 }
 0x129   : > { %1698 = vrot.lane.b32.xlu0 %v5078_v10, %s4724_s25  ;;  %7417 = vst [vmem:[#allocation36_spill] sm:$0xff] %v5333_v44 }
 0x12a   : > { %7415 = vst [vmem:[#allocation34_spill] sm:$0xff] %v5325_v55 }
 0x12c   : > { %2885 = vperm.xlu1 %4290, %v2665_v51  }
 0x12d   : > { %1884 = vperm.xlu0 %4289, %v5076_v57  }
 0x130   : > { %853 = vrot.lane.b32.xlu1 %v5084_v19, %s4723_s24 }
 0x131   : > { %851 = vrot.lane.b32.xlu0 %v5096_v33, %s4723_s24 }
 0x134   : > { %1053 = vperm.xlu1 %4290, %v5084_v19  }
 0x135   : > { %1049 = vperm.xlu0 %4289, %v5096_v33   ;;  %v5361_v33 = vmul.f32 0.33333334, %v5176_v20 }
 0x137   : > { %7424 = vst [vmem:[#allocation43_spill] sm:$0xff] %v5361_v33 }
 0x138   : > { %1696 = vrot.lane.b32.xlu1 %v5076_v57, %s4724_s25  ;;  %v5327_v57 = vpop.permute.xlu0 %4230 }
 0x139   : > { %2703 = vrot.lane.b32.xlu0 %v5289_v18, %s4725_s26  ;;  %7416 = vst [vmem:[#allocation35_spill] sm:$0xff] %v5327_v57 }
 0x13c   : > { %1888 = vperm.xlu1 %4290, %v5078_v10  }
 0x13d   : > { %2889 = vperm.xlu0 %4289, %v2666_v32  }
 0x140   : > { %2701 = vrot.lane.b32.xlu1 %v2666_v32, %s4725_s26  ;;  %v5423_v32 = vmul.f32 0.33333334, %v5237_v9 }
 0x141   : > { %1702 = vrot.lane.b32.xlu0 %v5110_v24, %s4724_s25 }
 0x142   : > { %7432 = vst [vmem:[#allocation51_spill] sm:$0xff] %v5423_v32 }
 0x144   : > { %857 = vrot.lane.b32.xlu1 %v5115_v26, %s4723_s24 }
 0x145   : > { %1892 = vperm.xlu0 %4289, %v5108_v0  }
 0x148   : > { %1061 = vperm.xlu1 %4290, %v5115_v26  }
 0x149   : > { %855 = vrot.lane.b32.xlu0 %v5125_v61, %s4723_s24 }
 0x14c   : > { %1700 = vrot.lane.b32.xlu1 %v5108_v0, %s4724_s25  ;;  %v5341_v0 = vpop.permute.xlu1 %4255 }
 0x14d   : > { %1057 = vperm.xlu0 %4289, %v5125_v61   ;;  %v5337_v61 = vpop.permute.xlu0 %4240  ;;  %7419 = vst [vmem:[#allocation38_spill] sm:$0xff] %v5341_v0 }
 0x14e   : > { %7418 = vst [vmem:[#allocation37_spill] sm:$0xff] %v5337_v61  ;;  %v5496_v61 = vadd.s32 56, %v4994_v1 }
 0x150   : > { %1896 = vperm.xlu1 %4290, %v5110_v24   ;;  %v5350_v10 = vpop.permute.xlu1 %4265 }
 0x151   : > { %2707 = vrot.lane.b32.xlu0 %v5317_v39, %s4725_s26  ;;  %v5345_v8 = vpop.permute.xlu0 %4250  ;;  %7421 = vst [vmem:[#allocation40_spill] sm:$0xff] %v5350_v10 }
 0x152   : > { %7420 = vst [vmem:[#allocation39_spill] sm:$0xff] %v5345_v8 }
 0x154   : > { %2705 = vrot.lane.b32.xlu1 %v5325_v55, %s4725_s26 }
 0x155   : > { %1706 = vrot.lane.b32.xlu0 %v5141_v54, %s4724_s25  ;;  %v5356_v19 = vpop.permute.xlu0 %4260 }
 0x156   : > { %7423 = vst [vmem:[#allocation42_spill] sm:$0xff] %v5356_v19  ;;  %v7278_v19 = vmov 1  }
 0x158   : > { %861 = vrot.lane.b32.xlu1 %v5146_v46, %s4723_s24 }
 0x159   : > { %1900 = vperm.xlu0 %4289, %v5139_v50   ;;  %v5369_v24 = vpop.permute.xlu0 %4270 }
 0x15a   : > { %7426 = vst [vmem:[#allocation45_spill] sm:$0xff] %v5369_v24 }
 0x15c   : > { %1069 = vperm.xlu1 %4290, %v5146_v46  }
 0x15d   : > { %859 = vrot.lane.b32.xlu0 %v5156_v56, %s4723_s24  ;;  %v5376_v26 = vpop.permute.xlu0 %4280 }
 0x15e   : > { %7428 = vst [vmem:[#allocation47_spill] sm:$0xff] %v5376_v26  ;;  %v443_v26 = vand.u32 7, %v5455_v17 }
 0x160   : > { %1704 = vrot.lane.b32.xlu1 %v5139_v50, %s4724_s25  ;;  %v5365_v50 = vpop.permute.xlu1 %4275  ;;  %vm5501_vm5 = vcmp.lt.s32.totalorder %v443_v26, %v4840_v12  ;;  %v7450_v12 = vmov 0  ;;  %v449_v26 = vand.u32 7, %v5496_v61 }
 0x161   : > { %1065 = vperm.xlu0 %4289, %v5156_v56   ;;  %7425 = vst [vmem:[#allocation44_spill] sm:$0xff] %v5365_v50  ;;  %v7444_v50 = vmov 0 }
 0x162   : > { %v7445_v50 = vsel %vm5490_vm4, 4294967295, %v7444_v50  ;;  %vm5534_vm8 = vcmp.lt.s32.totalorder %v449_v26, %v4892_v28 }
 0x163   : > { %7446 = vst [vmem:[#allocation60_spill] sm:$0xff] %v7445_v50  ;;  %v7489_v50 = vld [vmem:[#allocation19_spill] sm:$0xff] }
 0x164   : > { %1904 = vperm.xlu1 %4290, %v5141_v54   ;;  %v5374_v54 = vpop.permute.xlu1 %4285 }
 0x165   : > { %2711 = vrot.lane.b32.xlu0 %v5353_v59, %s4725_s26  ;;  %7427 = vst [vmem:[#allocation46_spill] sm:$0xff] %v5374_v54  ;;  %v5473_v54 = vadd.s32 40, %v4994_v1 }
 0x168   : > { %2709 = vrot.lane.b32.xlu1 %v5361_v33, %s4725_s26  ;;  %v5381_v46 = vpop.permute.xlu1 %837 }
 0x169   : > { %1710 = vrot.lane.b32.xlu0 %v5172_v25, %s4724_s25  ;;  %v884_v7 = vsel %vm5501_vm5, %v5381_v46, -9e+15  ;;  %v7456_v46 = vmov 0 }
 0x16a   : > { %v7457_v46 = vsel %vm5534_vm8, 4294967295, %v7456_v46 }
 0x16b   : > { %7458 = vst [vmem:[#allocation64_spill] sm:$0xff] %v7457_v46 }
 0x16c   : > { %865 = vrot.lane.b32.xlu1 %v5178_v29, %s4723_s24 }
 0x16d   : > { %1908 = vperm.xlu0 %4289, %v5170_v43  }
 0x170   : > { %1077 = vperm.xlu1 %4290, %v5178_v29   ;;  %v5397_v29 = vmul.f32 0.33333334, %v5227_v63  ;;  %v5417_v63 = vmul.f32 0.33333334, %v5239_v42 }
 0x171   : > { %863 = vrot.lane.b32.xlu0 %v5188_v40, %s4723_s24 }
 0x172   : > { %7430 = vst [vmem:[#allocation49_spill] sm:$0xff] %v5397_v29  ;;  %7431 = vst [vmem:[#allocation50_spill] sm:$0xff] %v5417_v63 }
 0x173   : > { %v5383_v56 = vpop.permute.xlu0 %1021 }
 0x174   : > { %1708 = vrot.lane.b32.xlu1 %v5170_v43, %s4724_s25 }
 0x175   : > { %1073 = vperm.xlu0 %4289, %v5188_v40  }
 0x177   : > { %v5388_v52 = vpop.permute.xlu1 %1017  ;;  %v836_v20 = vpop.permute.xlu0 %835 }
 0x178   : > { %1912 = vperm.xlu1 %4290, %v5172_v25   ;;  %v883_v44 = vsel %vm5467_vm3, %v836_v20, -9e+15  ;;  %v447_v20 = vand.u32 7, %v5473_v54 }
 0x179   : > { %2715 = vrot.lane.b32.xlu0 %v5391_v49, %s4725_s26 }
 0x17a   : > { %vm5516_vm6 = vcmp.lt.s32.totalorder %v447_v20, %v4849_v15 }
 0x17b   : > { %v842_v37 = vpop.permute.xlu1 %841  ;;  %v5399_v21 = vpop.permute.xlu0 %839  ;;  %v7451_v12 = vsel %vm5516_vm6, 4294967295, %v7450_v12 }
 0x17c   : > { %2713 = vrot.lane.b32.xlu1 %v5397_v29, %s4725_s26  ;;  %v886_v5 = vsel %vm5490_vm4, %v842_v37, -9e+15  ;;  %7452 = vst [vmem:[#allocation62_spill] sm:$0xff] %v7451_v12  ;;  %v885_v15 = vsel %vm5526_vm7, %v5399_v21, -9e+15  ;;  %v5550_v21 = vadd.s32 72, %v4994_v1 }
 0x17d   : > { %1714 = vrot.lane.b32.xlu0 %v5202_v53, %s4724_s25 }
 0x17f   : > { %v5405_v43 = vpop.permute.xlu1 %1029  ;;  %v5407_v40 = vpop.permute.xlu0 %1690 }
 0x180   : > { %1712 = vrot.lane.b32.xlu1 %v5200_v48, %s4724_s25  ;;  %v1738_v28 = vsel %vm5467_vm3, %v5407_v40, -9e+15  ;;  %v7462_v40 = vmov 0 }
 0x181   : > { %1916 = vperm.xlu0 %4289, %v5200_v48  }
 0x183   : > { %v5412_v25 = vpop.permute.xlu1 %1025  ;;  %v5414_v38 = vpop.permute.xlu0 %843 }
 0x184   : > { %1920 = vperm.xlu1 %4290, %v5202_v53  }
 0x185   : > { %2719 = vrot.lane.b32.xlu0 %v5417_v63, %s4725_s26 }
 0x187   : > { %v846_v62 = vpop.permute.xlu1 %845 }
 0x188   : > { %v5425_v51 = vpop.permute.xlu0 %1033  ;;  %2717 = vrot.lane.b32.xlu1 %v5423_v32, %s4725_s26  ;;  %v888_v10 = vsel %vm5516_vm6, %v846_v62, -9e+15  ;;  %v5541_v62 = vadd.s32 32, %v4994_v1 }
 0x189   : > { %1932 = vperm.xlu0 %4289, %v5223_v41  }
 0x18b   : > { %v5430_v48 = vpop.permute.xlu1 %1037 }
 0x18c   : > { %v5432_v42 = vpop.permute.xlu0 %2695  ;;  %1720 = vrot.lane.b32.xlu1 %v5223_v41, %s4724_s25  ;;  %v5452_v41 = vmul.f32 0.33333334, %v5263_v30  ;;  %v7439_v30 = vmov 0 }
 0x18d   : > { %1718 = vrot.lane.b32.xlu0 %v5233_v6, %s4724_s25  ;;  %v7440_v30 = vsel %vm5467_vm3, 4294967295, %v7439_v30 }
 0x18e   : > { %7435 = vst [vmem:[#allocation54_spill] sm:$0xff] %v5452_v41  ;;  %7441 = vst [vmem:[#allocation58_spill] sm:$0xff] %v7440_v30 }
 0x18f   : > { %v5438_v53 = vpop.permute.xlu1 %1872 }
 0x190   : > { %7433 = vst [vmem:[#allocation52_spill] sm:$0xff] %v5438_v53  ;;  %v5440_v9 = vpop.permute.xlu0 %1694  ;;  %1716 = vrot.lane.b32.xlu1 %v5231_v36, %s4724_s25 }
 0x191   : > { %1924 = vperm.xlu0 %4289, %v5231_v36   ;;  %v7262_v36 = vmov 0  }
 0x193   : > { %v5449_v31 = vpop.permute.xlu1 %2877 }
 0x194   : > { %7434 = vst [vmem:[#allocation53_spill] sm:$0xff] %v5449_v31  ;;  %v5457_v60 = vpop.permute.xlu0 %1876  ;;  %1928 = vperm.xlu1 %4290, %v5233_v6   ;;  %v7481_v31 = vmov 1  }
 0x195   : > { %7437 = vst [vmem:[#allocation56_spill] sm:$0xff] %v5457_v60  ;;  %2723 = vrot.lane.b32.xlu0 %v5452_v41, %s4725_s26  ;;  %v4603_v60 = vld [vmem:[%s4830_s17 + $0x50] sm:$0xff] }
 0x196   : > { %4292 = vset.pattern.permute.xlu0 %v7262_v36 }
 0x197   : > { %v850_v6 = vpop.permute.xlu1 %849 }
 0x198   : > { %v5478_v36 = vpop.permute.xlu0 %847  ;;  %2725 = vrot.lane.b32.xlu1 %v5464_v45, %s4725_s26  ;;  %v890_v22 = vsel %vm5534_vm8, %v850_v6, -9e+15 }
 0x199   : > { %901 = vperm.xlu0 %4292, %v883_v44   ;;  %4291 = vset.pattern.permute.xlu1 %v7442_v11  ;;  %v7447_v44 = vmov 0 }
 0x19a   : > { %v7448_v44 = vsel %vm5501_vm5, 4294967295, %v7447_v44 }
 0x19b   : > { %v5498_v24 = vpop.permute.xlu1 %1045  ;;  %7449 = vst [vmem:[#allocation61_spill] sm:$0xff] %v7448_v44 }
 0x19c   : > { %v5507_v47 = vpop.permute.xlu0 %1041  ;;  %2721 = vrot.lane.b32.xlu1 %v5487_v58, %s4725_s26 }
 0x19d   : > { %916 = vperm.xlu0 %4292, %v886_v5   ;;  %v7453_v5 = vmov 0 }
 0x19e   : > { %v7454_v5 = vsel %vm5526_vm7, 4294967295, %v7453_v5 }
 0x19f   : > { %v1693_v37 = vpop.permute.xlu1 %1692  ;;  %7455 = vst [vmem:[#allocation63_spill] sm:$0xff] %v7454_v5  ;;  %v450_v5 = vand.u32 7, %v5626_v13 }
 0x1a0   : > { %v5523_v57 = vpop.permute.xlu0 %2699  ;;  %906 = vperm.xlu1 %4291, %v884_v7   ;;  %v446_v7 = vand.u32 7, %v5541_v62  ;;  %v1739_v6 = vsel %vm5501_vm5, %v1693_v37, -9e+15  ;;  %v7466_v37 = vmov 0 }
 0x1a1   : > { %926 = vperm.xlu0 %4292, %v888_v10  }
 0x1a2   : > { %vm5564_vm9 = vcmp.lt.s32.totalorder %v446_v7, %v4846_v14 }
 0x1a3   : > { %v5538_v20 = vpop.permute.xlu1 %1880  ;;  %v7463_v40 = vsel %vm5564_vm9, 4294967295, %v7462_v40  ;;  %v887_v0 = vsel %vm5564_vm9, %v5414_v38, -9e+15  ;;  %v2743_v38 = vsel %vm5467_vm3, %v5432_v42, -9e+15 }
 0x1a4   : > { %7459 = vst [vmem:[#allocation65_spill] sm:$0xff] %v5538_v20  ;;  %v5545_v10 = vpop.permute.xlu0 %2881  ;;  %911 = vperm.xlu1 %4291, %v885_v15   ;;  %7464 = vst [vmem:[#allocation68_spill] sm:$0xff] %v7463_v40 }
 0x1a5   : > { %7460 = vst [vmem:[#allocation66_spill] sm:$0xff] %v5545_v10  ;;  %936 = vperm.xlu0 %4292, %v890_v22   ;;  %v451_v22 = vand.u32 7, %v5550_v21  ;;  %v7484_v10 = vmov 0 }
 0x1a7   : > { %v5547_v23 = vpop.permute.xlu1 %2697  ;;  %vm5576_vm10 = vcmp.lt.s32.totalorder %v451_v22, %v4913_v35 }
 0x1a8   : > { %v1699_v26 = vpop.permute.xlu0 %1698  ;;  %4293 = vset.pattern.permute.xlu1 %v7278_v19  ;;  %v7467_v37 = vsel %vm5576_vm10, 4294967295, %v7466_v37 }
 0x1a9   : > { %4296 = vset.pattern.permute.xlu0 %v7278_v19  ;;  %1756 = vperm.xlu1 %4293, %v1738_v28   ;;  %7468 = vst [vmem:[#allocation70_spill] sm:$0xff] %v7467_v37 }
 0x1aa   : > { %1761 = vperm.xlu0 %4296, %v1739_v6   ;;  %v7273_v6 = vmov 2  }
 0x1ab   : > { %v5560_v15 = vpop.permute.xlu1 %2885 }
 0x1ac   : > { %7461 = vst [vmem:[#allocation67_spill] sm:$0xff] %v5560_v15  ;;  %v5568_v4 = vpop.permute.xlu0 %1884 }
 0x1ad   : > { %7465 = vst [vmem:[#allocation69_spill] sm:$0xff] %v5568_v4  ;;  %4294 = vset.pattern.permute.xlu1 %v7442_v11  ;;  %v7490_v4 = vmov 0 }
 0x1ae   : > { %921 = vperm.xlu1 %4294, %v887_v0   ;;  %4300 = vset.pattern.permute.xlu0 %v7442_v11  ;;  %v5587_v0 = vadd.s32 48, %v4994_v1 }
 0x1af   : > { %v854_v14 = vpop.permute.xlu1 %853 }
 0x1b0   : > { %v892_v28 = vsel %vm5576_vm10, %v854_v14, -9e+15  ;;  %v852_v7 = vpop.permute.xlu0 %851  ;;  %v1740_v14 = vsel %vm5526_vm7, %v5440_v9, -9e+15  ;;  %v5611_v9 = vadd.s32 88, %v4994_v1 }
 0x1b1   : > { %946 = vperm.xlu0 %4300, %v892_v28   ;;  %v448_v28 = vand.u32 7, %v5587_v0 }
 0x1b2   : > { %4295 = vset.pattern.permute.xlu1 %v7273_v6 }
 0x1b3   : > { %v5589_v35 = vpop.permute.xlu1 %1053  ;;  %2761 = vperm.xlu1 %4295, %v2743_v38   ;;  %vm5604_vm11 = vcmp.lt.s32.totalorder %v448_v28, %v4889_v27  ;;  %v7470_v38 = vmov 0  ;;  %v2745_v28 = vsel %vm5526_vm7, %v5523_v57, -9e+15  ;;  %v1742_v57 = vsel %vm5564_vm9, %v1699_v26, -9e+15 }
 0x1b4   : > { %v5591_v22 = vpop.permute.xlu0 %1049  ;;  %v7471_v38 = vsel %vm5604_vm11, 4294967295, %v7470_v38 }
 0x1b5   : > { %7469 = vst [vmem:[#allocation71_spill] sm:$0xff] %v5591_v22  ;;  %4301 = vset.pattern.permute.xlu0 %v7278_v19  ;;  %7472 = vst [vmem:[#allocation72_spill] sm:$0xff] %v7471_v38 }
 0x1b7   : > { %v1697_v42 = vpop.permute.xlu1 %1696  ;;  %4297 = vset.pattern.permute.xlu1 %v7278_v19  ;;  %v889_v19 = vsel %vm5604_vm11, %v5478_v36, -9e+15  ;;  %v7476_v36 = vld [vmem:[#allocation14_spill] sm:$0xff] }
 0x1b8   : > { %v1741_v6 = vsel %vm5490_vm4, %v1697_v42, -9e+15  ;;  %v5601_v30 = vpop.permute.xlu0 %2703  ;;  %1766 = vperm.xlu1 %4297, %v1740_v14   ;;  %v7475_v42 = vmov 2  }
 0x1b9   : > { %1771 = vperm.xlu0 %4301, %v1741_v6   ;;  %v453_v6 = vand.u32 7, %v5611_v9 }
 0x1bb   : > { %v5608_v34 = vpop.permute.xlu1 %1888  ;;  %vm5629_vm12 = vcmp.lt.s32.totalorder %v453_v6, %v7476_v36  ;;  %v7483_v36 = vld [vmem:[#allocation11_spill] sm:$0xff] }
 0x1bc   : > { %7473 = vst [vmem:[#allocation73_spill] sm:$0xff] %v5608_v34  ;;  %v5616_v8 = vpop.permute.xlu0 %2889  ;;  %4298 = vset.pattern.permute.xlu1 %v7442_v11  ;;  %v7478_v3 = vsel %vm5629_vm12, 4294967295, %v7477_v3  ;;  %vm5645_vm13 = vcmp.lt.s32.totalorder %v450_v5, %v7483_v36  ;;  %v5659_v5 = vadd.s32 104, %v4994_v1 }
 0x1bd   : > { %7474 = vst [vmem:[#allocation74_spill] sm:$0xff] %v5616_v8  ;;  %931 = vperm.xlu1 %4298, %v889_v19   ;;  %4305 = vset.pattern.permute.xlu0 %v7442_v11  ;;  %7479 = vst [vmem:[#allocation14_spill] sm:$0xff] %v7478_v3  ;;  %v7485_v10 = vsel %vm5645_vm13, 4294967295, %v7484_v10 }
 0x1be   : > { %7486 = vst [vmem:[#allocation11_spill] sm:$0xff] %v7485_v10  ;;  %v4606_v10 = vld [vmem:[%s4830_s17 + $0x70] sm:$0xff] }
 0x1bf   : > { %v2702_v27 = vpop.permute.xlu1 %2701 }
 0x1c0   : > { %v1703_v14 = vpop.permute.xlu0 %1702  ;;  %v2746_v36 = vsel %vm5490_vm4, %v2702_v27, -9e+15 }
 0x1c1   : > { %4299 = vset.pattern.permute.xlu1 %v7475_v42 }
 0x1c2   : > { %2771 = vperm.xlu1 %4299, %v2745_v28  }
 0x1c3   : > { %v858_v19 = vpop.permute.xlu1 %857 }
 0x1c4   : > { %v894_v15 = vsel %vm5629_vm12, %v858_v19, -9e+15  ;;  %v5635_v8 = vpop.permute.xlu0 %1892 }
 0x1c5   : > { %7480 = vst [vmem:[#allocation75_spill] sm:$0xff] %v5635_v8  ;;  %956 = vperm.xlu0 %4305, %v894_v15   ;;  %v891_v15 = vsel %vm5645_vm13, %v852_v7, -9e+15  ;;  %v5667_v7 = vadd.s32 80, %v4994_v1 }
 0x1c6   : > { %4302 = vset.pattern.permute.xlu1 %v7481_v31 }
 0x1c7   : > { %v5641_v28 = vpop.permute.xlu1 %1061  ;;  %1776 = vperm.xlu1 %4302, %v1742_v57   ;;  %v452_v27 = vand.u32 7, %v5667_v7 }
 0x1c8   : > { %7482 = vst [vmem:[#allocation76_spill] sm:$0xff] %v5641_v28  ;;  %v856_v6 = vpop.permute.xlu0 %855 }
 0x1c9   : > { %4306 = vset.pattern.permute.xlu0 %v7481_v31  ;;  %vm5685_vm15 = vcmp.lt.s32.totalorder %v452_v27, %v4603_v60  ;;  %v5699_v60 = vadd.s32 96, %v4994_v1 }
 0x1cb   : > { %v1701_v19 = vpop.permute.xlu1 %1700  ;;  %4303 = vset.pattern.permute.xlu1 %v7442_v11  ;;  %v454_v12 = vand.u32 7, %v5699_v60 }
 0x1cc   : > { %v1743_v26 = vsel %vm5516_vm6, %v1701_v19, -9e+15  ;;  %v5654_v8 = vpop.permute.xlu0 %1057  ;;  %941 = vperm.xlu1 %4303, %v891_v15   ;;  %v455_v19 = vand.u32 7, %v5659_v5 }
 0x1cd   : > { %7487 = vst [vmem:[#allocation77_spill] sm:$0xff] %v5654_v8  ;;  %1781 = vperm.xlu0 %4306, %v1743_v26   ;;  %v7494_v8 = vmov 0 }
 0x1ce   : > { %vm5676_vm14 = vcmp.lt.s32.totalorder %v455_v19, %v7489_v50  ;;  %v7495_v8 = vsel %vm5685_vm15, 4294967295, %v7494_v8 }
 0x1cf   : > { %v5656_v57 = vpop.permute.xlu1 %1896  ;;  %v7491_v4 = vsel %vm5676_vm14, 4294967295, %v7490_v4  ;;  %7496 = vst [vmem:[#allocation80_spill] sm:$0xff] %v7495_v8 }
 0x1d0   : > { %7488 = vst [vmem:[#allocation78_spill] sm:$0xff] %v5656_v57  ;;  %v5663_v34 = vpop.permute.xlu0 %2707  ;;  %4304 = vset.pattern.permute.xlu1 %v7475_v42  ;;  %v1744_v57 = vsel %vm5604_vm11, %v1703_v14, -9e+15  ;;  %7492 = vst [vmem:[#allocation19_spill] sm:$0xff] %v7491_v4  ;;  %v893_v14 = vsel %vm5685_vm15, %v856_v6, -9e+15 }
 0x1d1   : > { %2776 = vperm.xlu1 %4304, %v2746_v36   ;;  %4310 = vset.pattern.permute.xlu0 %v7442_v11 }
 0x1d3   : > { %v2706_v15 = vpop.permute.xlu1 %2705 }
 0x1d4   : > { %v1707_v26 = vpop.permute.xlu0 %1706  ;;  %v2748_v19 = vsel %vm5516_vm6, %v2706_v15, -9e+15 }
 0x1d5   : > { %4307 = vset.pattern.permute.xlu1 %v7481_v31  ;;  %v1746_v15 = vsel %vm5645_vm13, %v1707_v26, -9e+15 }
 0x1d6   : > { %1786 = vperm.xlu1 %4307, %v1744_v57  }
 0x1d7   : > { %v862_v36 = vpop.permute.xlu1 %861 }
 0x1d8   : > { %v896_v20 = vsel %vm5676_vm14, %v862_v36, -9e+15  ;;  %v5682_v53 = vpop.permute.xlu0 %1900 }
 0x1d9   : > { %7493 = vst [vmem:[#allocation79_spill] sm:$0xff] %v5682_v53  ;;  %966 = vperm.xlu0 %4310, %v896_v20  }
 0x1da   : > { %4308 = vset.pattern.permute.xlu1 %v7442_v11 }
 0x1db   : > { %v5692_v50 = vpop.permute.xlu1 %1069  ;;  %951 = vperm.xlu1 %4308, %v893_v14   ;;  %v5708_v14 = vadd.s32 120, %v4994_v1 }
 0x1dc   : > { %7497 = vst [vmem:[#allocation81_spill] sm:$0xff] %v5692_v50  ;;  %v860_v57 = vpop.permute.xlu0 %859  ;;  %v4605_v50 = vld [vmem:[%s4830_s17 + $0x78] sm:$0xff] }
 0x1dd   : > { %4311 = vset.pattern.permute.xlu0 %v7481_v31 }
 0x1df   : > { %v1705_v36 = vpop.permute.xlu1 %1704  ;;  %4309 = vset.pattern.permute.xlu1 %v7475_v42 }
 0x1e0   : > { %v1745_v20 = vsel %vm5534_vm8, %v1705_v36, -9e+15  ;;  %v5703_v6 = vpop.permute.xlu0 %1065  ;;  %2786 = vperm.xlu1 %4309, %v2748_v19   ;;  %v457_v19 = vand.u32 7, %v5708_v14 }
 0x1e1   : > { %7498 = vst [vmem:[#allocation82_spill] sm:$0xff] %v5703_v6  ;;  %1791 = vperm.xlu0 %4311, %v1745_v20   ;;  %v4604_v20 = vld [vmem:[%s4830_s17 + $0x60] sm:$0xff] }
 0x1e2   : > { %vm5717_vm1 = vcmp.lt.s32.totalorder %v454_v12, %v4604_v20  ;;  %vm5725_vm0 = vcmp.lt.s32.totalorder %v457_v19, %v4605_v50 }
 0x1e3   : > { %v5705_v27 = vpop.permute.xlu1 %1904  ;;  %v895_v26 = vsel %vm5717_vm1, %v860_v57, -9e+15 }
 0x1e4   : > { %7499 = vst [vmem:[#allocation83_spill] sm:$0xff] %v5705_v27  ;;  %v2712_v53 = vpop.permute.xlu0 %2711  ;;  %4312 = vset.pattern.permute.xlu1 %v7481_v31  ;;  %v7500_v27 = vmov 0 }
 0x1e5   : > { %1796 = vperm.xlu1 %4312, %v1746_v15   ;;  %4315 = vset.pattern.permute.xlu0 %v7442_v11  ;;  %v7501_v27 = vsel %vm5717_vm1, 4294967295, %v7500_v27  ;;  %v7503_v15 = vmov 0  ;;  %v2751_v19 = vsel %vm5645_vm13, %v2712_v53, -9e+15 }
 0x1e6   : > { %7502 = vst [vmem:[#allocation84_spill] sm:$0xff] %v7501_v27  ;;  %v7504_v15 = vsel %vm5725_vm0, 4294967295, %v7503_v15 }
 0x1e7   : > { %v2710_v36 = vpop.permute.xlu1 %2709  ;;  %7505 = vst [vmem:[#allocation85_spill] sm:$0xff] %v7504_v15 }
 0x1e8   : > { %v1711_v6 = vpop.permute.xlu0 %1710  ;;  %v2750_v20 = vsel %vm5534_vm8, %v2710_v36, -9e+15 }
 0x1e9   : > { %4313 = vset.pattern.permute.xlu1 %v7442_v11 }
 0x1ea   : > { %961 = vperm.xlu1 %4313, %v895_v26  }
 0x1eb   : > { %v866_v28 = vpop.permute.xlu1 %865 }
 0x1ec   : > { %v898_v22 = vsel %vm5725_vm0, %v866_v28, -9e+15  ;;  %v5731_v12 = vpop.permute.xlu0 %1908  ;;  %v5742_v28 = vadd.s32 112, %v4994_v1 }
 0x1ed   : > { %7506 = vst [vmem:[#allocation86_spill] sm:$0xff] %v5731_v12  ;;  %976 = vperm.xlu0 %4315, %v898_v22  }
 0x1ee   : > { %4314 = vset.pattern.permute.xlu1 %v7475_v42  ;;  %v456_v46 = vand.u32 7, %v5742_v28 }
 0x1ef   : > { %v5736_v57 = vpop.permute.xlu1 %1077  ;;  %2796 = vperm.xlu1 %4314, %v2750_v20   ;;  %v1748_v20 = vsel %vm5685_vm15, %v1711_v6, -9e+15 }
 0x1f0   : > { %7507 = vst [vmem:[#allocation87_spill] sm:$0xff] %v5736_v57  ;;  %v864_v50 = vpop.permute.xlu0 %863  ;;  %vm5755_vm2 = vcmp.lt.s32.totalorder %v456_v46, %v4606_v10 }
 0x1f1   : > { %4316 = vset.pattern.permute.xlu0 %v7481_v31 }
 0x1f3   : > { %v1709_v26 = vpop.permute.xlu1 %1708  ;;  %2801 = vperm.xlu1 %4314, %v2751_v19   ;;  %v7510_v19 = vmov 0 }
 0x1f4   : > { %v1747_v22 = vsel %vm5576_vm10, %v1709_v26, -9e+15  ;;  %v5746_v36 = vpop.permute.xlu0 %1073  ;;  %v7511_v19 = vsel %vm5755_vm2, 4294967295, %v7510_v19 }
 0x1f5   : > { %7508 = vst [vmem:[#allocation88_spill] sm:$0xff] %v5746_v36  ;;  %1801 = vperm.xlu0 %4316, %v1747_v22   ;;  %7512 = vst [vmem:[#allocation90_spill] sm:$0xff] %v7511_v19  ;;  %v897_v22 = vsel %vm5755_vm2, %v864_v50, -9e+15 }
 0x1f7   : > { %v5751_v12 = vpop.permute.xlu1 %1912  ;;  %4317 = vset.pattern.permute.xlu1 %v7481_v31 }
 0x1f8   : > { %7509 = vst [vmem:[#allocation89_spill] sm:$0xff] %v5751_v12  ;;  %v2716_v53 = vpop.permute.xlu0 %2715  ;;  %1806 = vperm.xlu1 %4317, %v1748_v20  }
 0x1f9   : > { %v2753_v46 = vsel %vm5685_vm15, %v2716_v53, -9e+15 }
 0x1fb   : > { %v5759_v26 = vpop.permute.xlu1 %2713 }
 0x1fc   : > { %v1715_v36 = vpop.permute.xlu0 %1714  ;;  %4318 = vset.pattern.permute.xlu1 %v7442_v11 }
 0x1fd   : > { %971 = vperm.xlu1 %4318, %v897_v22   ;;  %v1750_v20 = vsel %vm5717_vm1, %v1715_v36, -9e+15 }
 0x1ff   : > { %v1713_v6 = vpop.permute.xlu1 %1712 }
 0x200   : > { %v1749_v12 = vsel %vm5629_vm12, %v1713_v6, -9e+15  ;;  %v5766_v57 = vpop.permute.xlu0 %1916 }
 0x201   : > { %7513 = vst [vmem:[#allocation91_spill] sm:$0xff] %v5766_v57  ;;  %1811 = vperm.xlu0 %4316, %v1749_v12   ;;  %4319 = vset.pattern.permute.xlu1 %v7475_v42 }
 0x202   : > { %2811 = vperm.xlu1 %4319, %v2753_v46  }
 0x203   : > { %v5771_v10 = vpop.permute.xlu1 %1920 }
 0x204   : > { %7514 = vst [vmem:[#allocation92_spill] sm:$0xff] %v5771_v10  ;;  %v2720_v50 = vpop.permute.xlu0 %2719 }
 0x205   : > { %v2755_v36 = vsel %vm5717_vm1, %v2720_v50, -9e+15 }
 0x206   : > { %4320 = vset.pattern.permute.xlu1 %v7481_v31 }
 0x207   : > { %v2718_v22 = vpop.permute.xlu1 %2717  ;;  %1816 = vperm.xlu1 %4320, %v1750_v20  }
 0x208   : > { %v2754_v6 = vsel %vm5629_vm12, %v2718_v22, -9e+15  ;;  %v5778_v11 = vpop.permute.xlu0 %1932 }
 0x209   : > { %7515 = vst [vmem:[#allocation93_spill] sm:$0xff] %v5778_v11 }
 0x20b   : > { %v1721_v53 = vpop.permute.xlu1 %1720  ;;  %4321 = vset.pattern.permute.xlu1 %v7475_v42 }
 0x20c   : > { %v1753_v12 = vsel %vm5725_vm0, %v1721_v53, -9e+15  ;;  %2816 = vperm.xlu1 %4321, %v2754_v6   ;;  %v1719_v3 = vpop.permute.xlu0 %1718  ;;  %v7517_v53 = vmov 32  }
 0x20d   : > { %1831 = vperm.xlu0 %4316, %v1753_v12   ;;  %v1752_v8 = vsel %vm5755_vm2, %v1719_v3, -9e+15 }
 0x20f   : > { %v1717_v46 = vpop.permute.xlu1 %1716 }
 0x210   : > { %v1751_v20 = vsel %vm5676_vm14, %v1717_v46, -9e+15  ;;  %2821 = vperm.xlu1 %4321, %v2755_v36   ;;  %v5807_v36 = vpop.permute.xlu0 %1924 }
 0x211   : > { %1821 = vperm.xlu0 %4316, %v1751_v20   ;;  %7518 = vst [vmem:[#allocation95_spill] sm:$0xff] %v5807_v36  ;;  %v2744_v20 = vsel %vm5501_vm5, %v5547_v23, -9e+15  ;;  %v2749_v23 = vsel %vm5604_vm11, %v5663_v34, -9e+15 }
 0x213   : > { %v5787_v22 = vpop.permute.xlu1 %1928 }
 0x214   : > { %7516 = vst [vmem:[#allocation94_spill] sm:$0xff] %v5787_v22  ;;  %4322 = vset.pattern.permute.xlu1 %v7481_v31 }
 0x215   : > { %4324 = vset.pattern.permute.xlu0 %v7517_v53  ;;  %1826 = vperm.xlu1 %4322, %v1752_v8  }
 0x216   : > { %2897 = vperm.xlu0 %4324, %v5325_v55  }
 0x217   : > { %v2726_v50 = vpop.permute.xlu1 %2725 }
 0x218   : > { %v2758_v27 = vsel %vm5725_vm0, %v2726_v50, -9e+15 }
 0x219   : > { %4323 = vset.pattern.permute.xlu1 %v7517_v53  ;;  %v2747_v53 = vsel %vm5564_vm9, %v5601_v30, -9e+15  ;;  %v2752_v30 = vsel %vm5576_vm10, %v5759_v26, -9e+15 }
 0x21a   : > { %2905 = vperm.xlu0 %4324, %v5361_v33   ;;  %2893 = vperm.xlu1 %4323, %v5289_v18  }
 0x21b   : > { %v2722_v6 = vpop.permute.xlu1 %2721 }
 0x21e   : > { %2913 = vperm.xlu0 %4324, %v5397_v29   ;;  %2901 = vperm.xlu1 %4323, %v5317_v39  }
 0x21f   : > { %v907_v3 = vpop.permute.xlu1 %906 }
 0x222   : > { %2921 = vperm.xlu0 %4324, %v5423_v32   ;;  %2909 = vperm.xlu1 %4323, %v5353_v59  }
 0x223   : > { %v912_v8 = vpop.permute.xlu1 %911 }
 0x226   : > { %2929 = vperm.xlu0 %4324, %v5487_v58   ;;  %2917 = vperm.xlu1 %4323, %v5391_v49   ;;  %v2724_v58 = vpop.permute.xlu0 %2723 }
 0x228   : > { %v5803_v12 = vpop.permute.xlu1 %1756 }
 0x22a   : > { %2937 = vperm.xlu0 %4324, %v5464_v45   ;;  %2925 = vperm.xlu1 %4323, %v5417_v63  }
 0x22d   : > { %v922_v46 = vpop.permute.xlu1 %921 }
 0x22e   : > { %4325 = vset.pattern.permute.xlu0 %v7475_v42  ;;  %2933 = vperm.xlu1 %4323, %v5452_v41  }
 0x22f   : > { %2766 = vperm.xlu0 %4325, %v2744_v20   ;;  %v2757_v20 = vsel %vm5755_vm2, %v2724_v58, -9e+15 }
 0x232   : > { %v5819_v45 = vpop.permute.xlu1 %2761  ;;  %4326 = vset.pattern.permute.xlu1 %v7475_v42 }
 0x233   : > { %2781 = vperm.xlu0 %4325, %v2747_v53   ;;  %2836 = vperm.xlu1 %4326, %v2758_v27   ;;  %v2756_v27 = vsel %vm5676_vm14, %v2722_v6, -9e+15  ;;  %v902_v53 = vpop.permute.xlu0 %901 }
 0x237   : > { %v5827_v44 = vpop.permute.xlu1 %1766  ;;  %2791 = vperm.xlu0 %4325, %v2749_v23   ;;  %2831 = vperm.xlu1 %4326, %v2757_v20   ;;  %v7519_v20 = vlaneseq  ;;  %v917_v26 = vpop.permute.xlu0 %916 }
 0x239   : > { %v5841_v42 = vand.u32 127, %v7519_v20 }
 0x23b   : > { %2806 = vperm.xlu0 %4325, %v2752_v30   ;;  %4327 = vset.pattern.permute.xlu1 %v7481_v31  ;;  %vm750_vm0 = vcmp.eq.s32.totalorder %v5455_v17, %v5841_v42  ;;  %vm749_vm14 = vcmp.eq.s32.totalorder %v4994_v1, %v5841_v42  ;;  %vm751_vm2 = vcmp.eq.s32.totalorder %v5484_v2, %v5841_v42  ;;  %v927_v20 = vpop.permute.xlu0 %926 }
 0x23c   : > { %v932_v50 = vpop.permute.xlu1 %931  ;;  %vm752_vm12 = vcmp.eq.s32.totalorder %v5447_v16, %v5841_v42 }
 0x23f   : > { %2826 = vperm.xlu0 %4325, %v2756_v27   ;;  %v937_v63 = vpop.permute.xlu0 %936 }
 0x241   : > { %v5835_v34 = vpop.permute.xlu1 %2771 }
 0x243   : > { %4328 = vset.pattern.permute.xlu0 %v7481_v31  ;;  %v7521_v31 = vmov 0.0   ;;  %v1762_v59 = vpop.permute.xlu0 %1761 }
 0x244   : > { %v5852_v6 = vsel %vm750_vm0, 1.0, %v7521_v31  ;;  %v5855_v27 = vsel %vm749_vm14, 1.0, %v7521_v31  ;;  %v5858_v15 = vsel %vm751_vm2, 1.0, %v7521_v31  ;;  %vm753_vm0 = vcmp.eq.s32.totalorder %v5541_v62, %v5841_v42 }
 0x245   : > { %7522 = vst [vmem:[#allocation97_spill] sm:$0xff] %v5852_v6  ;;  %v980_v4 = vmul.f32 %v5852_v6, %v907_v3  ;;  %v979_v37 = vmul.f32 %v5855_v27, %v902_v53  ;;  %v981_v38 = vmul.f32 %v5858_v15, %v912_v8  ;;  %v5870_v41 = vsel %vm752_vm12, 1.0, %v7521_v31 }
 0x246   : > { %v5838_v58 = vpop.permute.xlu1 %1776  ;;  %7523 = vst [vmem:[#allocation98_spill] sm:$0xff] %v5870_v41  ;;  %v5873_v32 = vsel %vm753_vm0, 1.0, %v7521_v31  ;;  %v982_v53 = vmul.f32 %v5870_v41, %v917_v26  ;;  %vm754_vm14 = vcmp.eq.s32.totalorder %v5473_v54, %v5841_v42  ;;  %vm755_vm2 = vcmp.eq.s32.totalorder %v5587_v0, %v5841_v42 }
 0x247   : > { %v995_v40 = vadd.f32 %v980_v4, %v979_v37  ;;  %7524 = vst [vmem:[#allocation99_spill] sm:$0xff] %v5873_v32  ;;  %v983_v8 = vmul.f32 %v5873_v32, %v922_v46  ;;  %v5884_v29 = vsel %vm754_vm14, 1.0, %v7521_v31  ;;  %v5887_v33 = vsel %vm755_vm2, 1.0, %v7521_v31 }
 0x248   : > { %7526 = vst [vmem:[#allocation101_spill] sm:$0xff] %v5884_v29  ;;  %vm756_vm12 = vcmp.eq.s32.totalorder %v5496_v61, %v5841_v42  ;;  %v985_v46 = vmul.f32 %v5887_v33, %v932_v50  ;;  %vm757_vm0 = vcmp.eq.s32.totalorder %v5626_v13, %v5841_v42  ;;  %vm758_vm14 = vcmp.eq.s32.totalorder %v5550_v21, %v5841_v42 }
 0x249   : > { %v996_v49 = vadd.f32 %v995_v40, %v981_v38  ;;  %v984_v38 = vmul.f32 %v5884_v29, %v927_v20  ;;  %v5898_v39 = vsel %vm756_vm12, 1.0, %v7521_v31  ;;  %v5901_v55 = vsel %vm757_vm0, 1.0, %v7521_v31 }
 0x24a   : > { %vm759_vm2 = vcmp.eq.s32.totalorder %v5667_v7, %v5841_v42  ;;  %vm760_vm12 = vcmp.eq.s32.totalorder %v5611_v9, %v5841_v42  ;;  %vm761_vm0 = vcmp.eq.s32.totalorder %v5699_v60, %v5841_v42  ;;  %v1834_v10 = vmul.f32 %v5855_v27, %v5803_v12 }
 0x24b   : > { %v942_v23 = vpop.permute.xlu1 %941  ;;  %v997_v4 = vadd.f32 %v996_v49, %v982_v53  ;;  %v947_v49 = vpop.permute.xlu0 %946  ;;  %v5913_v11 = vsel %vm759_vm2, 1.0, %v7521_v31  ;;  %v1835_v36 = vmul.f32 %v5852_v6, %v1762_v59  ;;  %vm763_vm2 = vcmp.eq.s32.totalorder %v5742_v28, %v5841_v42 }
 0x24c   : > { %v987_v50 = vmul.f32 %v5901_v55, %v942_v23 }
 0x24d   : > { %v998_v40 = vadd.f32 %v997_v4, %v983_v8  ;;  %v986_v4 = vmul.f32 %v5898_v39, %v937_v63  ;;  %v1850_v12 = vadd.f32 %v1835_v36, %v1834_v10 }
 0x24f   : > { %v999_v53 = vadd.f32 %v998_v40, %v984_v38  ;;  %v1772_v20 = vpop.permute.xlu0 %1771  ;;  %v5910_v38 = vsel %vm758_vm14, 1.0, %v7521_v31  ;;  %vm762_vm14 = vcmp.eq.s32.totalorder %v5659_v5, %v5841_v42 }
 0x250   : > { %v5845_v30 = vpop.permute.xlu1 %2776  ;;  %v988_v63 = vmul.f32 %v5910_v38, %v947_v49  ;;  %v5930_v49 = vsel %vm761_vm0, 1.0, %v7521_v31 }
 0x251   : > { %7520 = vst [vmem:[#allocation96_spill] sm:$0xff] %v5845_v30  ;;  %v1000_v8 = vadd.f32 %v999_v53, %v985_v46 }
 0x253   : > { %v1001_v40 = vadd.f32 %v1000_v8, %v986_v4  ;;  %v957_v22 = vpop.permute.xlu0 %956 }
 0x255   : > { %v5861_v19 = vpop.permute.xlu1 %1786  ;;  %v1002_v46 = vadd.f32 %v1001_v40, %v987_v50  ;;  %v5927_v50 = vsel %vm760_vm12, 1.0, %v7521_v31  ;;  %vm764_vm12 = vcmp.eq.s32.totalorder %v5708_v14, %v5841_v42 }
 0x257   : > { %v1782_v8 = vpop.permute.xlu0 %1781  ;;  %v1003_v4 = vadd.f32 %v1002_v46, %v988_v63  ;;  %v990_v46 = vmul.f32 %v5927_v50, %v957_v22 }
 0x258   : > { %v1839_v36 = vmul.f32 %v5884_v29, %v1782_v8 }
 0x25a   : > { %v952_v3 = vpop.permute.xlu1 %951 }
 0x25b   : > { %v989_v23 = vmul.f32 %v5913_v11, %v952_v3  ;;  %v1836_v3 = vmul.f32 %v5858_v15, %v5827_v44 }
 0x25d   : > { %v1004_v57 = vadd.f32 %v1003_v4, %v989_v23  ;;  %v1851_v30 = vadd.f32 %v1850_v12, %v1836_v3  ;;  %v1837_v23 = vmul.f32 %v5870_v41, %v1772_v20  ;;  %v5944_v4 = vsel %vm762_vm14, 1.0, %v7521_v31 }
 0x25e   : > { %v5956_v20 = vsel %vm764_vm12, 1.0, %v7521_v31 }
 0x25f   : > { %v5881_v37 = vpop.permute.xlu1 %2786  ;;  %v1005_v63 = vadd.f32 %v1004_v57, %v990_v46  ;;  %v5951_v57 = vsel %vm763_vm2, 1.0, %v7521_v31  ;;  %v1852_v22 = vadd.f32 %v1851_v30, %v1837_v23 }
 0x260   : > { %7525 = vst [vmem:[#allocation100_spill] sm:$0xff] %v5881_v37 }
 0x264   : > { %v5895_v26 = vpop.permute.xlu1 %1796 }
 0x265   : > { %v1842_v29 = vmul.f32 %v5901_v55, %v5895_v26  ;;  %v704_v26 = vshra.s32 %v5541_v62, 3  ;;  %v7353_v62 = vmov -9e+15  }
 0x269   : > { %v962_v18 = vpop.permute.xlu1 %961 }
 0x26a   : > { %v991_v59 = vmul.f32 %v5930_v49, %v962_v18  ;;  %v1838_v18 = vmul.f32 %v5873_v32, %v5838_v58  ;;  %v1840_v58 = vmul.f32 %v5887_v33, %v5861_v19 }
 0x26e   : > { %v5915_v53 = vpop.permute.xlu1 %2796 }
 0x26f   : > { %7527 = vst [vmem:[#allocation102_spill] sm:$0xff] %v5915_v53  ;;  %v967_v53 = vpop.permute.xlu0 %966 }
 0x270   : > { %v992_v10 = vmul.f32 %v5944_v4, %v967_v53 }
 0x272   : > { %v5932_v40 = vpop.permute.xlu1 %2801 }
 0x273   : > { %7528 = vst [vmem:[#allocation103_spill] sm:$0xff] %v5932_v40  ;;  %v1792_v44 = vpop.permute.xlu0 %1791  ;;  %v1006_v40 = vadd.f32 %v1005_v63, %v991_v59  ;;  %v1853_v63 = vadd.f32 %v1852_v22, %v1838_v18  ;;  %v5969_v18 = vshra.s32 %v5841_v42, 3  ;;  %v703_v22 = vshra.s32 %v5447_v16, 3 }
 0x274   : > { %v1841_v30 = vmul.f32 %v5898_v39, %v1792_v44 }
 0x275   : > { %v1007_v12 = vadd.f32 %v1006_v40, %v992_v10  ;;  %v1854_v6 = vadd.f32 %v1853_v63, %v1839_v36  ;;  %v701_v40 = vshra.s32 %v5455_v17, 3  ;;  %7529 = vst [vmem:[#allocation104_spill] sm:$0xff] %v5969_v18  ;;  %v700_v10 = vshra.s32 %v4994_v1, 3 }
 0x276   : > { %vm720_vm2 = vcmp.eq.s32.totalorder %v703_v22, %v5969_v18  ;;  %vm721_vm10 = vcmp.eq.s32.totalorder %v704_v26, %v5969_v18  ;;  %v706_v22 = vshra.s32 %v5587_v0, 3 }
 0x277   : > { %v1807_v37 = vpop.permute.xlu1 %1806  ;;  %v977_v3 = vpop.permute.xlu0 %976  ;;  %v1855_v31 = vadd.f32 %v1854_v6, %v1840_v58  ;;  %vm718_vm0 = vcmp.eq.s32.totalorder %v701_v40, %v5969_v18  ;;  %vm717_vm14 = vcmp.eq.s32.totalorder %v700_v10, %v5969_v18  ;;  %v6005_v10 = vsel %vm721_vm10, 0.0, %v7353_v62 }
 0x278   : > { %v994_v32 = vmul.f32 %v5956_v20, %v977_v3  ;;  %v5987_v63 = vsel %vm718_vm0, 0.0, %v7353_v62  ;;  %v5990_v58 = vsel %vm717_vm14, 0.0, %v7353_v62  ;;  %vm6035_vm10 = vcmp.eq.s32.totalorder %v706_v22, %v5969_v18 }
 0x279   : > { %v1856_v36 = vadd.f32 %v1855_v31, %v1841_v30 }
 0x27b   : > { %v1802_v53 = vpop.permute.xlu0 %1801  ;;  %v1857_v3 = vadd.f32 %v1856_v36, %v1842_v29  ;;  %v707_v29 = vshra.s32 %v5496_v61, 3 }
 0x27c   : > { %v972_v46 = vpop.permute.xlu1 %971  ;;  %v1843_v44 = vmul.f32 %v5910_v38, %v1802_v53  ;;  %v5995_v53 = vsel %vm720_vm2, 0.0, %v7353_v62 }
 0x27d   : > { %v993_v59 = vmul.f32 %v5951_v57, %v972_v46  ;;  %vm6011_vm0 = vcmp.eq.s32.totalorder %v707_v29, %v5969_v18 }
 0x27e   : > { %v1858_v16 = vadd.f32 %v1857_v3, %v1843_v44 }
 0x27f   : > { %v1008_v41 = vadd.f32 %v1007_v12, %v993_v59  ;;  %v1844_v12 = vmul.f32 %v5913_v11, %v1807_v37 }
 0x280   : > { %v1812_v59 = vpop.permute.xlu0 %1811 }
 0x281   : > { %v1009_v8 = vadd.f32 %v1008_v41, %v994_v32  ;;  %v5963_v23 = vpop.permute.xlu1 %2811  ;;  %v702_v32 = vshra.s32 %v5484_v2, 3  ;;  %v705_v41 = vshra.s32 %v5473_v54, 3  ;;  %v1845_v2 = vmul.f32 %v5927_v50, %v1812_v59 }
 0x282   : > { %v1859_v31 = vadd.f32 %v1858_v16, %v1844_v12 }
 0x283   : > { %v1010_v19 = vrot.slane %v1009_v8, 4  ;;  %vm719_vm12 = vcmp.eq.s32.totalorder %v702_v32, %v5969_v18  ;;  %vm722_vm1 = vcmp.eq.s32.totalorder %v705_v41, %v5969_v18  ;;  %v709_v32 = vshra.s32 %v5550_v21, 3 }
 0x284   : > { %v6001_v61 = vsel %vm722_vm1, 0.0, %v7353_v62  ;;  %v708_v41 = vshra.s32 %v5626_v13, 3 }
 0x285   : > { %v1011_v6 = vadd.f32 %v1010_v19, %v1009_v8  ;;  %v5998_v8 = vsel %vm719_vm12, 0.0, %v7353_v62  ;;  %vm6043_vm15 = vcmp.eq.s32.totalorder %v709_v32, %v5969_v18 }
 0x286   : > { %v1817_v46 = vpop.permute.xlu1 %1816 }
 0x287   : > { %v1012_v42 = vrot.slane %v1011_v6, 2  ;;  %v1846_v40 = vmul.f32 %v5930_v49, %v1817_v46 }
 0x289   : > { %v1013_v54 = vadd.f32 %v1012_v42, %v1011_v6  ;;  %v1860_v6 = vadd.f32 %v1859_v31, %v1845_v2 }
 0x28b   : > { %v1014_v30 = vrot.slane %v1013_v54, 1  ;;  %v5992_v37 = vpop.permute.xlu1 %2816  ;;  %v1861_v16 = vadd.f32 %v1860_v6, %v1846_v40 }
 0x28c   : > { %v1832_v19 = vpop.permute.xlu0 %1831 }
 0x28d   : > { %v6008_v36 = vadd.f32 %v1014_v30, %v1013_v54 }
 0x28f   : > { %v6020_v42 = vpop.permute.xlu1 %2821  ;;  %v1081_v0 = vadd.f32 %v5383_v56, %v6008_v36  ;;  %v1080_v59 = vadd.f32 %v5388_v52, %v6008_v36  ;;  %v1083_v21 = vadd.f32 %v5405_v43, %v6008_v36  ;;  %v1082_v13 = vadd.f32 %v5412_v25, %v6008_v36 }
 0x290   : > { %v1822_v12 = vpop.permute.xlu0 %1821  ;;  %v1085_v54 = vadd.f32 %v5430_v48, %v6008_v36  ;;  %v1084_v29 = vadd.f32 %v5425_v51, %v6008_v36  ;;  %v1087_v48 = vadd.f32 %v5498_v24, %v6008_v36 }
 0x291   : > { %v1847_v52 = vmul.f32 %v5944_v4, %v1822_v12  ;;  %vm1097_vm1 = vcmp.gt.f32.partialorder %v1081_v0, 0.0  ;;  %v1113_v43 = vmul.f32 0.2, %v1081_v0  ;;  %vm1096_vm14 = vcmp.gt.f32.partialorder %v1080_v59, 0.0 }
 0x292   : > { %v1112_v2 = vmul.f32 0.2, %v1080_v59  ;;  %vm1099_vm2 = vcmp.gt.f32.partialorder %v1083_v21, 0.0  ;;  %v1115_v25 = vmul.f32 0.2, %v1083_v21  ;;  %vm1098_vm12 = vcmp.gt.f32.partialorder %v1082_v13, 0.0 }
 0x293   : > { %v1129_v30 = vsel %vm1097_vm1, %v1081_v0, %v1113_v43  ;;  %v1114_v31 = vmul.f32 0.2, %v1082_v13  ;;  %v1862_v40 = vadd.f32 %v1861_v16, %v1847_v52  ;;  %v1117_v43 = vmul.f32 0.2, %v1085_v54 }
 0x294   : > { %v1827_v22 = vpop.permute.xlu1 %1826  ;;  %v6048_v6 = vadd.f32 %v1129_v30, %v5987_v63  ;;  %v1128_v12 = vsel %vm1096_vm14, %v1080_v59, %v1112_v2  ;;  %v1131_v46 = vsel %vm1099_vm2, %v1083_v21, %v1115_v25  ;;  %vm1101_vm1 = vcmp.gt.f32.partialorder %v1085_v54, 0.0 }
 0x295   : > { %v1848_v3 = vmul.f32 %v5951_v57, %v1827_v22  ;;  %v6051_v26 = vpop.permute.xlu0 %2897  ;;  %v6054_v0 = vadd.f32 %v1128_v12, %v5990_v58  ;;  %v1130_v24 = vsel %vm1098_vm12, %v1082_v13, %v1114_v31  ;;  %vm1100_vm8 = vcmp.gt.f32.partialorder %v1084_v29, 0.0 }
 0x296   : > { %7536 = vst [vmem:[#allocation105_spill] sm:$0xff] %v6048_v6  ;;  %1162 = vmax.xlane.f32.xlu1 %v6048_v6  ;;  %v1116_v32 = vmul.f32 0.2, %v1084_v29  ;;  %v6060_v16 = vsel %vm6011_vm0, 0.0, %v7353_v62  ;;  %v1849_v59 = vmul.f32 %v5956_v20, %v1832_v19  ;;  %v6067_v13 = vsel %vm6035_vm10, 0.0, %v7353_v62 }
 0x297   : > { %7537 = vst [vmem:[#allocation106_spill] sm:$0xff] %v6054_v0  ;;  %v1863_v21 = vadd.f32 %v1862_v40, %v1848_v3  ;;  %1160 = vmax.xlane.f32.xlu0 %v6054_v0  ;;  %v6072_v52 = vsel %vm6043_vm15, 0.0, %v7353_v62  ;;  %v6075_v2 = vadd.f32 %v1131_v46, %v5995_v53  ;;  %v6078_v44 = vadd.f32 %v1130_v24, %v5998_v8 }
 0x298   : > { %v1086_v19 = vadd.f32 %v5507_v47, %v6008_v36  ;;  %v1089_v3 = vadd.f32 %v5589_v35, %v6008_v36  ;;  %v1133_v30 = vsel %vm1101_vm1, %v1085_v54, %v1117_v43  ;;  %v1132_v31 = vsel %vm1100_vm8, %v1084_v29, %v1116_v32  ;;  %v7542_v47 = vld [vmem:[#allocation71_spill] sm:$0xff] }
 0x299   : > { %7538 = vst [vmem:[#allocation107_spill] sm:$0xff] %v6075_v2  ;;  %7539 = vst [vmem:[#allocation108_spill] sm:$0xff] %v6078_v44  ;;  %v1864_v56 = vadd.f32 %v1863_v21, %v1849_v59  ;;  %v6084_v25 = vpop.permute.xlu0 %2905  ;;  %v1119_v51 = vmul.f32 0.2, %v1087_v48  ;;  %vm1103_vm15 = vcmp.gt.f32.partialorder %v1087_v48, 0.0  ;;  %vm6088_vm0 = vcmp.eq.s32.totalorder %v708_v41, %v5969_v18  ;;  %v6094_v35 = vpop.permute.xlu1 %2893  ;;  %v7549_v59 = vld [vmem:[#allocation76_spill] sm:$0xff] }
 0x29a   : > { %1166 = vmax.xlane.f32.xlu1 %v6075_v2  ;;  %v1118_v46 = vmul.f32 0.2, %v1086_v19  ;;  %v1088_v22 = vadd.f32 %v7542_v47, %v6008_v36  ;;  %vm1102_vm10 = vcmp.gt.f32.partialorder %v1086_v19, 0.0  ;;  %v7543_v54 = vshra.s32 %v5611_v9, 3 }
 0x29b   : > { %v1865_v12 = vrot.slane %v1864_v56, 4  ;;  %1164 = vmax.xlane.f32.xlu0 %v6078_v44  ;;  %v7544_v29 = vshra.s32 %v5667_v7, 3  ;;  %v6108_v24 = vadd.f32 %v1133_v30, %v6001_v61  ;;  %v6111_v43 = vadd.f32 %v1132_v31, %v6005_v10  ;;  %v7550_v7 = vld [vmem:[#allocation77_spill] sm:$0xff] }
 0x29c   : > { %vm728_vm8 = vcmp.eq.s32.totalorder %v7543_v54, %v5969_v18  ;;  %v1121_v32 = vmul.f32 0.2, %v1089_v3  ;;  %v1091_v21 = vadd.f32 %v7549_v59, %v6008_v36  ;;  %v1135_v54 = vsel %vm1103_vm15, %v1087_v48, %v1119_v51 }
 0x29d   : > { %vm6103_vm14 = vcmp.eq.s32.totalorder %v7544_v29, %v5969_v18  ;;  %7547 = vst [vmem:[#allocation71_spill] sm:$0xff] %v6108_v24  ;;  %7548 = vst [vmem:[#allocation109_spill] sm:$0xff] %v6111_v43  ;;  %v1866_v47 = vadd.f32 %v1865_v12, %v1864_v56  ;;  %v6115_v9 = vpop.permute.xlu0 %2913  ;;  %vm1105_vm2 = vcmp.gt.f32.partialorder %v1089_v3, 0.0  ;;  %v1090_v29 = vadd.f32 %v7550_v7, %v6008_v36  ;;  %v7555_v7 = vld [vmem:[#allocation81_spill] sm:$0xff] }
 0x29e   : > { %1170 = vmax.xlane.f32.xlu1 %v6108_v24  ;;  %v1134_v30 = vsel %vm1102_vm10, %v1086_v19, %v1118_v46  ;;  %v6124_v31 = vsel %vm6088_vm0, 0.0, %v7353_v62  ;;  %v1120_v17 = vmul.f32 0.2, %v1088_v22  ;;  %v6127_v59 = vsel %vm728_vm8, 0.0, %v7353_v62  ;;  %v6147_v24 = vpop.permute.xlu1 %2901 }
 0x29f   : > { %v1867_v56 = vrot.slane %v1866_v47, 2  ;;  %1168 = vmax.xlane.f32.xlu0 %v6111_v43  ;;  %vm1104_vm12 = vcmp.gt.f32.partialorder %v1088_v22, 0.0  ;;  %v6133_v48 = vsel %vm6103_vm14, 0.0, %v7353_v62  ;;  %v7551_v19 = vshra.s32 %v5659_v5, 3 }
 0x2a0   : > { %v6143_v46 = vadd.f32 %v1135_v54, %v6060_v16  ;;  %v1137_v40 = vsel %vm1105_vm2, %v1089_v3, %v1121_v32  ;;  %v1123_v12 = vmul.f32 0.2, %v1091_v21  ;;  %v1093_v1 = vadd.f32 %v7555_v7, %v6008_v36  ;;  %v7557_v32 = vld [vmem:[#allocation82_spill] sm:$0xff] }
 0x2a1   : > { %vm6138_vm1 = vcmp.eq.s32.totalorder %v7551_v19, %v5969_v18  ;;  %v1868_v43 = vadd.f32 %v1867_v56, %v1866_v47  ;;  %v6149_v41 = vpop.permute.xlu0 %2921  ;;  %v6152_v62 = vadd.f32 %v1134_v30, %v6067_v13  ;;  %vm1107_vm15 = vcmp.gt.f32.partialorder %v1091_v21, 0.0 }
 0x2a2   : > { %7554 = vst [vmem:[#allocation76_spill] sm:$0xff] %v6143_v46  ;;  %v1122_v5 = vmul.f32 0.2, %v1090_v29  ;;  %1174 = vmax.xlane.f32.xlu1 %v6143_v46  ;;  %v1136_v19 = vsel %vm1104_vm12, %v1088_v22, %v1120_v17  ;;  %vm1106_vm0 = vcmp.gt.f32.partialorder %v1090_v29, 0.0  ;;  %v712_v3 = vshra.s32 %v5699_v60, 3  ;;  %v7559_v17 = vld [vmem:[#allocation87_spill] sm:$0xff] }
 0x2a3   : > { %7556 = vst [vmem:[#allocation77_spill] sm:$0xff] %v6152_v62  ;;  %v1092_v54 = vadd.f32 %v7557_v32, %v6008_v36  ;;  %v1869_v7 = vrot.slane %v1868_v43, 1  ;;  %1172 = vmax.xlane.f32.xlu0 %v6152_v62  ;;  %v6160_v47 = vadd.f32 %v1137_v40, %v6072_v52  ;;  %v715_v30 = vshra.s32 %v5708_v14, 3  ;;  %v7560_v60 = vld [vmem:[#allocation88_spill] sm:$0xff] }
 0x2a4   : > { %v714_v56 = vshra.s32 %v5742_v28, 3  ;;  %v1139_v44 = vsel %vm1107_vm15, %v1091_v21, %v1123_v12  ;;  %v1125_v2 = vmul.f32 0.2, %v1093_v1  ;;  %v1095_v22 = vadd.f32 %v7559_v17, %v6008_v36 }
 0x2a5   : > { %7558 = vst [vmem:[#allocation81_spill] sm:$0xff] %v6160_v47  ;;  %v1094_v46 = vadd.f32 %v7560_v60, %v6008_v36  ;;  %v6168_v0 = vadd.f32 %v1869_v7, %v1868_v43  ;;  %v6170_v32 = vpop.permute.xlu0 %2929  ;;  %v6173_v62 = vadd.f32 %v1136_v19, %v6124_v31  ;;  %v1138_v40 = vsel %vm1106_vm0, %v1090_v29, %v1122_v5  ;;  %v6186_v43 = vpop.permute.xlu1 %2909  ;;  %v7574_v60 = vld [vmem:[#allocation52_spill] sm:$0xff] }
 0x2a6   : > { %7561 = vst [vmem:[#allocation82_spill] sm:$0xff] %v6170_v32  ;;  %vm1109_vm10 = vcmp.gt.f32.partialorder %v1093_v1, 0.0  ;;  %1178 = vmax.xlane.f32.xlu1 %v6160_v47  ;;  %v7563_v14 = vmov -9e+15   ;;  %vm6182_vm8 = vcmp.eq.s32.totalorder %v712_v3, %v5969_v18  ;;  %v1124_v36 = vmul.f32 0.2, %v1092_v54 }
 0x2a7   : > { %7562 = vst [vmem:[#allocation87_spill] sm:$0xff] %v6173_v62  ;;  %v6179_v28 = vsel %vm6138_vm1, 0.0, %v7563_v14  ;;  %1176 = vmax.xlane.f32.xlu0 %v6173_v62  ;;  %v6190_v29 = vadd.f32 %v1139_v44, %v6127_v59  ;;  %vm1108_vm14 = vcmp.gt.f32.partialorder %v1092_v54, 0.0  ;;  %vm6193_vm2 = vcmp.eq.s32.totalorder %v715_v30, %v5969_v18  ;;  %v7573_v44 = vld [vmem:[#allocation56_spill] sm:$0xff] }
 0x2a8   : > { %vm6198_vm12 = vcmp.eq.s32.totalorder %v714_v56, %v5969_v18  ;;  %v6203_v5 = vadd.f32 %v1138_v40, %v6133_v48  ;;  %v1141_v19 = vsel %vm1109_vm10, %v1093_v1, %v1125_v2  ;;  %v1127_v3 = vmul.f32 0.2, %v1095_v22  ;;  %v7576_v18 = vld [vmem:[#allocation65_spill] sm:$0xff] }
 0x2a9   : > { %7566 = vst [vmem:[#allocation88_spill] sm:$0xff] %v6190_v29  ;;  %v1126_v7 = vmul.f32 0.2, %v1094_v46  ;;  %v6205_v17 = vpop.permute.xlu0 %2937  ;;  %vm1111_vm1 = vcmp.gt.f32.partialorder %v1095_v22, 0.0  ;;  %vm1110_vm15 = vcmp.gt.f32.partialorder %v1094_v46, 0.0  ;;  %v1936_v30 = vadd.f32 %v7573_v44, %v6168_v0 }
 0x2aa   : > { %7571 = vst [vmem:[#allocation110_spill] sm:$0xff] %v6203_v5  ;;  %7572 = vst [vmem:[#allocation111_spill] sm:$0xff] %v6205_v17  ;;  %v1935_v62 = vadd.f32 %v7574_v60, %v6168_v0  ;;  %1182 = vmax.xlane.f32.xlu1 %v6190_v29  ;;  %v6215_v56 = vsel %vm6182_vm8, 0.0, %v7563_v14  ;;  %v1140_v1 = vsel %vm1108_vm14, %v1092_v54, %v1124_v36  ;;  %v6224_v40 = vsel %vm6193_vm2, 0.0, %v7563_v14  ;;  %v7577_v36 = vld [vmem:[#allocation69_spill] sm:$0xff] }
 0x2ab   : > { %1180 = vmax.xlane.f32.xlu0 %v6203_v5  ;;  %v6219_v2 = vadd.f32 %v1141_v19, %v6179_v28  ;;  %v6229_v44 = vsel %vm6198_vm12, 0.0, %v7563_v14  ;;  %v1143_v60 = vsel %vm1111_vm1, %v1095_v22, %v1127_v3  ;;  %v1142_v21 = vsel %vm1110_vm15, %v1094_v46, %v1126_v7  ;;  %v6235_v19 = vpop.permute.xlu1 %2917 }
 0x2ac   : > { %v1937_v54 = vadd.f32 %v7576_v18, %v6168_v0  ;;  %v1938_v5 = vadd.f32 %v7577_v36, %v6168_v0  ;;  %7578 = vst [vmem:[#allocation52_spill] sm:$0xff] %v6235_v19  ;;  %v6238_v29 = vadd.f32 %v1140_v1, %v6215_v56  ;;  %v1968_v12 = vmul.f32 0.2, %v1936_v30  ;;  %v7580_v18 = vld [vmem:[#allocation97_spill] sm:$0xff]  ;;  %v7584_v1 = vld [vmem:[#allocation75_spill] sm:$0xff]  ;;  %v7588_v19 = vld [vmem:[#allocation78_spill] sm:$0xff] }
 0x2ad   : > { %7575 = vst [vmem:[#allocation56_spill] sm:$0xff] %v6219_v2  ;;  %v1967_v47 = vmul.f32 0.2, %v1935_v62  ;;  %v2839_v51 = vmul.f32 %v5855_v27, %v5819_v45  ;;  %v2841_v22 = vmul.f32 %v5858_v15, %v5835_v34  ;;  %vm1952_vm0 = vcmp.gt.f32.partialorder %v1936_v30, 0.0  ;;  %v7583_v45 = vld [vmem:[#allocation73_spill] sm:$0xff] }
 0x2ae   : > { %7579 = vst [vmem:[#allocation65_spill] sm:$0xff] %v6238_v29  ;;  %1186 = vmax.xlane.f32.xlu1 %v6219_v2  ;;  %v2767_v46 = vpop.permute.xlu0 %2766  ;;  %vm1951_vm10 = vcmp.gt.f32.partialorder %v1935_v62, 0.0  ;;  %v6248_v3 = vadd.f32 %v1143_v60, %v6224_v40  ;;  %v6251_v7 = vadd.f32 %v1142_v21, %v6229_v44  ;;  %v1939_v27 = vadd.f32 %v7583_v45, %v6168_v0 }
 0x2af   : > { %1184 = vmax.xlane.f32.xlu0 %v6238_v29  ;;  %v2840_v14 = vmul.f32 %v7580_v18, %v2767_v46  ;;  %vm1953_vm8 = vcmp.gt.f32.partialorder %v1937_v54, 0.0  ;;  %v1969_v15 = vmul.f32 0.2, %v1937_v54  ;;  %v1970_v34 = vmul.f32 0.2, %v1938_v5  ;;  %v7585_v46 = vld [vmem:[#allocation96_spill] sm:$0xff]  ;;  %v6260_v17 = vpop.permute.xlu1 %2925 }
 0x2b0   : > { %7581 = vst [vmem:[#allocation69_spill] sm:$0xff] %v6248_v3  ;;  %7582 = vst [vmem:[#allocation97_spill] sm:$0xff] %v6251_v7  ;;  %v1940_v36 = vadd.f32 %v7584_v1, %v6168_v0  ;;  %v1984_v6 = vsel %vm1952_vm0, %v1936_v30, %v1968_v12  ;;  %v1983_v29 = vsel %vm1951_vm10, %v1935_v62, %v1967_v47  ;;  %vm1954_vm14 = vcmp.gt.f32.partialorder %v1938_v5, 0.0  ;;  %v7586_v18 = vld [vmem:[#allocation98_spill] sm:$0xff] }
 0x2b1   : > { %v2855_v2 = vadd.f32 %v2840_v14, %v2839_v51  ;;  %v2842_v60 = vmul.f32 %v7586_v18, %v7585_v46  ;;  %7587 = vst [vmem:[#allocation73_spill] sm:$0xff] %v6260_v17  ;;  %vm1955_vm2 = vcmp.gt.f32.partialorder %v1939_v27, 0.0  ;;  %v1971_v45 = vmul.f32 0.2, %v1939_v27  ;;  %v7589_v14 = vld [vmem:[#allocation99_spill] sm:$0xff] }
 0x2b2   : > { %1190 = vmax.xlane.f32.xlu1 %v6248_v3  ;;  %v2782_v21 = vpop.permute.xlu0 %2781  ;;  %v1941_v1 = vadd.f32 %v7588_v19, %v6168_v0  ;;  %v6266_v30 = vadd.f32 %v1984_v6, %v5987_v63  ;;  %v6269_v62 = vadd.f32 %v1983_v29, %v5990_v58  ;;  %v1985_v47 = vsel %vm1953_vm8, %v1937_v54, %v1969_v15  ;;  %v7592_v3 = vld [vmem:[#allocation101_spill] sm:$0xff]  ;;  %v7593_v15 = vld [vmem:[#allocation83_spill] sm:$0xff] }
 0x2b3   : > { %v2856_v32 = vadd.f32 %v2855_v2, %v2841_v22  ;;  %1188 = vmax.xlane.f32.xlu0 %v6251_v7  ;;  %v1986_v12 = vsel %vm1954_vm14, %v1938_v5, %v1970_v34  ;;  %v2843_v46 = vmul.f32 %v7589_v14, %v2782_v21  ;;  %v1972_v2 = vmul.f32 0.2, %v1940_v36  ;;  %v7590_v22 = vld [vmem:[#allocation79_spill] sm:$0xff]  ;;  %v7591_v7 = vld [vmem:[#allocation100_spill] sm:$0xff] }
 0x2b4   : > { %v1942_v18 = vadd.f32 %v7590_v22, %v6168_v0  ;;  %v2844_v17 = vmul.f32 %v7592_v3, %v7591_v7  ;;  %vm1956_vm12 = vcmp.gt.f32.partialorder %v1940_v36, 0.0  ;;  %v6280_v29 = vadd.f32 %v1985_v47, %v5998_v8  ;;  %v7594_v7 = vld [vmem:[#allocation86_spill] sm:$0xff] }
 0x2b5   : > { %v2857_v51 = vadd.f32 %v2856_v32, %v2842_v60  ;;  %v6283_v32 = vadd.f32 %v1986_v12, %v5995_v53  ;;  %v1987_v5 = vsel %vm1955_vm2, %v1939_v27, %v1971_v45  ;;  %vm1957_vm1 = vcmp.gt.f32.partialorder %v1941_v1, 0.0  ;;  %v6290_v60 = vpop.permute.xlu1 %2933  ;;  %v7595_v12 = vld [vmem:[#allocation102_spill] sm:$0xff]  ;;  %v7596_v45 = vld [vmem:[#allocation103_spill] sm:$0xff] }
 0x2b6   : > { %2015 = vmax.xlane.f32.xlu1 %v6269_v62  ;;  %v2792_v6 = vpop.permute.xlu0 %2791  ;;  %v1973_v54 = vmul.f32 0.2, %v1941_v1  ;;  %v1943_v3 = vadd.f32 %v7593_v15, %v6168_v0  ;;  %v1944_v34 = vadd.f32 %v7594_v7, %v6168_v0  ;;  %v1988_v47 = vsel %vm1956_vm12, %v1940_v36, %v1972_v2 }
 0x2b7   : > { %v2858_v19 = vadd.f32 %v2857_v51, %v2843_v46  ;;  %2017 = vmax.xlane.f32.xlu0 %v6266_v30  ;;  %v2845_v51 = vmul.f32 %v5887_v33, %v2792_v6  ;;  %v1974_v14 = vmul.f32 0.2, %v1942_v18  ;;  %vm1958_vm15 = vcmp.gt.f32.partialorder %v1942_v18, 0.0  ;;  %v7597_v6 = vld [vmem:[#allocation91_spill] sm:$0xff] }
 0x2b8   : > { %v2846_v27 = vmul.f32 %v5898_v39, %v7595_v12  ;;  %v2847_v46 = vmul.f32 %v5901_v55, %v7596_v45  ;;  %v6300_v15 = vadd.f32 %v1987_v5, %v6005_v10  ;;  %v6303_v33 = vadd.f32 %v1988_v47, %v6001_v61  ;;  %v7598_v5 = vld [vmem:[#allocation89_spill] sm:$0xff] }
 0x2b9   : > { %v2859_v21 = vadd.f32 %v2858_v19, %v2844_v17  ;;  %v1989_v36 = vsel %vm1957_vm1, %v1941_v1, %v1973_v54  ;;  %v1975_v2 = vmul.f32 0.2, %v1943_v3  ;;  %v1946_v19 = vadd.f32 %v7597_v6, %v6168_v0  ;;  %v7599_v6 = vld [vmem:[#allocation95_spill] sm:$0xff] }
 0x2ba   : > { %2021 = vmax.xlane.f32.xlu1 %v6283_v32  ;;  %v2807_v17 = vpop.permute.xlu0 %2806  ;;  %v1990_v7 = vsel %vm1958_vm15, %v1942_v18, %v1974_v14  ;;  %vm1959_vm0 = vcmp.gt.f32.partialorder %v1943_v3, 0.0  ;;  %v1976_v55 = vmul.f32 0.2, %v1944_v34  ;;  %vm1960_vm10 = vcmp.gt.f32.partialorder %v1944_v34, 0.0 }
 0x2bb   : > { %v2860_v22 = vadd.f32 %v2859_v21, %v2845_v51  ;;  %2019 = vmax.xlane.f32.xlu0 %v6280_v29  ;;  %v1945_v21 = vadd.f32 %v7598_v5, %v6168_v0  ;;  %v2837_v51 = vpop.permute.xlu1 %2836  ;;  %v2848_v47 = vmul.f32 %v5910_v38, %v2807_v17  ;;  %v2849_v1 = vmul.f32 %v5913_v11, %v5963_v23  ;;  %v7600_v17 = vld [vmem:[#allocation92_spill] sm:$0xff] }
 0x2bc   : > { %v6316_v54 = vadd.f32 %v1989_v36, %v6067_v13  ;;  %v6319_v18 = vadd.f32 %v1990_v7, %v6060_v16  ;;  %v1991_v14 = vsel %vm1959_vm0, %v1943_v3, %v1975_v2  ;;  %v1992_v45 = vsel %vm1960_vm10, %v1944_v34, %v1976_v55 }
 0x2bd   : > { %v2861_v39 = vadd.f32 %v2860_v22, %v2846_v27  ;;  %v1978_v22 = vmul.f32 0.2, %v1946_v19  ;;  %v1977_v38 = vmul.f32 0.2, %v1945_v21  ;;  %vm1962_vm8 = vcmp.gt.f32.partialorder %v1946_v19, 0.0 }
 0x2be   : > { %2025 = vmax.xlane.f32.xlu1 %v6303_v33  ;;  %v1947_v11 = vadd.f32 %v7600_v17, %v6168_v0  ;;  %v2850_v23 = vmul.f32 %v5927_v50, %v5992_v37  ;;  %vm1961_vm14 = vcmp.gt.f32.partialorder %v1945_v21, 0.0  ;;  %v2851_v3 = vmul.f32 %v5930_v49, %v6020_v42  ;;  %v2827_v34 = vpop.permute.xlu0 %2826  ;;  %v7601_v50 = vld [vmem:[#allocation93_spill] sm:$0xff]  ;;  %v7602_v49 = vld [vmem:[#allocation94_spill] sm:$0xff] }
 0x2bf   : > { %v2862_v12 = vadd.f32 %v2861_v39, %v2847_v46  ;;  %2023 = vmax.xlane.f32.xlu0 %v6300_v15  ;;  %v1948_v46 = vadd.f32 %v7599_v6, %v6168_v0  ;;  %v6332_v2 = vadd.f32 %v1991_v14, %v6124_v31  ;;  %v6335_v39 = vadd.f32 %v1992_v45, %v6072_v52  ;;  %v2832_v7 = vpop.permute.xlu1 %2831 }
 0x2c0   : > { %v1994_v5 = vsel %vm1962_vm8, %v1946_v19, %v1978_v22  ;;  %v1950_v37 = vadd.f32 %v7601_v50, %v6168_v0  ;;  %v1949_v42 = vadd.f32 %v7602_v49, %v6168_v0  ;;  %vm1963_vm12 = vcmp.gt.f32.partialorder %v1947_v11, 0.0 }
 0x2c1   : > { %v2863_v27 = vadd.f32 %v2862_v12, %v2848_v47  ;;  %v1980_v12 = vmul.f32 0.2, %v1948_v46  ;;  %v1993_v47 = vsel %vm1961_vm14, %v1945_v21, %v1977_v38  ;;  %vm1964_vm2 = vcmp.gt.f32.partialorder %v1948_v46, 0.0 }
 0x2c2   : > { %2029 = vmax.xlane.f32.xlu1 %v6319_v18  ;;  %v2853_v19 = vmul.f32 %v5951_v57, %v2832_v7  ;;  %v6346_v45 = vadd.f32 %v1994_v5, %v6127_v59  ;;  %v6349_v6 = vadd.f32 %v1993_v47, %v6133_v48  ;;  %v1982_v38 = vmul.f32 0.2, %v1950_v37 }
 0x2c3   : > { %v2864_v36 = vadd.f32 %v2863_v27, %v2849_v1  ;;  %2027 = vmax.xlane.f32.xlu0 %v6316_v54  ;;  %v1979_v1 = vmul.f32 0.2, %v1947_v11  ;;  %v2852_v27 = vmul.f32 %v5944_v4, %v2827_v34  ;;  %v1996_v21 = vsel %vm1964_vm2, %v1948_v46, %v1980_v12 }
 0x2c4   : > { %v1981_v17 = vmul.f32 0.2, %v1949_v42  ;;  %vm1966_vm1 = vcmp.gt.f32.partialorder %v1950_v37, 0.0  ;;  %v2854_v4 = vmul.f32 %v5956_v20, %v2837_v51  ;;  %vm1965_vm15 = vcmp.gt.f32.partialorder %v1949_v42, 0.0 }
 0x2c5   : > { %v2865_v55 = vadd.f32 %v2864_v36, %v2850_v23  ;;  %v1995_v0 = vsel %vm1963_vm12, %v1947_v11, %v1979_v1  ;;  %v6355_v57 = vadd.f32 %v1996_v21, %v6179_v28  ;;  %v1998_v46 = vsel %vm1966_vm1, %v1950_v37, %v1982_v38  ;;  %v7603_v37 = vld [vmem:[#allocation66_spill] sm:$0xff]  ;;  %v7604_v1 = vld [vmem:[#allocation53_spill] sm:$0xff] }
 0x2c6   : > { %2033 = vmax.xlane.f32.xlu1 %v6335_v39  ;;  %v1997_v34 = vsel %vm1965_vm15, %v1949_v42, %v1981_v17  ;;  %v6363_v20 = vadd.f32 %v1998_v46, %v6224_v40  ;;  %v7605_v42 = vld [vmem:[#allocation74_spill] sm:$0xff] }
 0x2c7   : > { %v2866_v14 = vadd.f32 %v2865_v55, %v2851_v3  ;;  %2031 = vmax.xlane.f32.xlu0 %v6332_v2  ;;  %v6358_v3 = vadd.f32 %v1995_v0, %v6215_v56  ;;  %v6366_v7 = vadd.f32 %v1997_v34, %v6229_v44 }
 0x2c9   : > { %v2867_v22 = vadd.f32 %v2866_v14, %v2852_v27  ;;  %v7606_v27 = vld [vmem:[#allocation67_spill] sm:$0xff] }
 0x2ca   : > { %2037 = vmax.xlane.f32.xlu1 %v6346_v45 }
 0x2cb   : > { %v2868_v23 = vadd.f32 %v2867_v22, %v2853_v19  ;;  %2035 = vmax.xlane.f32.xlu0 %v6349_v6 }
 0x2cd   : > { %v2869_v36 = vadd.f32 %v2868_v23, %v2854_v4 }
 0x2ce   : > { %2041 = vmax.xlane.f32.xlu1 %v6355_v57 }
 0x2cf   : > { %v2870_v11 = vrot.slane %v2869_v36, 4  ;;  %2039 = vmax.xlane.f32.xlu0 %v6358_v3 }
 0x2d1   : > { %v2871_v51 = vadd.f32 %v2870_v11, %v2869_v36 }
 0x2d2   : > { %2045 = vmax.xlane.f32.xlu1 %v6363_v20 }
 0x2d3   : > { %v2872_v55 = vrot.slane %v2871_v51, 2  ;;  %2043 = vmax.xlane.f32.xlu0 %v6366_v7 }
 0x2d5   : > { %v2873_v5 = vadd.f32 %v2872_v55, %v2871_v51 }
 0x2d7   : > { %v2874_v12 = vrot.slane %v2873_v5, 1 }
 0x2d9   : > { %v6370_v50 = vadd.f32 %v2874_v12, %v2873_v5 }
 0x2db   : > { %v2941_v47 = vadd.f32 %v7603_v37, %v6370_v50  ;;  %v2940_v49 = vadd.f32 %v7604_v1, %v6370_v50  ;;  %v2943_v14 = vadd.f32 %v7605_v42, %v6370_v50  ;;  %v2942_v19 = vadd.f32 %v7606_v27, %v6370_v50 }
 0x2dc   : > { %v2945_v22 = vadd.f32 %v6051_v26, %v6370_v50  ;;  %v2944_v21 = vadd.f32 %v6094_v35, %v6370_v50  ;;  %v2947_v46 = vadd.f32 %v6084_v25, %v6370_v50  ;;  %v2946_v34 = vadd.f32 %v6147_v24, %v6370_v50 }
 0x2dd   : > { %vm2957_vm0 = vcmp.gt.f32.partialorder %v2941_v47, 0.0  ;;  %v2973_v38 = vmul.f32 0.2, %v2941_v47  ;;  %vm2956_vm10 = vcmp.gt.f32.partialorder %v2940_v49, 0.0  ;;  %v2972_v0 = vmul.f32 0.2, %v2940_v49 }
 0x2de   : > { %vm2959_vm8 = vcmp.gt.f32.partialorder %v2943_v14, 0.0  ;;  %v2975_v17 = vmul.f32 0.2, %v2943_v14  ;;  %vm2958_vm14 = vcmp.gt.f32.partialorder %v2942_v19, 0.0  ;;  %v2974_v4 = vmul.f32 0.2, %v2942_v19 }
 0x2df   : > { %v2989_v23 = vsel %vm2957_vm0, %v2941_v47, %v2973_v38  ;;  %v2988_v36 = vsel %vm2956_vm10, %v2940_v49, %v2972_v0  ;;  %v2977_v51 = vmul.f32 0.2, %v2945_v22  ;;  %vm2961_vm2 = vcmp.gt.f32.partialorder %v2945_v22, 0.0  ;;  %v7608_v0 = vld [vmem:[#allocation82_spill] sm:$0xff] }
 0x2e0   : > { %v6389_v26 = vadd.f32 %v2989_v23, %v5987_v63  ;;  %v6392_v35 = vadd.f32 %v2988_v36, %v5990_v58  ;;  %v2991_v11 = vsel %vm2959_vm8, %v2943_v14, %v2975_v17  ;;  %v2990_v55 = vsel %vm2958_vm14, %v2942_v19, %v2974_v4  ;;  %v7609_v4 = vld [vmem:[#allocation73_spill] sm:$0xff] }
 0x2e1   : > { %vm2960_vm12 = vcmp.gt.f32.partialorder %v2944_v21, 0.0  ;;  %v2976_v5 = vmul.f32 0.2, %v2944_v21  ;;  %v6397_v25 = vadd.f32 %v2991_v11, %v5995_v53  ;;  %v2979_v24 = vmul.f32 0.2, %v2947_v46 }
 0x2e2   : > { %3022 = vmax.xlane.f32.xlu1 %v6389_v26  ;;  %3020 = vmax.xlane.f32.xlu0 %v6392_v35  ;;  %v6400_v63 = vadd.f32 %v2990_v55, %v5998_v8  ;;  %v2993_v12 = vsel %vm2961_vm2, %v2945_v22, %v2977_v51  ;;  %vm2963_vm1 = vcmp.gt.f32.partialorder %v2947_v46, 0.0  ;;  %v2978_v58 = vmul.f32 0.2, %v2946_v34  ;;  %v7610_v51 = vld [vmem:[#allocation111_spill] sm:$0xff] }
 0x2e3   : > { %v2992_v37 = vsel %vm2960_vm12, %v2944_v21, %v2976_v5  ;;  %vm2962_vm15 = vcmp.gt.f32.partialorder %v2946_v34, 0.0  ;;  %v2949_v47 = vadd.f32 %v6115_v9, %v6370_v50  ;;  %v2948_v1 = vadd.f32 %v6186_v43, %v6370_v50  ;;  %v7607_v9 = vld [vmem:[#allocation52_spill] sm:$0xff] }
 0x2e4   : > { %v6409_v53 = vadd.f32 %v2993_v12, %v6001_v61  ;;  %v2995_v8 = vsel %vm2963_vm1, %v2947_v46, %v2979_v24  ;;  %v6412_v49 = vadd.f32 %v2992_v37, %v6005_v10  ;;  %v2994_v42 = vsel %vm2962_vm15, %v2946_v34, %v2978_v58 }
 0x2e5   : > { %v2951_v14 = vadd.f32 %v6149_v41, %v6370_v50  ;;  %v2950_v27 = vadd.f32 %v7607_v9, %v6370_v50  ;;  %v2981_v19 = vmul.f32 0.2, %v2949_v47  ;;  %v2980_v43 = vmul.f32 0.2, %v2948_v1 }
 0x2e6   : > { %3026 = vmax.xlane.f32.xlu1 %v6397_v25  ;;  %3024 = vmax.xlane.f32.xlu0 %v6400_v63  ;;  %vm2965_vm0 = vcmp.gt.f32.partialorder %v2949_v47, 0.0  ;;  %vm2964_vm10 = vcmp.gt.f32.partialorder %v2948_v1, 0.0  ;;  %v6421_v61 = vadd.f32 %v2995_v8, %v6060_v16  ;;  %v6424_v10 = vadd.f32 %v2994_v42, %v6067_v13  ;;  %v7611_v8 = vld [vmem:[#allocation105_spill] sm:$0xff] }
 0x2e7   : > { %vm2967_vm8 = vcmp.gt.f32.partialorder %v2951_v14, 0.0  ;;  %v2983_v22 = vmul.f32 0.2, %v2951_v14  ;;  %vm2966_vm14 = vcmp.gt.f32.partialorder %v2950_v27, 0.0  ;;  %v2982_v41 = vmul.f32 0.2, %v2950_v27 }
 0x2e8   : > { %v2997_v21 = vsel %vm2965_vm0, %v2949_v47, %v2981_v19  ;;  %v2996_v38 = vsel %vm2964_vm10, %v2948_v1, %v2980_v43  ;;  %v2953_v17 = vadd.f32 %v7608_v0, %v6370_v50  ;;  %v2952_v23 = vadd.f32 %v7609_v4, %v6370_v50  ;;  %v7615_v4 = vld [vmem:[#allocation71_spill] sm:$0xff] }
 0x2e9   : > { %v6433_v16 = vadd.f32 %v2997_v21, %v6072_v52  ;;  %v6436_v13 = vadd.f32 %v2996_v38, %v6124_v31  ;;  %v2999_v36 = vsel %vm2967_vm8, %v2951_v14, %v2983_v22  ;;  %v2998_v46 = vsel %vm2966_vm14, %v2950_v27, %v2982_v41  ;;  %v7612_v14 = vld [vmem:[#allocation106_spill] sm:$0xff]  ;;  %v7613_v22 = vld [vmem:[#allocation107_spill] sm:$0xff] }
 0x2ea   : > { %3030 = vmax.xlane.f32.xlu1 %v6409_v53  ;;  %3028 = vmax.xlane.f32.xlu0 %v6412_v49  ;;  %v2985_v34 = vmul.f32 0.2, %v2953_v17  ;;  %v2984_v11 = vmul.f32 0.2, %v2952_v23  ;;  %v2955_v55 = vadd.f32 %v7610_v51, %v6370_v50  ;;  %v2954_v5 = vadd.f32 %v6290_v60, %v6370_v50 }
 0x2eb   : > { %vm2969_vm2 = vcmp.gt.f32.partialorder %v2953_v17, 0.0  ;;  %vm2968_vm12 = vcmp.gt.f32.partialorder %v2952_v23, 0.0  ;;  %v6445_v52 = vadd.f32 %v2999_v36, %v6127_v59  ;;  %v6448_v31 = vadd.f32 %v2998_v46, %v6133_v48  ;;  %v7616_v46 = vld [vmem:[#allocation109_spill] sm:$0xff] }
 0x2ec   : > { %v3001_v24 = vsel %vm2969_vm2, %v2953_v17, %v2985_v34  ;;  %v3000_v12 = vsel %vm2968_vm12, %v2952_v23, %v2984_v11  ;;  %v2987_v58 = vmul.f32 0.2, %v2955_v55  ;;  %v2986_v37 = vmul.f32 0.2, %v2954_v5 }
 0x2ed   : > { %vm2971_vm1 = vcmp.gt.f32.partialorder %v2955_v55, 0.0  ;;  %vm2970_vm15 = vcmp.gt.f32.partialorder %v2954_v5, 0.0  ;;  %v6453_v60 = vadd.f32 %v3001_v24, %v6179_v28  ;;  %v6456_v50 = vadd.f32 %v3000_v12, %v6215_v56 }
 0x2ee   : > { %3034 = vmax.xlane.f32.xlu1 %v6421_v61  ;;  %3032 = vmax.xlane.f32.xlu0 %v6424_v10  ;;  %v3003_v59 = vsel %vm2971_vm1, %v2955_v55, %v2987_v58  ;;  %v3002_v47 = vsel %vm2970_vm15, %v2954_v5, %v2986_v37  ;;  %v7617_v5 = vld [vmem:[#allocation76_spill] sm:$0xff]  ;;  %v7618_v58 = vld [vmem:[#allocation77_spill] sm:$0xff] }
 0x2ef   : > { %v6461_v48 = vadd.f32 %v3003_v59, %v6224_v40  ;;  %v6464_v1 = vadd.f32 %v3002_v47, %v6229_v44  ;;  %v7614_v44 = vld [vmem:[#allocation108_spill] sm:$0xff] }
 0x2f2   : > { %3038 = vmax.xlane.f32.xlu1 %v6433_v16  ;;  %3036 = vmax.xlane.f32.xlu0 %v6436_v13 }
 0x2f6   : > { %3042 = vmax.xlane.f32.xlu1 %v6445_v52  ;;  %3040 = vmax.xlane.f32.xlu0 %v6448_v31 }
 0x2fa   : > { %3046 = vmax.xlane.f32.xlu1 %v6453_v60  ;;  %3044 = vmax.xlane.f32.xlu0 %v6456_v50 }
 0x2fe   : > { %3050 = vmax.xlane.f32.xlu1 %v6461_v48  ;;  %3048 = vmax.xlane.f32.xlu0 %v6464_v1 }
 0x323   : > { %v1163_v28 = vpop.xlane.xlu1 %1162 }
 0x324   : > { %v1193_v56 = vsub.f32 %v7611_v8, %v1163_v28  ;;  %v1161_v42 = vpop.xlane.xlu0 %1160 }
 0x325   : > { %v1192_v9 = vsub.f32 %v7612_v14, %v1161_v42  ;;  %v7619_v42 = vld [vmem:[#allocation81_spill] sm:$0xff] }
 0x326   : > { %v1210_v27 = vmul.f32 1.442695, %v1193_v56 }
 0x327   : > { %v1208_v19 = vmul.f32 1.442695, %v1192_v9  ;;  %v1167_v43 = vpop.xlane.xlu1 %1166 }
 0x328   : > { %4347 = vpow2.f32 %v1210_v27  ;;  %v1195_v40 = vsub.f32 %v7613_v22, %v1167_v43  ;;  %v1165_v41 = vpop.xlane.xlu0 %1164  ;;  %v7620_v27 = vld [vmem:[#allocation87_spill] sm:$0xff] }
 0x329   : > { %4349 = vpow2.f32 %v1208_v19  ;;  %v1194_v21 = vsub.f32 %v7614_v44, %v1165_v41 }
 0x32a   : > { %v1214_v38 = vmul.f32 1.442695, %v1195_v40 }
 0x32b   : > { %v1212_v0 = vmul.f32 1.442695, %v1194_v21  ;;  %v1171_v17 = vpop.xlane.xlu1 %1170  ;;  %v7621_v21 = vld [vmem:[#allocation88_spill] sm:$0xff] }
 0x32c   : > { %4351 = vpow2.f32 %v1214_v38  ;;  %v1197_v23 = vsub.f32 %v7615_v4, %v1171_v17  ;;  %v1169_v36 = vpop.xlane.xlu0 %1168  ;;  %v7622_v17 = vld [vmem:[#allocation110_spill] sm:$0xff] }
 0x32d   : > { %4353 = vpow2.f32 %v1212_v0  ;;  %v1196_v34 = vsub.f32 %v7616_v46, %v1169_v36 }
 0x32e   : > { %v1218_v11 = vmul.f32 1.442695, %v1197_v23 }
 0x32f   : > { %v1216_v51 = vmul.f32 1.442695, %v1196_v34  ;;  %v1175_v55 = vpop.xlane.xlu1 %1174 }
 0x330   : > { %4355 = vpow2.f32 %v1218_v11  ;;  %v1199_v24 = vsub.f32 %v7617_v5, %v1175_v55  ;;  %v1173_v12 = vpop.xlane.xlu0 %1172 }
 0x331   : > { %4357 = vpow2.f32 %v1216_v51  ;;  %v1198_v37 = vsub.f32 %v7618_v58, %v1173_v12  ;;  %v7623_v51 = vld [vmem:[#allocation56_spill] sm:$0xff] }
 0x332   : > { %v6476_v59 = vpop.eup %4347  ;;  %v1222_v47 = vmul.f32 1.442695, %v1199_v24  ;;  %v7624_v24 = vld [vmem:[#allocation65_spill] sm:$0xff] }
 0x333   : > { %v6478_v28 = vpop.eup %4349  ;;  %v1220_v8 = vmul.f32 1.442695, %v1198_v37  ;;  %v1179_v56 = vpop.xlane.xlu1 %1178  ;;  %1242 = vadd.xlane.f32.xlu1 %v6476_v59 }
 0x334   : > { %4359 = vpow2.f32 %v1222_v47  ;;  %v1201_v14 = vsub.f32 %v7619_v42, %v1179_v56  ;;  %1240 = vadd.xlane.f32.xlu0 %v6478_v28  ;;  %v1177_v9 = vpop.xlane.xlu0 %1176  ;;  %v7625_v42 = vld [vmem:[#allocation69_spill] sm:$0xff] }
 0x335   : > { %4361 = vpow2.f32 %v1220_v8  ;;  %v1200_v19 = vsub.f32 %v7620_v27, %v1177_v9  ;;  %v7626_v27 = vld [vmem:[#allocation97_spill] sm:$0xff] }
 0x336   : > { %v6484_v43 = vpop.eup %4351  ;;  %v1226_v22 = vmul.f32 1.442695, %v1201_v14 }
 0x337   : > { %v6486_v40 = vpop.eup %4353  ;;  %v1224_v41 = vmul.f32 1.442695, %v1200_v19  ;;  %v1183_v44 = vpop.xlane.xlu1 %1182  ;;  %1246 = vadd.xlane.f32.xlu1 %v6484_v43 }
 0x338   : > { %4363 = vpow2.f32 %v1226_v22  ;;  %v1203_v38 = vsub.f32 %v7621_v21, %v1183_v44  ;;  %1244 = vadd.xlane.f32.xlu0 %v6486_v40  ;;  %v1181_v0 = vpop.xlane.xlu0 %1180 }
 0x339   : > { %4365 = vpow2.f32 %v1224_v41  ;;  %v1202_v4 = vsub.f32 %v7622_v17, %v1181_v0 }
 0x33a   : > { %v6492_v23 = vpop.eup %4355  ;;  %v1230_v36 = vmul.f32 1.442695, %v1203_v38 }
 0x33b   : > { %v6494_v46 = vpop.eup %4357  ;;  %v1228_v34 = vmul.f32 1.442695, %v1202_v4  ;;  %v1187_v11 = vpop.xlane.xlu1 %1186  ;;  %1250 = vadd.xlane.f32.xlu1 %v6492_v23 }
 0x33c   : > { %4367 = vpow2.f32 %v1230_v36  ;;  %v1205_v55 = vsub.f32 %v7623_v51, %v1187_v11  ;;  %1248 = vadd.xlane.f32.xlu0 %v6494_v46  ;;  %v1185_v5 = vpop.xlane.xlu0 %1184 }
 0x33d   : > { %4369 = vpow2.f32 %v1228_v34  ;;  %v1204_v12 = vsub.f32 %v7624_v24, %v1185_v5 }
 0x33e   : > { %v6500_v58 = vpop.eup %4359  ;;  %v1234_v37 = vmul.f32 1.442695, %v1205_v55 }
 0x33f   : > { %v6502_v47 = vpop.eup %4361  ;;  %v1232_v8 = vmul.f32 1.442695, %v1204_v12  ;;  %v1191_v56 = vpop.xlane.xlu1 %1190  ;;  %1254 = vadd.xlane.f32.xlu1 %v6500_v58 }
 0x340   : > { %4371 = vpow2.f32 %v1234_v37  ;;  %v1207_v14 = vsub.f32 %v7625_v42, %v1191_v56  ;;  %1252 = vadd.xlane.f32.xlu0 %v6502_v47  ;;  %v1189_v9 = vpop.xlane.xlu0 %1188 }
 0x341   : > { %4373 = vpow2.f32 %v1232_v8  ;;  %v1206_v19 = vsub.f32 %v7626_v27, %v1189_v9 }
 0x342   : > { %v6508_v22 = vpop.eup %4363  ;;  %v1238_v41 = vmul.f32 1.442695, %v1207_v14 }
 0x343   : > { %v6510_v44 = vpop.eup %4365  ;;  %v1236_v21 = vmul.f32 1.442695, %v1206_v19  ;;  %v2016_v38 = vpop.xlane.xlu1 %2015  ;;  %1258 = vadd.xlane.f32.xlu1 %v6508_v22 }
 0x344   : > { %4375 = vpow2.f32 %v1238_v41  ;;  %v2047_v0 = vsub.f32 %v6269_v62, %v2016_v38  ;;  %1256 = vadd.xlane.f32.xlu0 %v6510_v44  ;;  %v2018_v17 = vpop.xlane.xlu0 %2017 }
 0x345   : > { %4377 = vpow2.f32 %v1236_v21  ;;  %v2048_v4 = vsub.f32 %v6266_v30, %v2018_v17 }
 0x346   : > { %v6516_v36 = vpop.eup %4367  ;;  %v2063_v34 = vmul.f32 1.442695, %v2047_v0 }
 0x347   : > { %v6518_v11 = vpop.eup %4369  ;;  %v2065_v51 = vmul.f32 1.442695, %v2048_v4  ;;  %v2022_v55 = vpop.xlane.xlu1 %2021  ;;  %1262 = vadd.xlane.f32.xlu1 %v6516_v36 }
 0x348   : > { %4379 = vpow2.f32 %v2063_v34  ;;  %v2050_v5 = vsub.f32 %v6283_v32, %v2022_v55  ;;  %1260 = vadd.xlane.f32.xlu0 %v6518_v11  ;;  %v2020_v62 = vpop.xlane.xlu0 %2019 }
 0x349   : > { %4381 = vpow2.f32 %v2065_v51  ;;  %v2049_v24 = vsub.f32 %v6280_v29, %v2020_v62 }
 0x34a   : > { %v6524_v12 = vpop.eup %4371  ;;  %v2069_v30 = vmul.f32 1.442695, %v2050_v5 }
 0x34b   : > { %v6526_v37 = vpop.eup %4373  ;;  %v2067_v8 = vmul.f32 1.442695, %v2049_v24  ;;  %v2026_v56 = vpop.xlane.xlu1 %2025  ;;  %1266 = vadd.xlane.f32.xlu1 %v6524_v12 }
 0x34c   : > { %4383 = vpow2.f32 %v2069_v30  ;;  %v2052_v42 = vsub.f32 %v6303_v33, %v2026_v56  ;;  %1264 = vadd.xlane.f32.xlu0 %v6526_v37  ;;  %v2024_v32 = vpop.xlane.xlu0 %2023 }
 0x34d   : > { %4385 = vpow2.f32 %v2067_v8  ;;  %v2051_v14 = vsub.f32 %v6300_v15, %v2024_v32 }
 0x34e   : > { %v6532_v9 = vpop.eup %4375  ;;  %v2073_v29 = vmul.f32 1.442695, %v2052_v42 }
 0x34f   : > { %v6534_v27 = vpop.eup %4377  ;;  %v2071_v19 = vmul.f32 1.442695, %v2051_v14  ;;  %v2030_v41 = vpop.xlane.xlu1 %2029  ;;  %1270 = vadd.xlane.f32.xlu1 %v6532_v9 }
 0x350   : > { %4387 = vpow2.f32 %v2073_v29  ;;  %v2054_v21 = vsub.f32 %v6319_v18, %v2030_v41  ;;  %1268 = vadd.xlane.f32.xlu0 %v6534_v27  ;;  %v2028_v33 = vpop.xlane.xlu0 %2027 }
 0x351   : > { %4389 = vpow2.f32 %v2071_v19  ;;  %v2053_v38 = vsub.f32 %v6316_v54, %v2028_v33 }
 0x352   : > { %v6540_v0 = vpop.eup %4379  ;;  %v2077_v15 = vmul.f32 1.442695, %v2054_v21 }
 0x353   : > { %v6542_v17 = vpop.eup %4381  ;;  %v2075_v4 = vmul.f32 1.442695, %v2053_v38  ;;  %v2034_v34 = vpop.xlane.xlu1 %2033 }
 0x354   : > { %4391 = vpow2.f32 %v2077_v15  ;;  %v2056_v51 = vsub.f32 %v6335_v39, %v2034_v34  ;;  %2095 = vadd.xlane.f32.xlu0 %v6540_v0  ;;  %2097 = vadd.xlane.f32.xlu1 %v6542_v17  ;;  %v2032_v18 = vpop.xlane.xlu0 %2031 }
 0x355   : > { %4393 = vpow2.f32 %v2075_v4  ;;  %v2055_v55 = vsub.f32 %v6332_v2, %v2032_v18 }
 0x356   : > { %v6548_v5 = vpop.eup %4383  ;;  %v2081_v54 = vmul.f32 1.442695, %v2056_v51 }
 0x357   : > { %v6550_v62 = vpop.eup %4385  ;;  %v2079_v24 = vmul.f32 1.442695, %v2055_v55  ;;  %v2038_v30 = vpop.xlane.xlu1 %2037 }
 0x358   : > { %4395 = vpow2.f32 %v2081_v54  ;;  %v2058_v8 = vsub.f32 %v6346_v45, %v2038_v30  ;;  %2101 = vadd.xlane.f32.xlu1 %v6548_v5  ;;  %2099 = vadd.xlane.f32.xlu0 %v6550_v62  ;;  %v2036_v39 = vpop.xlane.xlu0 %2035 }
 0x359   : > { %4397 = vpow2.f32 %v2079_v24  ;;  %v2057_v56 = vsub.f32 %v6349_v6, %v2036_v39 }
 0x35a   : > { %v6556_v42 = vpop.eup %4387  ;;  %v2085_v2 = vmul.f32 1.442695, %v2058_v8 }
 0x35b   : > { %v6558_v32 = vpop.eup %4389  ;;  %v2083_v14 = vmul.f32 1.442695, %v2057_v56  ;;  %v2042_v29 = vpop.xlane.xlu1 %2041 }
 0x35c   : > { %4399 = vpow2.f32 %v2085_v2  ;;  %v2060_v19 = vsub.f32 %v6355_v57, %v2042_v29  ;;  %2105 = vadd.xlane.f32.xlu1 %v6556_v42  ;;  %2103 = vadd.xlane.f32.xlu0 %v6558_v32  ;;  %v2040_v45 = vpop.xlane.xlu0 %2039 }
 0x35d   : > { %4401 = vpow2.f32 %v2083_v14  ;;  %v2059_v41 = vsub.f32 %v6358_v3, %v2040_v45 }
 0x35e   : > { %v6564_v21 = vpop.eup %4391  ;;  %v2089_v6 = vmul.f32 1.442695, %v2060_v19 }
 0x35f   : > { %v6566_v33 = vpop.eup %4393  ;;  %v2087_v38 = vmul.f32 1.442695, %v2059_v41  ;;  %v2046_v15 = vpop.xlane.xlu1 %2045 }
 0x360   : > { %4403 = vpow2.f32 %v2089_v6  ;;  %v2062_v4 = vsub.f32 %v6363_v20, %v2046_v15  ;;  %2109 = vadd.xlane.f32.xlu1 %v6564_v21  ;;  %2107 = vadd.xlane.f32.xlu0 %v6566_v33  ;;  %v2044_v57 = vpop.xlane.xlu0 %2043 }
 0x361   : > { %4405 = vpow2.f32 %v2087_v38  ;;  %v2061_v34 = vsub.f32 %v6366_v7, %v2044_v57 }
 0x362   : > { %v6572_v51 = vpop.eup %4395  ;;  %v2093_v3 = vmul.f32 1.442695, %v2062_v4 }
 0x363   : > { %v6574_v18 = vpop.eup %4397  ;;  %v2091_v55 = vmul.f32 1.442695, %v2061_v34 }
 0x364   : > { %4407 = vpow2.f32 %v2093_v3  ;;  %2113 = vadd.xlane.f32.xlu1 %v6572_v51  ;;  %2111 = vadd.xlane.f32.xlu0 %v6574_v18 }
 0x365   : > { %4409 = vpow2.f32 %v2091_v55 }
 0x366   : > { %v6578_v20 = vpop.eup %4399 }
 0x367   : > { %v6580_v54 = vpop.eup %4401 }
 0x368   : > { %2117 = vadd.xlane.f32.xlu1 %v6578_v20  ;;  %2115 = vadd.xlane.f32.xlu0 %v6580_v54 }
 0x36a   : > { %v6584_v7 = vpop.eup %4403 }
 0x36b   : > { %v6586_v24 = vpop.eup %4405 }
 0x36c   : > { %2121 = vadd.xlane.f32.xlu1 %v6584_v7  ;;  %2119 = vadd.xlane.f32.xlu0 %v6586_v24 }
 0x36e   : > { %v6590_v30 = vpop.eup %4407 }
 0x36f   : > { %v6592_v8 = vpop.eup %4409  ;;  %v3023_v39 = vpop.xlane.xlu1 %3022 }
 0x370   : > { %v3021_v56 = vpop.xlane.xlu0 %3020  ;;  %v3053_v2 = vsub.f32 %v6389_v26, %v3023_v39  ;;  %2125 = vadd.xlane.f32.xlu1 %v6590_v30  ;;  %2123 = vadd.xlane.f32.xlu0 %v6592_v8 }
 0x371   : > { %v3052_v14 = vsub.f32 %v6392_v35, %v3021_v56 }
 0x372   : > { %v3070_v29 = vmul.f32 1.442695, %v3053_v2 }
 0x373   : > { %v3068_v19 = vmul.f32 1.442695, %v3052_v14  ;;  %v3027_v45 = vpop.xlane.xlu1 %3026 }
 0x374   : > { %v3025_v41 = vpop.xlane.xlu0 %3024  ;;  %4411 = vpow2.f32 %v3070_v29  ;;  %v3055_v6 = vsub.f32 %v6397_v25, %v3027_v45 }
 0x375   : > { %v3054_v38 = vsub.f32 %v6400_v63, %v3025_v41  ;;  %4413 = vpow2.f32 %v3068_v19 }
 0x376   : > { %v3074_v15 = vmul.f32 1.442695, %v3055_v6 }
 0x377   : > { %v3072_v4 = vmul.f32 1.442695, %v3054_v38  ;;  %v3031_v57 = vpop.xlane.xlu1 %3030 }
 0x378   : > { %v3029_v26 = vpop.xlane.xlu0 %3028  ;;  %4415 = vpow2.f32 %v3074_v15  ;;  %v3057_v34 = vsub.f32 %v6409_v53, %v3031_v57 }
 0x379   : > { %v3056_v3 = vsub.f32 %v6412_v49, %v3029_v26  ;;  %4417 = vpow2.f32 %v3072_v4 }
 0x37a   : > { %v3078_v35 = vmul.f32 1.442695, %v3057_v34 }
 0x37b   : > { %v3076_v55 = vmul.f32 1.442695, %v3056_v3  ;;  %v3035_v39 = vpop.xlane.xlu1 %3034 }
 0x37c   : > { %v3033_v56 = vpop.xlane.xlu0 %3032  ;;  %4419 = vpow2.f32 %v3078_v35  ;;  %v3059_v25 = vsub.f32 %v6421_v61, %v3035_v39 }
 0x37d   : > { %v3058_v63 = vsub.f32 %v6424_v10, %v3033_v56  ;;  %4421 = vpow2.f32 %v3076_v55 }
 0x37e   : > { %v6604_v2 = vpop.eup %4411  ;;  %v3082_v14 = vmul.f32 1.442695, %v3059_v25 }
 0x37f   : > { %v3080_v29 = vmul.f32 1.442695, %v3058_v63  ;;  %v6606_v19 = vpop.eup %4413  ;;  %v3039_v53 = vpop.xlane.xlu1 %3038  ;;  %3102 = vadd.xlane.f32.xlu1 %v6604_v2 }
 0x380   : > { %v3037_v49 = vpop.xlane.xlu0 %3036  ;;  %4423 = vpow2.f32 %v3082_v14  ;;  %v3061_v45 = vsub.f32 %v6433_v16, %v3039_v53  ;;  %3100 = vadd.xlane.f32.xlu0 %v6606_v19 }
 0x381   : > { %v3060_v61 = vsub.f32 %v6436_v13, %v3037_v49  ;;  %4425 = vpow2.f32 %v3080_v29 }
 0x382   : > { %v6612_v10 = vpop.eup %4415  ;;  %v3086_v41 = vmul.f32 1.442695, %v3061_v45 }
 0x383   : > { %v3084_v6 = vmul.f32 1.442695, %v3060_v61  ;;  %v6614_v38 = vpop.eup %4417  ;;  %v3043_v15 = vpop.xlane.xlu1 %3042  ;;  %3106 = vadd.xlane.f32.xlu1 %v6612_v10 }
 0x384   : > { %v3041_v4 = vpop.xlane.xlu0 %3040  ;;  %4427 = vpow2.f32 %v3086_v41  ;;  %v3063_v57 = vsub.f32 %v6445_v52, %v3043_v15  ;;  %3104 = vadd.xlane.f32.xlu0 %v6614_v38 }
 0x385   : > { %v3062_v16 = vsub.f32 %v6448_v31, %v3041_v4  ;;  %4429 = vpow2.f32 %v3084_v6  ;;  %v7634_v6 = vld [vmem:[#allocation6_spill] sm:$0xff] }
 0x386   : > { %v6620_v13 = vpop.eup %4419  ;;  %v3090_v26 = vmul.f32 1.442695, %v3063_v57 }
 0x387   : > { %v3088_v34 = vmul.f32 1.442695, %v3062_v16  ;;  %v6622_v3 = vpop.eup %4421  ;;  %v3047_v35 = vpop.xlane.xlu1 %3046  ;;  %3110 = vadd.xlane.f32.xlu1 %v6620_v13  ;;  %v7637_v16 = vld [vmem:[#allocation31_spill] sm:$0xff] }
 0x388   : > { %v3045_v55 = vpop.xlane.xlu0 %3044  ;;  %4431 = vpow2.f32 %v3090_v26  ;;  %v3065_v39 = vsub.f32 %v6453_v60, %v3047_v35  ;;  %3108 = vadd.xlane.f32.xlu0 %v6622_v3  ;;  %v7638_v26 = vld [vmem:[#allocation9_spill] sm:$0xff]  ;;  %v7639_v35 = vld [vmem:[#allocation39_spill] sm:$0xff] }
 0x389   : > { %v3064_v52 = vsub.f32 %v6456_v50, %v3045_v55  ;;  %4433 = vpow2.f32 %v3088_v34  ;;  %v4624_v34 = vadd.low.f32.bf16 %v7638_v26, %v7637_v16 }
 0x38a   : > { %v6628_v31 = vpop.eup %4423  ;;  %v3094_v56 = vmul.f32 1.442695, %v3065_v39 }
 0x38b   : > { %7627 = vst [vmem:[#allocation75_spill] sm:$0xff] %v6628_v31  ;;  %v3092_v25 = vmul.f32 1.442695, %v3064_v52  ;;  %v6630_v63 = vpop.eup %4425  ;;  %v3051_v14 = vpop.xlane.xlu1 %3050  ;;  %3114 = vadd.xlane.f32.xlu1 %v6628_v31 }
 0x38c   : > { %7628 = vst [vmem:[#allocation96_spill] sm:$0xff] %v6630_v63  ;;  %v3049_v29 = vpop.xlane.xlu0 %3048  ;;  %4435 = vpow2.f32 %v3094_v56  ;;  %v3067_v53 = vsub.f32 %v6461_v48, %v3051_v14  ;;  %3112 = vadd.xlane.f32.xlu0 %v6630_v63  ;;  %v7642_v56 = vld [vmem:[#allocation5_spill] sm:$0xff]  ;;  %v7643_v14 = vld [vmem:[#allocation28_spill] sm:$0xff] }
 0x38d   : > { %v3066_v60 = vsub.f32 %v6464_v1, %v3049_v29  ;;  %4437 = vpow2.f32 %v3092_v25  ;;  %v7633_v1 = vld [vmem:[#allocation29_spill] sm:$0xff]  ;;  %v7644_v29 = vld [vmem:[#allocation7_spill] sm:$0xff] }
 0x38e   : > { %v6636_v50 = vpop.eup %4427  ;;  %v3098_v49 = vmul.f32 1.442695, %v3067_v53  ;;  %v4623_v15 = vadd.high.f32.bf16 %v7634_v6, %v7633_v1  ;;  %v4626_v25 = vadd.low.f32.bf16 %v7642_v56, %v7633_v1  ;;  %v4627_v53 = vadd.low.f32.bf16 %v7644_v29, %v7643_v14  ;;  %v7646_v6 = vld [vmem:[#allocation10_spill] sm:$0xff]  ;;  %v7651_v29 = vld [vmem:[#allocation35_spill] sm:$0xff]  ;;  %v7656_v63 = vld [vmem:[#allocation17_spill] sm:$0xff] }
 0x38f   : > { %7629 = vst [vmem:[#allocation98_spill] sm:$0xff] %v6636_v50  ;;  %v3096_v45 = vmul.f32 1.442695, %v3066_v60  ;;  %v6638_v61 = vpop.eup %4429  ;;  %3118 = vadd.xlane.f32.xlu1 %v6636_v50  ;;  %v7649_v56 = vld [vmem:[#allocation42_spill] sm:$0xff] }
 0x390   : > { %7630 = vst [vmem:[#allocation78_spill] sm:$0xff] %v6638_v61  ;;  %4439 = vpow2.f32 %v3098_v49  ;;  %3116 = vadd.xlane.f32.xlu0 %v6638_v61  ;;  %v4625_v55 = vadd.high.f32.bf16 %v4623_v15, %v7639_v35  ;;  %v7645_v49 = vld [vmem:[#allocation38_spill] sm:$0xff]  ;;  %v4629_v15 = vadd.high.f32.bf16 %v7646_v6, %v7637_v16  ;;  %v4630_v26 = vadd.low.f32.bf16 %v4626_v25, %v7639_v35  ;;  %v7653_v6 = vld [vmem:[#allocation40_spill] sm:$0xff]  ;;  %v7654_v25 = vld [vmem:[#allocation13_spill] sm:$0xff] }
 0x391   : > { %4441 = vpow2.f32 %v3096_v45  ;;  %v4628_v45 = vadd.low.f32.bf16 %v4624_v34, %v7645_v49  ;;  %v7652_v34 = vld [vmem:[#allocation15_spill] sm:$0xff] }
 0x392   : > { %v6642_v41 = vpop.eup %4431  ;;  %v667_v60 = vmax.f32 %v4625_v55, 1.0  ;;  %v666_v61 = vmax.f32 %v4630_v26, 1.0  ;;  %v4634_v55 = vadd.high.f32.bf16 %v4629_v15, %v7645_v49  ;;  %v4635_v50 = vadd.low.f32.bf16 %v7652_v34, %v7651_v29  ;;  %v7657_v49 = vld [vmem:[#allocation45_spill] sm:$0xff]  ;;  %v7658_v26 = vld [vmem:[#allocation16_spill] sm:$0xff] }
 0x393   : > { %7631 = vst [vmem:[#allocation99_spill] sm:$0xff] %v6642_v41  ;;  %v6644_v48 = vpop.eup %4433  ;;  %3122 = vadd.xlane.f32.xlu1 %v6642_v41  ;;  %v668_v1 = vmax.f32 %v4628_v45, 1.0  ;;  %v7655_v45 = vld [vmem:[#allocation33_spill] sm:$0xff] }
 0x394   : > { %7632 = vst [vmem:[#allocation79_spill] sm:$0xff] %v6644_v48  ;;  %3120 = vadd.xlane.f32.xlu0 %v6644_v48  ;;  %4443 = vrcp.f32 %v667_v60  ;;  %v669_v60 = vmax.f32 %v4634_v55, 1.0  ;;  %v4640_v15 = vadd.low.f32.bf16 %v4635_v50, %v7657_v49  ;;  %v7660_v55 = vld [vmem:[#allocation20_spill] sm:$0xff] }
 0x395   : > { %4445 = vrcp.f32 %v668_v1  ;;  %v4641_v1 = vadd.high.f32.bf16 %v7658_v26, %v7651_v29 }
 0x396   : > { %v6650_v4 = vpop.eup %4435  ;;  %4447 = vrcp.f32 %v666_v61  ;;  %v7659_v61 = vld [vmem:[#allocation37_spill] sm:$0xff]  ;;  %v674_v50 = vmax.f32 %v4640_v15, 1.0 }
 0x397   : > { %7635 = vst [vmem:[#allocation100_spill] sm:$0xff] %v6650_v4  ;;  %v6652_v57 = vpop.eup %4437  ;;  %3126 = vadd.xlane.f32.xlu1 %v6650_v4  ;;  %v7648_v4 = vld [vmem:[#allocation12_spill] sm:$0xff]  ;;  %v4643_v34 = vadd.low.f32.bf16 %v7660_v55, %v7659_v61  ;;  %v7668_v55 = vld [vmem:[#allocation46_spill] sm:$0xff] }
 0x398   : > { %7636 = vst [vmem:[#allocation101_spill] sm:$0xff] %v6652_v57  ;;  %3124 = vadd.xlane.f32.xlu0 %v6652_v57  ;;  %v7647_v57 = vld [vmem:[#allocation30_spill] sm:$0xff] }
 0x399   : > { %v4631_v48 = vadd.low.f32.bf16 %v7648_v4, %v7647_v57  ;;  %v4637_v4 = vadd.high.f32.bf16 %v7654_v25, %v7647_v57  ;;  %v7663_v25 = vld [vmem:[#allocation36_spill] sm:$0xff] }
 0x39a   : > { %v6659_v39 = vpop.eup %4439 }
 0x39b   : > { %7640 = vst [vmem:[#allocation83_spill] sm:$0xff] %v6659_v39  ;;  %v6661_v52 = vpop.eup %4441  ;;  %3130 = vadd.xlane.f32.xlu1 %v6659_v39  ;;  %v4632_v39 = vadd.low.f32.bf16 %v4627_v53, %v7649_v56  ;;  %v4636_v35 = vadd.low.f32.bf16 %v4631_v48, %v7653_v6  ;;  %v4642_v57 = vadd.high.f32.bf16 %v4637_v4, %v7653_v6  ;;  %v7664_v4 = vld [vmem:[#allocation22_spill] sm:$0xff] }
 0x39c   : > { %7641 = vst [vmem:[#allocation86_spill] sm:$0xff] %v6661_v52  ;;  %3128 = vadd.xlane.f32.xlu0 %v6661_v52  ;;  %v7650_v52 = vld [vmem:[#allocation8_spill] sm:$0xff]  ;;  %v4646_v6 = vadd.high.f32.bf16 %v4641_v1, %v7657_v49 }
 0x39d   : > { %v4633_v41 = vadd.high.f32.bf16 %v7650_v52, %v7643_v14  ;;  %v670_v16 = vmax.f32 %v4632_v39, 1.0  ;;  %v4639_v52 = vadd.low.f32.bf16 %v7656_v63, %v7655_v45  ;;  %v672_v14 = vmax.f32 %v4636_v35, 1.0  ;;  %v7661_v63 = vld [vmem:[#allocation44_spill] sm:$0xff] }
 0x39e   : > { %v6690_v39 = vpop.eup %4443  ;;  %v673_v35 = vmax.f32 %v4642_v57, 1.0  ;;  %v675_v1 = vmax.f32 %v4646_v6, 1.0 }
 0x39f   : > { %v4638_v53 = vadd.high.f32.bf16 %v4633_v41, %v7649_v56  ;;  %4449 = vrcp.f32 %v670_v16  ;;  %v4644_v41 = vadd.low.f32.bf16 %v4639_v52, %v7661_v63  ;;  %v7662_v56 = vld [vmem:[#allocation18_spill] sm:$0xff]  ;;  %v6700_v16 = vpop.eup %4445  ;;  %v7666_v52 = vld [vmem:[#allocation47_spill] sm:$0xff] }
 0x3a0   : > { %4451 = vrcp.f32 %v669_v60  ;;  %v4645_v29 = vadd.high.f32.bf16 %v7662_v56, %v7655_v45  ;;  %v4647_v60 = vadd.low.f32.bf16 %v7664_v4, %v7663_v25  ;;  %v4648_v15 = vadd.low.f32.bf16 %v4643_v34, %v7666_v52  ;;  %v7667_v45 = vld [vmem:[#allocation21_spill] sm:$0xff] }
 0x3a1   : > { %v671_v48 = vmax.f32 %v4638_v53, 1.0  ;;  %4453 = vrcp.f32 %v672_v14  ;;  %v6707_v53 = vpop.eup %4447  ;;  %v676_v14 = vmax.f32 %v4644_v41, 1.0  ;;  %v4649_v26 = vadd.high.f32.bf16 %v7667_v45, %v7659_v61  ;;  %v7669_v61 = vld [vmem:[#allocation23_spill] sm:$0xff] }
 0x3a2   : > { %7665 = vst [vmem:[#allocation102_spill] sm:$0xff] %v6707_v53  ;;  %v4650_v49 = vadd.high.f32.bf16 %v4645_v29, %v7661_v63  ;;  %v4651_v34 = vadd.low.f32.bf16 %v4647_v60, %v7668_v55  ;;  %v678_v41 = vmax.f32 %v4648_v15, 1.0 }
 0x3a3   : > { %4455 = vrcp.f32 %v671_v48  ;;  %v4653_v63 = vadd.high.f32.bf16 %v4649_v26, %v7666_v52 }
 0x3a4   : > { %4457 = vrcp.f32 %v674_v50  ;;  %v4652_v50 = vadd.high.f32.bf16 %v7669_v61, %v7663_v25  ;;  %v680_v6 = vmax.f32 %v4651_v34, 1.0 }
 0x3a5   : > { %4459 = vrcp.f32 %v673_v35  ;;  %v677_v35 = vmax.f32 %v4650_v49, 1.0  ;;  %v679_v60 = vmax.f32 %v4653_v63, 1.0 }
 0x3a6   : > { %4461 = vrcp.f32 %v676_v14  ;;  %v4654_v4 = vadd.high.f32.bf16 %v4652_v50, %v7668_v55 }
 0x3a7   : > { %4463 = vrcp.f32 %v675_v1 }
 0x3a8   : > { %4465 = vrcp.f32 %v678_v41  ;;  %v681_v15 = vmax.f32 %v4654_v4, 1.0 }
 0x3a9   : > { %v6714_v48 = vpop.eup %4449  ;;  %4467 = vrcp.f32 %v677_v35 }
 0x3aa   : > { %v6719_v57 = vpop.eup %4451  ;;  %4469 = vrcp.f32 %v680_v6 }
 0x3ab   : > { %v6726_v56 = vpop.eup %4453  ;;  %4471 = vrcp.f32 %v679_v60 }
 0x3ac   : > { %2290 = vrot.lane.b32.xlu1 %v6690_v39, %s4730_s27 }
 0x3ad   : > { %v6731_v29 = vpop.eup %4455 }
 0x3ae   : > { %v6735_v25 = vpop.eup %4457 }
 0x3af   : > { %v6740_v14 = vpop.eup %4459 }
 0x3b0   : > { %2292 = vrot.lane.b32.xlu1 %v6700_v16, %s4730_s27  ;;  %v6744_v52 = vpop.eup %4461 }
 0x3b1   : > { %v6748_v26 = vpop.eup %4463 }
 0x3b2   : > { %2288 = vrot.lane.b32.xlu0 %v6707_v53, %s4730_s27  ;;  %v6752_v1 = vpop.eup %4465 }
 0x3b3   : > { %v6756_v34 = vpop.eup %4467 }
 0x3b4   : > { %2296 = vrot.lane.b32.xlu1 %v6714_v48, %s4730_s27  ;;  %v6760_v61 = vpop.eup %4469 }
 0x3b5   : > { %v6764_v35 = vpop.eup %4471 }
 0x3b6   : > { %2294 = vrot.lane.b32.xlu0 %v6719_v57, %s4730_s27 }
 0x3b8   : > { %2300 = vrot.lane.b32.xlu1 %v6726_v56, %s4730_s27 }
 0x3ba   : > { %2298 = vrot.lane.b32.xlu0 %v6731_v29, %s4730_s27 }
 0x3bc   : > { %2304 = vrot.lane.b32.xlu1 %v6735_v25, %s4730_s27 }
 0x3be   : > { %2302 = vrot.lane.b32.xlu0 %v6740_v14, %s4730_s27 }
 0x3c0   : > { %v1243_v45 = vpop.xlane.xlu1 %1242  ;;  %2308 = vrot.lane.b32.xlu1 %v6744_v52, %s4730_s27 }
 0x3c1   : > { %4473 = vrcp.f32 %v1243_v45  ;;  %v1241_v49 = vpop.xlane.xlu0 %1240 }
 0x3c2   : > { %4475 = vrcp.f32 %v1241_v49  ;;  %2306 = vrot.lane.b32.xlu0 %v6748_v26, %s4730_s27 }
 0x3c3   : > { %4477 = vrcp.f32 %v681_v15 }
 0x3c4   : > { %v1247_v55 = vpop.xlane.xlu1 %1246  ;;  %2312 = vrot.lane.b32.xlu1 %v6752_v1, %s4730_s27 }
 0x3c5   : > { %4479 = vrcp.f32 %v1247_v55  ;;  %v1245_v41 = vpop.xlane.xlu0 %1244 }
 0x3c6   : > { %4481 = vrcp.f32 %v1245_v41  ;;  %2310 = vrot.lane.b32.xlu0 %v6756_v34, %s4730_s27 }
 0x3c8   : > { %v1251_v50 = vpop.xlane.xlu1 %1250  ;;  %2316 = vrot.lane.b32.xlu1 %v6760_v61, %s4730_s27 }
 0x3c9   : > { %4483 = vrcp.f32 %v1251_v50  ;;  %v1249_v63 = vpop.xlane.xlu0 %1248 }
 0x3ca   : > { %4485 = vrcp.f32 %v1249_v63  ;;  %2314 = vrot.lane.b32.xlu0 %v6764_v35, %s4730_s27 }
 0x3cb   : > { %v4474_v6 = vpop.eup %4473 }
 0x3cc   : > { %v4476_v4 = vpop.eup %4475  ;;  %v1255_v60 = vpop.xlane.xlu1 %1254  ;;  %3277 = vrot.lane.b32.xlu1 %v6707_v53, %s4731_s28  ;;  %v1289_v15 = vmul.f32 %v4474_v6, %v6476_v59 }
 0x3cd   : > { %v6771_v45 = vpop.eup %4477  ;;  %4487 = vrcp.f32 %v1255_v60  ;;  %v1253_v49 = vpop.xlane.xlu0 %1252  ;;  %v1288_v55 = vmul.f32 %v4476_v4, %v6478_v28 }
 0x3ce   : > { %4489 = vrcp.f32 %v1253_v49  ;;  %2318 = vrot.lane.b32.xlu0 %v6771_v45, %s4730_s27 }
 0x3cf   : > { %v4480_v41 = vpop.eup %4479  ;;  %v1304_v50 = vpack.c.bf16 %v1289_v15, %v1288_v55 }
 0x3d0   : > { %v4482_v63 = vpop.eup %4481  ;;  %v1259_v31 = vpop.xlane.xlu1 %1258  ;;  %3281 = vrot.lane.b32.xlu1 %v6700_v16, %s4731_s28  ;;  %v1291_v53 = vmul.f32 %v4480_v41, %v6484_v43 }
 0x3d1   : > { %4491 = vrcp.f32 %v1259_v31  ;;  %3861 = vmatprep.mubr.bf16.mxu1 %v1304_v50  ;;  %v1257_v59 = vpop.xlane.xlu0 %1256  ;;  %v1290_v6 = vmul.f32 %v4482_v63, %v6486_v40 }
 0x3d2   : > { %4493 = vrcp.f32 %v1257_v59  ;;  %3279 = vrot.lane.b32.xlu0 %v6690_v39, %s4731_s28 }
 0x3d3   : > { %v4484_v28 = vpop.eup %4483  ;;  %v1305_v4 = vpack.c.bf16 %v1291_v53, %v1290_v6 }
 0x3d4   : > { %v4486_v60 = vpop.eup %4485  ;;  %v1263_v15 = vpop.xlane.xlu1 %1262  ;;  %3285 = vrot.lane.b32.xlu1 %v6714_v48, %s4731_s28  ;;  %v1293_v49 = vmul.f32 %v4484_v28, %v6492_v23 }
 0x3d5   : > { %4495 = vrcp.f32 %v1263_v15  ;;  %3862 = vmatmul.mubr.bf16.vlgmr.msra.gmra.mrb[0].mxu1 %v1305_v4  ;;  %v1261_v43 = vpop.xlane.xlu0 %1260  ;;  %v1292_v31 = vmul.f32 %v4486_v60, %v6494_v46 }
 0x3d6   : > { %4497 = vrcp.f32 %v1261_v43  ;;  %3283 = vrot.lane.b32.xlu0 %v6719_v57, %s4731_s28 }
 0x3d7   : > { %v4488_v40 = vpop.eup %4487  ;;  %v1306_v55 = vpack.c.bf16 %v1293_v49, %v1292_v31 }
 0x3d8   : > { %v4490_v41 = vpop.eup %4489  ;;  %v1267_v53 = vpop.xlane.xlu1 %1266  ;;  %3289 = vrot.lane.b32.xlu1 %v6726_v56, %s4731_s28  ;;  %v1295_v50 = vmul.f32 %v4488_v40, %v6500_v58 }
 0x3d9   : > { %4499 = vrcp.f32 %v1267_v53  ;;  %3865 = vmatprep.mubr.bf16.mxu1 %v1306_v55  ;;  %v1265_v23 = vpop.xlane.xlu0 %1264  ;;  %v1294_v63 = vmul.f32 %v4490_v41, %v6502_v47 }
 0x3da   : > { %4501 = vrcp.f32 %v1265_v23  ;;  %3287 = vrot.lane.b32.xlu0 %v6731_v29, %s4731_s28 }
 0x3db   : > { %v4492_v46 = vpop.eup %4491  ;;  %v1307_v59 = vpack.c.bf16 %v1295_v50, %v1294_v63 }
 0x3dc   : > { %v4494_v6 = vpop.eup %4493  ;;  %v1271_v28 = vpop.xlane.xlu1 %1270  ;;  %3293 = vrot.lane.b32.xlu1 %v6735_v25, %s4731_s28  ;;  %v1297_v4 = vmul.f32 %v4492_v46, %v6508_v22 }
 0x3dd   : > { %4503 = vrcp.f32 %v1271_v28  ;;  %3866 = vmatmul.mubr.bf16.gmra.mrb[4].mxu1 %v1307_v59  ;;  %v1269_v58 = vpop.xlane.xlu0 %1268  ;;  %v1296_v60 = vmul.f32 %v4494_v6, %v6510_v44 }
 0x3de   : > { %4505 = vrcp.f32 %v1269_v58  ;;  %3291 = vrot.lane.b32.xlu0 %v6740_v14, %s4731_s28 }
 0x3df   : > { %v4496_v47 = vpop.eup %4495  ;;  %v1308_v15 = vpack.c.bf16 %v1297_v4, %v1296_v60 }
 0x3e0   : > { %v4498_v49 = vpop.eup %4497  ;;  %3297 = vrot.lane.b32.xlu1 %v6744_v52, %s4731_s28  ;;  %v1299_v43 = vmul.f32 %v4496_v47, %v6516_v36 }
 0x3e1   : > { %v2098_v31 = vpop.xlane.xlu1 %2097  ;;  %3869 = vmatprep.mubr.bf16.mxu1 %v1308_v15  ;;  %v2096_v22 = vpop.xlane.xlu0 %2095  ;;  %v1298_v40 = vmul.f32 %v4498_v49, %v6518_v11 }
 0x3e2   : > { %4507 = vrcp.f32 %v2098_v31  ;;  %3295 = vrot.lane.b32.xlu0 %v6748_v26, %s4731_s28 }
 0x3e3   : > { %v4500_v44 = vpop.eup %4499  ;;  %4509 = vrcp.f32 %v2096_v22  ;;  %v1309_v55 = vpack.c.bf16 %v1299_v43, %v1298_v40 }
 0x3e4   : > { %v4502_v41 = vpop.eup %4501  ;;  %3301 = vrot.lane.b32.xlu1 %v6752_v1, %s4731_s28  ;;  %v1301_v53 = vmul.f32 %v4500_v44, %v6524_v12 }
 0x3e5   : > { %v2102_v50 = vpop.xlane.xlu1 %2101  ;;  %3870 = vmatmul.mubr.bf16.gmra.mrb[8].mxu1 %v1309_v55  ;;  %v2100_v36 = vpop.xlane.xlu0 %2099  ;;  %v1300_v23 = vmul.f32 %v4502_v41, %v6526_v37 }
 0x3e6   : > { %4511 = vrcp.f32 %v2102_v50  ;;  %3299 = vrot.lane.b32.xlu0 %v6756_v34, %s4731_s28 }
 0x3e7   : > { %v4504_v11 = vpop.eup %4503  ;;  %4513 = vrcp.f32 %v2100_v36  ;;  %v1310_v63 = vpack.c.bf16 %v1301_v53, %v1300_v23  ;;  %v7670_v23 = vld [vmem:[#allocation25_spill] sm:$0xff] }
 0x3e8   : > { %v4506_v46 = vpop.eup %4505  ;;  %3305 = vrot.lane.b32.xlu1 %v6760_v61, %s4731_s28  ;;  %v1303_v59 = vmul.f32 %v4504_v11, %v6532_v9  ;;  %v7671_v11 = vld [vmem:[#allocation26_spill] sm:$0xff] }
 0x3e9   : > { %v2106_v6 = vpop.xlane.xlu1 %2105  ;;  %3873 = vmatprep.mubr.bf16.mxu1 %v1310_v63  ;;  %v2104_v12 = vpop.xlane.xlu0 %2103  ;;  %v1302_v28 = vmul.f32 %v4506_v46, %v6534_v27 }
 0x3ea   : > { %4515 = vrcp.f32 %v2106_v6  ;;  %3303 = vrot.lane.b32.xlu0 %v6764_v35, %s4731_s28 }
 0x3eb   : > { %4517 = vrcp.f32 %v2104_v12  ;;  %v1311_v37 = vpack.c.bf16 %v1303_v59, %v1302_v28  ;;  %v7672_v12 = vld [vmem:[#allocation27_spill] sm:$0xff] }
 0x3ec   : > { %v4508_v4 = vpop.eup %4507 }
 0x3ed   : > { %v4510_v58 = vpop.eup %4509  ;;  %v2110_v60 = vpop.xlane.xlu1 %2109  ;;  %3874 = vmatmul.mubr.bf16.gmra.mrb[12].mxu1 %v1311_v37  ;;  %v2144_v15 = vmul.f32 %v4508_v4, %v6542_v17 }
 0x3ee   : > { %v2108_v47 = vpop.xlane.xlu0 %2107  ;;  %4519 = vrcp.f32 %v2110_v60  ;;  %3307 = vrot.lane.b32.xlu0 %v6771_v45, %s4731_s28  ;;  %v2143_v9 = vmul.f32 %v4510_v58, %v6540_v0 }
 0x3ef   : > { %4521 = vrcp.f32 %v2108_v47 }
 0x3f0   : > { %v4512_v27 = vpop.eup %4511  ;;  %v2159_v49 = vpack.c.bf16 %v2144_v15, %v2143_v9  ;;  %v7675_v9 = vld [vmem:[#allocation43_spill] sm:$0xff] }
 0x3f1   : > { %v4514_v43 = vpop.eup %4513  ;;  %v2146_v31 = vmul.f32 %v4512_v27, %v6548_v5  ;;  %v2114_v22 = vpop.xlane.xlu1 %2113 }
 0x3f2   : > { %v2112_v40 = vpop.xlane.xlu0 %2111  ;;  %v2145_v44 = vmul.f32 %v4514_v43, %v6550_v62  ;;  %4523 = vrcp.f32 %v2114_v22  ;;  %3893 = vmatprep.mubr.bf16.mxu0 %v2159_v49 }
 0x3f3   : > { %4525 = vrcp.f32 %v2112_v40  ;;  %v7676_v40 = vld [vmem:[#allocation41_spill] sm:$0xff] }
 0x3f4   : > { %v4516_v17 = vpop.eup %4515  ;;  %v2160_v55 = vpack.c.bf16 %v2146_v31, %v2145_v44  ;;  %v7677_v44 = vld [vmem:[#allocation49_spill] sm:$0xff] }
 0x3f5   : > { %v4518_v41 = vpop.eup %4517  ;;  %v2118_v53 = vpop.xlane.xlu1 %2117  ;;  %v2148_v0 = vmul.f32 %v4516_v17, %v6556_v42  ;;  %v7673_v42 = vld [vmem:[#allocation34_spill] sm:$0xff]  ;;  %v3176_v17 = vpack.c.bf16 %v7677_v44, %v7676_v40 }
 0x3f6   : > { %v2116_v50 = vpop.xlane.xlu0 %2115  ;;  %4527 = vrcp.f32 %v2118_v53  ;;  %3894 = vmatmul.mubr.bf16.vlgmr.msra.gmra.mrb[16].mxu0 %v2160_v55  ;;  %v2147_v36 = vmul.f32 %v4518_v41, %v6558_v32  ;;  %v3174_v28 = vpack.c.bf16 %v7673_v42, %v7672_v12  ;;  %v7682_v12 = vld [vmem:[#allocation54_spill] sm:$0xff]  ;;  %v7683_v42 = vld [vmem:[#allocation57_spill] sm:$0xff] }
 0x3f7   : > { %3980 = vmatpush3.bf16.msra.mxu0 %v7670_v23  ;;  %4529 = vrcp.f32 %v2116_v50  ;;  %v7678_v50 = vld [vmem:[#allocation48_spill] sm:$0xff] }
 0x3f8   : > { %v4520_v5 = vpop.eup %4519  ;;  %3981 = vmatprep.subr.bf16.mxu0 %v7671_v11  ;;  %v2161_v62 = vpack.c.bf16 %v2148_v0, %v2147_v36  ;;  %v7679_v0 = vld [vmem:[#allocation51_spill] sm:$0xff] }
 0x3f9   : > { %v4522_v63 = vpop.eup %4521  ;;  %v2122_v46 = vpop.xlane.xlu1 %2121  ;;  %v2150_v6 = vmul.f32 %v4520_v5, %v6564_v21  ;;  %v7674_v21 = vld [vmem:[#allocation32_spill] sm:$0xff]  ;;  %v3177_v36 = vpack.c.bf16 %v7679_v0, %v7678_v50 }
 0x3fa   : > { %v2120_v59 = vpop.xlane.xlu0 %2119  ;;  %4531 = vrcp.f32 %v2122_v46  ;;  %3897 = vmatprep.mubr.bf16.mxu0 %v2161_v62  ;;  %v2149_v37 = vmul.f32 %v4522_v63, %v6566_v33  ;;  %v3175_v27 = vpack.c.bf16 %v7675_v9, %v7674_v21  ;;  %v7680_v62 = vld [vmem:[#allocation50_spill] sm:$0xff]  ;;  %v7681_v63 = vld [vmem:[#allocation59_spill] sm:$0xff]  ;;  %v4608_v21 = vld [vmem:[%s4830_s17] sm:$0xff] }
 0x3fb   : > { %3982 = vmatpush3.bf16.msra.mxu0 %v7671_v11  ;;  %4533 = vrcp.f32 %v2120_v59  ;;  %v3178_v46 = vpack.c.bf16 %v7681_v63, %v7680_v62  ;;  %vm1417_vm10 = vcmp.gt.s32.totalorder %v4608_v21, 1  ;;  %v4612_v63 = vld [vmem:[%s4830_s17 + $0x28] sm:$0xff] }
 0x3fc   : > { %v4524_v32 = vpop.eup %4523  ;;  %3983 = vmatprep.subr.bf16.mxu0 %v3174_v28  ;;  %v2162_v4 = vpack.c.bf16 %v2150_v6, %v2149_v37  ;;  %v1418_v40 = vsel %vm1417_vm10, %v4608_v21, 1  ;;  %vm1427_vm12 = vcmp.gt.s32.totalorder %v4612_v63, 1  ;;  %v7686_v21 = vld [vmem:[#allocation98_spill] sm:$0xff] }
 0x3fd   : > { %v4526_v58 = vpop.eup %4525  ;;  %v2126_v60 = vpop.xlane.xlu1 %2125  ;;  %v2152_v15 = vmul.f32 %v4524_v32, %v6572_v51  ;;  %v1449_v50 = vcvt.s32.f32 %v1418_v40 }
 0x3fe   : > { %v2124_v47 = vpop.xlane.xlu0 %2123  ;;  %4535 = vrcp.f32 %v2126_v60  ;;  %3898 = vmatmul.mubr.bf16.gmra.mrb[20].mxu0 %v2162_v4  ;;  %v2151_v49 = vmul.f32 %v4526_v58, %v6574_v18  ;;  %v4607_v4 = vld [vmem:[%s4830_s17 + $0x8] sm:$0xff] }
 0x3ff   : > { %3984 = vmatpush3.bf16.msra.mxu0 %v3174_v28  ;;  %4537 = vrcp.f32 %v2124_v47  ;;  %v3179_v28 = vpack.c.bf16 %v7683_v42, %v7682_v12  ;;  %vm1419_vm0 = vcmp.gt.s32.totalorder %v4607_v4, 1  ;;  %v7684_v12 = vld [vmem:[#allocation75_spill] sm:$0xff] }
 0x400   : > { %v4528_v33 = vpop.eup %4527  ;;  %3985 = vmatprep.subr.bf16.mxu0 %v3175_v27  ;;  %v2163_v43 = vpack.c.bf16 %v2152_v15, %v2151_v49  ;;  %v1420_v9 = vsel %vm1419_vm0, %v4607_v4, 1  ;;  %v4614_v4 = vld [vmem:[%s4830_s17 + $0x38] sm:$0xff] }
 0x401   : > { %v4530_v31 = vpop.eup %4529  ;;  %v2154_v22 = vmul.f32 %v4528_v33, %v6578_v20  ;;  %v4609_v33 = vld [vmem:[%s4830_s17 + $0x10] sm:$0xff]  ;;  %v1450_v44 = vcvt.s32.f32 %v1420_v9  ;;  %vm1431_vm15 = vcmp.gt.s32.totalorder %v4614_v4, 1 }
 0x402   : > { %3901 = vmatprep.mubr.bf16.mxu0 %v2163_v43  ;;  %v2153_v51 = vmul.f32 %v4530_v31, %v6580_v54  ;;  %vm1421_vm8 = vcmp.gt.s32.totalorder %v4609_v33, 1 }
 0x403   : > { %3986 = vmatpush3.bf16.msra.mxu0 %v3175_v27 }
 0x404   : > { %v4532_v55 = vpop.eup %4531  ;;  %3987 = vmatprep.subr.bf16.mxu0 %v3176_v17  ;;  %v2164_v41 = vpack.c.bf16 %v2154_v22, %v2153_v51  ;;  %v4610_v51 = vld [vmem:[%s4830_s17 + $0x20] sm:$0xff] }
 0x405   : > { %v4534_v53 = vpop.eup %4533  ;;  %v2156_v18 = vmul.f32 %v4532_v55, %v6584_v7  ;;  %vm1425_vm14 = vcmp.gt.s32.totalorder %v4610_v51, 1  ;;  %v1422_v55 = vsel %vm1421_vm8, %v4609_v33, 1  ;;  %v7687_v33 = vld [vmem:[#allocation78_spill] sm:$0xff] }
 0x406   : > { %3902 = vmatmul.mubr.bf16.gmra.mrb[24].mxu0 %v2164_v41  ;;  %v2155_v23 = vmul.f32 %v4534_v53, %v6586_v24  ;;  %v4611_v53 = vld [vmem:[%s4830_s17 + $0x18] sm:$0xff] }
 0x407   : > { %3988 = vmatpush3.bf16.msra.mxu0 %v3176_v17  ;;  %vm1423_vm2 = vcmp.gt.s32.totalorder %v4611_v53, 1 }
 0x408   : > { %v4536_v20 = vpop.eup %4535  ;;  %3989 = vmatprep.subr.bf16.mxu0 %v3177_v36  ;;  %v2165_v5 = vpack.c.bf16 %v2156_v18, %v2155_v23  ;;  %v1426_v23 = vsel %vm1425_vm14, %v4610_v51, 1 }
 0x409   : > { %v4538_v11 = vpop.eup %4537  ;;  %v2158_v54 = vmul.f32 %v4536_v20, %v6590_v30 }
 0x40a   : > { %3905 = vmatprep.mubr.bf16.mxu0 %v2165_v5  ;;  %v2157_v59 = vmul.f32 %v4538_v11, %v6592_v8  ;;  %v1424_v11 = vsel %vm1423_vm2, %v4611_v53, 1  ;;  %v7688_v53 = vld [vmem:[#allocation99_spill] sm:$0xff] }
 0x40b   : > { %3990 = vmatpush3.bf16.msra.mxu0 %v3177_v36 }
 0x40c   : > { %3991 = vmatprep.subr.bf16.mxu0 %v3178_v46  ;;  %v3103_v7 = vpop.xlane.xlu1 %3102  ;;  %v2166_v6 = vpack.c.bf16 %v2158_v54, %v2157_v59 }
 0x40d   : > { %4539 = vrcp.f32 %v3103_v7  ;;  %v3101_v24 = vpop.xlane.xlu0 %3100 }
 0x40e   : > { %3906 = vmatmul.mubr.bf16.gmra.mrb[28].mxu0 %v2166_v6  ;;  %4541 = vrcp.f32 %v3101_v24  ;;  %v1452_v6 = vcvt.s32.f32 %v1424_v11  ;;  %v4613_v24 = vld [vmem:[%s4830_s17 + $0x30] sm:$0xff] }
 0x40f   : > { %3992 = vmatpush3.bf16.msra.mxu0 %v3178_v46  ;;  %v1453_v46 = vcvt.s32.f32 %v1426_v23  ;;  %vm1429_vm1 = vcmp.gt.s32.totalorder %v4613_v24, 1 }
 0x410   : > { %3993 = vmatprep.subr.bf16.mxu0 %v3179_v28  ;;  %v3107_v30 = vpop.xlane.xlu1 %3106 }
 0x411   : > { %4543 = vrcp.f32 %v3107_v30  ;;  %v3105_v37 = vpop.xlane.xlu0 %3104 }
 0x412   : > { %4545 = vrcp.f32 %v3105_v37  ;;  %v1428_v37 = vsel %vm1427_vm12, %v4612_v63, 1 }
 0x413   : > { %3994 = vmatpush3.bf16.msra.mxu0 %v3179_v28  ;;  %v7685_v28 = vld [vmem:[#allocation96_spill] sm:$0xff] }
 0x414   : > { %v3111_v8 = vpop.xlane.xlu1 %3110 }
 0x415   : > { %4547 = vrcp.f32 %v3111_v8  ;;  %v3109_v32 = vpop.xlane.xlu0 %3108 }
 0x416   : > { %4549 = vrcp.f32 %v3109_v32  ;;  %v1430_v32 = vsel %vm1429_vm1, %v4613_v24, 1 }
 0x417   : > { %v4540_v58 = vpop.eup %4539  ;;  %v1455_v40 = vcvt.s32.f32 %v1430_v32 }
 0x418   : > { %v4542_v60 = vpop.eup %4541  ;;  %v3115_v47 = vpop.xlane.xlu1 %3114  ;;  %v3149_v15 = vmul.f32 %v4540_v58, %v6604_v2 }
 0x419   : > { %4551 = vrcp.f32 %v3115_v47  ;;  %v3113_v27 = vpop.xlane.xlu0 %3112  ;;  %v3148_v49 = vmul.f32 %v4542_v60, %v6606_v19  ;;  %v4615_v47 = vld [vmem:[%s4830_s17 + $0x40] sm:$0xff] }
 0x41a   : > { %4553 = vrcp.f32 %v3113_v27  ;;  %vm1433_vm0 = vcmp.gt.s32.totalorder %v4615_v47, 1  ;;  %v1454_v27 = vcvt.s32.f32 %v1428_v37 }
 0x41b   : > { %v4544_v43 = vpop.eup %4543  ;;  %v3164_v31 = vpack.c.bf16 %v3149_v15, %v3148_v49 }
 0x41c   : > { %v4546_v22 = vpop.eup %4545  ;;  %v3151_v17 = vmul.f32 %v4544_v43, %v6612_v10  ;;  %v3119_v2 = vpop.xlane.xlu1 %3118  ;;  %v1451_v10 = vcvt.s32.f32 %v1422_v55 }
 0x41d   : > { %v3150_v41 = vmul.f32 %v4546_v22, %v6614_v38  ;;  %4555 = vrcp.f32 %v3119_v2  ;;  %3995 = vmatprep.mubr.bf16.mxu0 %v3164_v31  ;;  %v3117_v19 = vpop.xlane.xlu0 %3116  ;;  %v1432_v22 = vsel %vm1431_vm15, %v4614_v4, 1  ;;  %v4616_v2 = vld [vmem:[%s4830_s17 + $0x48] sm:$0xff] }
 0x41e   : > { %4557 = vrcp.f32 %v3117_v19  ;;  %vm1435_vm10 = vcmp.gt.s32.totalorder %v4616_v2, 1 }
 0x41f   : > { %v4548_v18 = vpop.eup %4547  ;;  %v3165_v0 = vpack.c.bf16 %v3151_v17, %v3150_v41  ;;  %4559 = vrcp.f32 %v1450_v44  ;;  %v1434_v17 = vsel %vm1433_vm0, %v4615_v47, 1  ;;  %v4617_v41 = vld [vmem:[%s4830_s17 + $0x50] sm:$0xff]  ;;  %v1436_v11 = vsel %vm1435_vm10, %v4616_v2, 1 }
 0x420   : > { %v4550_v36 = vpop.eup %4549  ;;  %v3123_v20 = vpop.xlane.xlu1 %3122  ;;  %v3153_v5 = vmul.f32 %v4548_v18, %v6620_v13  ;;  %vm1437_vm8 = vcmp.gt.s32.totalorder %v4617_v41, 1 }
 0x421   : > { %4561 = vrcp.f32 %v3123_v20  ;;  %3996 = vmatmul.mubr.bf16.vlgmr.msra.gmra.mrb[32].mxu0 %v3165_v0  ;;  %v3121_v38 = vpop.xlane.xlu0 %3120  ;;  %v3152_v54 = vmul.f32 %v4550_v36, %v6622_v3  ;;  %v1456_v0 = vcvt.s32.f32 %v1432_v22  ;;  %v1438_v63 = vsel %vm1437_vm8, %v4617_v41, 1 }
 0x422   : > { %4563 = vrcp.f32 %v3121_v38  ;;  %v1457_v38 = vcvt.s32.f32 %v1434_v17 }
 0x423   : > { %v4552_v62 = vpop.eup %4551  ;;  %4565 = vrcp.f32 %v1449_v50  ;;  %v3166_v59 = vpack.c.bf16 %v3153_v5, %v3152_v54 }
 0x424   : > { %v4554_v7 = vpop.eup %4553  ;;  %4567 = vrcp.f32 %v1451_v10  ;;  %v3127_v13 = vpop.xlane.xlu1 %3126  ;;  %v3155_v42 = vmul.f32 %v4552_v62, %v7684_v12  ;;  %v7689_v10 = vld [vmem:[#allocation79_spill] sm:$0xff] }
 0x425   : > { %4569 = vrcp.f32 %v3127_v13  ;;  %3999 = vmatprep.mubr.bf16.mxu0 %v3166_v59  ;;  %v3125_v3 = vpop.xlane.xlu0 %3124  ;;  %v3154_v30 = vmul.f32 %v4554_v7, %v7685_v28  ;;  %v4619_v13 = vld [vmem:[%s4830_s17 + $0x60] sm:$0xff]  ;;  %v7692_v28 = vld [vmem:[#allocation100_spill] sm:$0xff] }
 0x426   : > { %4571 = vrcp.f32 %v3125_v3  ;;  %vm1441_vm2 = vcmp.gt.s32.totalorder %v4619_v13, 1 }
 0x427   : > { %v4556_v8 = vpop.eup %4555  ;;  %4573 = vrcp.f32 %v1453_v46  ;;  %v3167_v58 = vpack.c.bf16 %v3155_v42, %v3154_v30  ;;  %v4618_v46 = vld [vmem:[%s4830_s17 + $0x58] sm:$0xff] }
 0x428   : > { %v4558_v60 = vpop.eup %4557  ;;  %4575 = vrcp.f32 %v1452_v6  ;;  %v3131_v15 = vpop.xlane.xlu1 %3130  ;;  %v3157_v9 = vmul.f32 %v4556_v8, %v7686_v21  ;;  %vm1439_vm14 = vcmp.gt.s32.totalorder %v4618_v46, 1  ;;  %v1458_v8 = vcvt.s32.f32 %v1436_v11  ;;  %v4622_v11 = vld [vmem:[%s4830_s17 + $0x78] sm:$0xff] }
 0x429   : > { %4577 = vrcp.f32 %v3131_v15  ;;  %4000 = vmatmul.mubr.bf16.gmra.mrb[36].mxu0 %v3167_v58  ;;  %v3129_v49 = vpop.xlane.xlu0 %3128  ;;  %v3156_v43 = vmul.f32 %v4558_v60, %v7687_v33  ;;  %v6870_v31 = vpop.eup %4559  ;;  %v7693_v58 = vld [vmem:[#allocation101_spill] sm:$0xff]  ;;  %v1440_v15 = vsel %vm1439_vm14, %v4618_v46, 1  ;;  %v1459_v21 = vcvt.s32.f32 %v1438_v63 }
 0x42a   : > { %4579 = vrcp.f32 %v3129_v49  ;;  %v4620_v49 = vld [vmem:[%s4830_s17 + $0x68] sm:$0xff]  ;;  %v1460_v41 = vcvt.s32.f32 %v1440_v15  ;;  %vm1447_vm15 = vcmp.gt.s32.totalorder %v4622_v11, 1 }
 0x42b   : > { %v4562_v44 = vpop.eup %4561  ;;  %v3168_v51 = vpack.c.bf16 %v3157_v9, %v3156_v43  ;;  %4581 = vrcp.f32 %v1454_v27  ;;  %v1442_v27 = vsel %vm1441_vm2, %v4619_v13, 1  ;;  %vm1443_vm12 = vcmp.gt.s32.totalorder %v4620_v49, 1 }
 0x42c   : > { %v4564_v55 = vpop.eup %4563  ;;  %v2291_v19 = vpop.permute.xlu1 %2290  ;;  %v3159_v18 = vmul.f32 %v4562_v44, %v7688_v53  ;;  %4583 = vrcp.f32 %v1455_v40  ;;  %v4621_v44 = vld [vmem:[%s4830_s17 + $0x70] sm:$0xff]  ;;  %s4659_s17 = sshll.u32 %s4733_s16, 4  ;;  %s4660_s17 = int_to_ptr.vmem [resolvable:$false] %s4659_s17 }
 0x42d   : > { %v6875_v50 = vpop.eup %4565  ;;  %4003 = vmatprep.mubr.bf16.mxu0 %v3168_v51  ;;  %v2337_v36 = vmul.f32 %v6870_v31, %v2291_v19  ;;  %v2289_v23 = vpop.permute.xlu0 %2288  ;;  %v3158_v20 = vmul.f32 %v4564_v55, %v7689_v10  ;;  %4585 = vrcp.f32 %v1456_v0  ;;  %vm1445_vm1 = vcmp.gt.s32.totalorder %v4621_v44, 1  ;;  %v7695_v51 = vld [vmem:[#allocation83_spill] sm:$0xff]  ;;  %s4661_s19 = scalar_lea.vmem %s4660_s17, 512  ;;  %p4662_p0 = scmp.lt.s32.totalorder %s7179_s5, %s4660_s17 }
 0x42e   : > { %v6879_v5 = vpop.eup %4567  ;;  %v2336_v54 = vmul.f32 %v6875_v50, %v2289_v23  ;;  %4587 = vrcp.f32 %v1457_v38  ;;  %v1461_v23 = vcvt.s32.f32 %v1442_v27  ;;  %p4663_p1 = scmp.lt.s32.totalorder %s4661_s19, %s4655_s11 }
 0x42f   : > { %v4570_v62 = vpop.eup %4569  ;;  %v2353_v7 = vsel %vm5501_vm5, %v2337_v36, 0.0  ;;  %v3169_v6 = vpack.c.bf16 %v3159_v18, %v3158_v20  ;;  %4589 = vrcp.f32 %v1458_v8  ;;  %v7696_v18 = vld [vmem:[#allocation86_spill] sm:$0xff]  ;;  %v1444_v36 = vsel %vm1443_vm12, %v4620_v49, 1 }
 0x430   : > { %v4572_v24 = vpop.eup %4571  ;;  %v2352_v42 = vsel %vm5467_vm3, %v2336_v54, 0.0  ;;  %v2293_v3 = vpop.permute.xlu1 %2292  ;;  %2375 = vperm.xlu0 %4328, %v2353_v7   ;;  %v3161_v30 = vmul.f32 %v4570_v62, %v7692_v28  ;;  %4591 = vrcp.f32 %v1459_v21  ;;  %v1446_v20 = vsel %vm1445_vm1, %v4621_v44, 1  ;;  %p4664_p2 = por %p4663_p1, %p4662_p0 }
 0x431   : > { %v6891_v37 = vpop.eup %4573  ;;  %4004 = vmatmul.mubr.bf16.gmra.mrb[40].mxu0 %v3169_v6  ;;  %v2338_v32 = vmul.f32 %v6879_v5, %v2293_v3  ;;  %2370 = vperm.xlu1 %4327, %v2352_v42   ;;  %v2295_v4 = vpop.permute.xlu0 %2294  ;;  %v3160_v60 = vmul.f32 %v4572_v24, %v7693_v58  ;;  %4593 = vrcp.f32 %v1460_v41  ;;  %v1462_v13 = vcvt.s32.f32 %v1444_v36 }
 0x432   : > { %v6895_v47 = vpop.eup %4575  ;;  %4595 = vrcp.f32 %v1461_v23  ;;  %v1448_v28 = vsel %vm1447_vm15, %v4622_v11, 1  ;;  %p4665_p3 = pnand %p4664_p2, %p4658_p13 }
 0x433   : > { %v4578_v9 = vpop.eup %4577  ;;  %v2354_v43 = vsel %vm5526_vm7, %v2338_v32, 0.0  ;;  %v3170_v22 = vpack.c.bf16 %v3161_v30, %v3160_v60  ;;  %v2339_v17 = vmul.f32 %v6895_v47, %v2295_v4  ;;  %v1463_v30 = vcvt.s32.f32 %v1446_v20  ;;  %v7706_v20 = vld [vmem:[#allocation70_spill] sm:$0xff] }
 0x434   : > { %v4580_v40 = vpop.eup %4579  ;;  %v2297_v2 = vpop.permute.xlu1 %2296  ;;  %v3163_v55 = vmul.f32 %v4578_v9, %v7695_v51  ;;  %4597 = vrcp.f32 %v1462_v13  ;;  %v1464_v27 = vcvt.s32.f32 %v1448_v28  ;;  %vm7707_vm8 = vnez %v7706_v20  ;;  %v7708_v13 = vld [vmem:[#allocation84_spill] sm:$0xff]  ;;  %v7710_v28 = vld [vmem:[#allocation14_spill] sm:$0xff] }
 0x435   : > { %4007 = vmatprep.mubr.bf16.mxu0 %v3170_v22  ;;  %v2340_v19 = vmul.f32 %v6891_v37, %v2297_v2  ;;  %2380 = vperm.xlu1 %4327, %v2354_v43   ;;  %v2299_v53 = vpop.permute.xlu0 %2298  ;;  %v3162_v0 = vmul.f32 %v4580_v40, %v7696_v18  ;;  %v6908_v10 = vpop.eup %4581  ;;  %v2355_v7 = vsel %vm5490_vm4, %v2339_v17, 0.0  ;;  %4599 = vrcp.f32 %v1463_v30  ;;  %v7702_v2 = vld [vmem:[#allocation64_spill] sm:$0xff] }
 0x436   : > { %v6913_v63 = vpop.eup %4583  ;;  %v2341_v6 = vmul.f32 %v6908_v10, %v2299_v53  ;;  %vm7703_vm0 = vnez %v7702_v2  ;;  %4601 = vrcp.f32 %v1464_v27  ;;  %vm7709_vm14 = vnez %v7708_v13 }
 0x437   : > { %v2356_v54 = vsel %vm5564_vm9, %v2340_v19, 0.0  ;;  %v3171_v62 = vpack.c.bf16 %v3163_v55, %v3162_v0  ;;  %v6919_v8 = vpop.eup %4585  ;;  %v7704_v0 = vld [vmem:[#allocation80_spill] sm:$0xff]  ;;  %vm7711_vm2 = vnez %v7710_v28  ;;  %v1484_v12 = vmul.f32 %v6895_v47, %v6719_v57 }
 0x438   : > { %v2301_v24 = vpop.permute.xlu1 %2300  ;;  %2390 = vperm.xlu0 %4328, %v2356_v54   ;;  %v6923_v58 = vpop.eup %4587  ;;  %v2357_v15 = vsel %vm5516_vm6, %v2341_v6, 0.0  ;;  %vm7705_vm10 = vnez %v7704_v0 }
 0x439   : > { %4008 = vmatmul.mubr.bf16.gmra.mrb[44].mxu0 %v3171_v62  ;;  %v2342_v42 = vmul.f32 %v6913_v63, %v2301_v24  ;;  %2385 = vperm.xlu1 %4327, %v2355_v7   ;;  %v2303_v3 = vpop.permute.xlu0 %2302  ;;  %v6929_v22 = vpop.eup %4589 }
 0x43a   : > { %v2343_v21 = vmul.f32 %v6919_v8, %v2303_v3  ;;  %v6933_v17 = vpop.eup %4591 }
 0x43b   : > { %v2358_v4 = vsel %vm5604_vm11, %v2342_v42, 0.0  ;;  %v6939_v18 = vpop.eup %4593  ;;  %v1491_v2 = vmul.f32 %v6933_v17, %v6744_v52 }
 0x43c   : > { %v2305_v9 = vpop.permute.xlu1 %2304  ;;  %2400 = vperm.xlu0 %4328, %v2358_v4   ;;  %v2359_v51 = vsel %vm7703_vm0, %v2343_v21, 0.0  ;;  %v6943_v23 = vpop.eup %4595 }
 0x43d   : > { %v2344_v49 = vmul.f32 %v6923_v58, %v2305_v9  ;;  %2395 = vperm.xlu1 %4327, %v2357_v15   ;;  %v2307_v43 = vpop.permute.xlu0 %2306 }
 0x43e   : > { %v2345_v55 = vmul.f32 %v6929_v22, %v2307_v43  ;;  %v6949_v24 = vpop.eup %4597 }
 0x43f   : > { %v2360_v44 = vsel %vm5645_vm13, %v2344_v49, 0.0  ;;  %v6953_v3 = vpop.eup %4599  ;;  %v7712_v49 = vld [vmem:[#allocation90_spill] sm:$0xff]  ;;  %v1494_v52 = vmul.f32 %v6949_v24, %v6764_v35 }
 0x440   : > { %v2309_v41 = vpop.permute.xlu1 %2308  ;;  %2410 = vperm.xlu0 %4328, %v2360_v44   ;;  %v2361_v11 = vsel %vm7707_vm8, %v2345_v55, 0.0  ;;  %v6959_v27 = vpop.eup %4601  ;;  %vm7713_vm12 = vnez %v7712_v49  ;;  %v7714_v44 = vld [vmem:[#allocation19_spill] sm:$0xff]  ;;  %v1495_v0 = vmul.f32 %v6953_v3, %v6760_v61 }
 0x441   : > { %v2346_v19 = vmul.f32 %v6933_v17, %v2309_v41  ;;  %2405 = vperm.xlu1 %4327, %v2359_v51   ;;  %v2311_v53 = vpop.permute.xlu0 %2310  ;;  %vm7715_vm1 = vnez %v7714_v44 }
 0x442   : > { %v2347_v54 = vmul.f32 %v6939_v18, %v2311_v53  ;;  %v1511_v35 = vsel %vm7713_vm12, %v1495_v0, 0.0 }
 0x443   : > { %v2362_v36 = vsel %vm7705_vm10, %v2346_v19, 0.0  ;;  %v7716_v19 = vld [vmem:[#allocation102_spill] sm:$0xff] }
 0x444   : > { %v2313_v62 = vpop.permute.xlu1 %2312  ;;  %2420 = vperm.xlu0 %4328, %v2362_v36   ;;  %v2363_v30 = vsel %vm7711_vm2, %v2347_v54, 0.0  ;;  %v1481_v53 = vmul.f32 %v6875_v50, %v7716_v19  ;;  %v7720_v19 = vmov 2  }
 0x445   : > { %v2348_v7 = vmul.f32 %v6943_v23, %v2313_v62  ;;  %2415 = vperm.xlu1 %4327, %v2361_v11   ;;  %v2315_v6 = vpop.permute.xlu0 %2314  ;;  %v7717_v11 = vld [vmem:[#allocation85_spill] sm:$0xff]  ;;  %v7719_v62 = vmov 0  }
 0x446   : > { %v2349_v4 = vmul.f32 %v6949_v24, %v2315_v6  ;;  %vm7718_vm15 = vnez %v7717_v11  ;;  %v1485_v6 = vmul.f32 %v6891_v37, %v6714_v48 }
 0x447   : > { %v2364_v42 = vsel %vm7709_vm14, %v2348_v7, 0.0  ;;  %v1497_v7 = vsel %vm5467_vm3, %v1481_v53, 0.0  ;;  %v1483_v53 = vmul.f32 %v6879_v5, %v6700_v16 }
 0x448   : > { %v2317_v15 = vpop.permute.xlu1 %2316  ;;  %2430 = vperm.xlu0 %4328, %v2364_v42   ;;  %v2365_v51 = vsel %vm7715_vm1, %v2349_v4, 0.0  ;;  %v1482_v42 = vmul.f32 %v6870_v31, %v6690_v39 }
 0x449   : > { %v2350_v21 = vmul.f32 %v6953_v3, %v2317_v15  ;;  %2425 = vperm.xlu1 %4327, %v2363_v30   ;;  %v2319_v9 = vpop.permute.xlu0 %2318  ;;  %v1501_v15 = vsel %vm5564_vm9, %v1485_v6, 0.0 }
 0x44a   : > { %v2351_v55 = vmul.f32 %v6959_v27, %v2319_v9  ;;  %v1498_v9 = vsel %vm5501_vm5, %v1482_v42, 0.0 }
 0x44b   : > { %v2366_v43 = vsel %vm7713_vm12, %v2350_v21, 0.0  ;;  %v1489_v21 = vmul.f32 %v6923_v58, %v6735_v25 }
 0x44c   : > { %v3278_v41 = vpop.permute.xlu1 %3277  ;;  %2440 = vperm.xlu0 %4328, %v2366_v43   ;;  %v2367_v54 = vsel %vm7718_vm15, %v2351_v55, 0.0 }
 0x44d   : > { %2435 = vperm.xlu1 %4327, %v2365_v51   ;;  %v3280_v36 = vpop.permute.xlu0 %3279  ;;  %v3325_v48 = vmul.f32 %v6875_v50, %v3278_v41  ;;  %v1505_v39 = vsel %vm5645_vm13, %v1489_v21, 0.0  ;;  %v1493_v51 = vmul.f32 %v6943_v23, %v6752_v1  ;;  %v1499_v1 = vsel %vm5526_vm7, %v1483_v53, 0.0 }
 0x44e   : > { %v3326_v41 = vmul.f32 %v6870_v31, %v3280_v36  ;;  %v1500_v31 = vsel %vm5490_vm4, %v1484_v12, 0.0  ;;  %v4732_v53 = vmov 1.0  }
 0x44f   : > { %v3341_v25 = vsel %vm5467_vm3, %v3325_v48, 0.0  ;;  %v1509_v50 = vsel %vm7709_vm14, %v1493_v51, 0.0 }
 0x450   : > { %4329 = vset.pattern.permute.xlu0 %v7719_v62  ;;  %v3282_v30 = vpop.permute.xlu1 %3281  ;;  %v3342_v16 = vsel %vm5501_vm5, %v3326_v41, 0.0 }
 0x451   : > { %2445 = vperm.xlu1 %4327, %v2367_v54   ;;  %1515 = vperm.xlu0 %4329, %v1497_v7   ;;  %v3284_v4 = vpop.permute.xlu0 %3283  ;;  %v3327_v6 = vmul.f32 %v6879_v5, %v3282_v30 }
 0x452   : > { %v3328_v36 = vmul.f32 %v6895_v47, %v3284_v4  ;;  %v1486_v47 = vmul.f32 %v6908_v10, %v6731_v29  ;;  %v7722_v29 = vld [vmem:[#allocation24_spill] sm:$0xff] }
 0x453   : > { %v3343_v57 = vsel %vm5526_vm7, %v3327_v6, 0.0  ;;  %v1490_v6 = vmul.f32 %v6929_v22, %v6748_v26  ;;  %v1507_v26 = vsel %vm7705_vm10, %v1491_v2, 0.0 }
 0x454   : > { %v3286_v43 = vpop.permute.xlu1 %3285  ;;  %v3344_v5 = vsel %vm5490_vm4, %v3328_v36, 0.0  ;;  %v1502_v48 = vsel %vm5516_vm6, %v1486_v47, 0.0 }
 0x455   : > { %4330 = vset.pattern.permute.xlu1 %v7719_v62  ;;  %1535 = vperm.xlu0 %4329, %v1501_v15   ;;  %v3288_v55 = vpop.permute.xlu0 %3287 }
 0x456   : > { %1520 = vperm.xlu1 %4330, %v1498_v9   ;;  %v3330_v15 = vmul.f32 %v6908_v10, %v3288_v55 }
 0x458   : > { %v3290_v54 = vpop.permute.xlu1 %3289  ;;  %v3346_v59 = vsel %vm5516_vm6, %v3330_v15, 0.0 }
 0x459   : > { %1555 = vperm.xlu0 %4329, %v1505_v39   ;;  %v3292_v7 = vpop.permute.xlu0 %3291  ;;  %v3331_v30 = vmul.f32 %v6913_v63, %v3290_v54  ;;  %v3329_v39 = vmul.f32 %v6891_v37, %v3286_v43  ;;  %v1487_v43 = vmul.f32 %v6913_v63, %v6726_v56 }
 0x45a   : > { %4331 = vset.pattern.permute.xlu1 %v7720_v19 }
 0x45b   : > { %3359 = vperm.xlu1 %4331, %v3341_v25   ;;  %v3347_v9 = vsel %vm5604_vm11, %v3331_v30, 0.0  ;;  %v7721_v25 = vld [vmem:[#allocation104_spill] sm:$0xff]  ;;  %v3345_v37 = vsel %vm5564_vm9, %v3329_v39, 0.0  ;;  %v1503_v38 = vsel %vm5604_vm11, %v1487_v43, 0.0 }
 0x45c   : > { %v3294_v42 = vpop.permute.xlu1 %3293  ;;  %vm797_vm3 = vcmp.eq.s32.totalorder %v7722_v29, %v7721_v25 }
 0x45d   : > { %1575 = vperm.xlu0 %4329, %v1509_v50   ;;  %v3296_v21 = vpop.permute.xlu0 %3295  ;;  %3941 = vmatprep.mubr.msk.f32.mxu1 %vm797_vm3, %v4732_v53 }
 0x45e   : > { %v3334_v46 = vmul.f32 %v6929_v22, %v3296_v21  ;;  %4043 = vmatprep.mubr.msk.f32.mxu0 %vm797_vm3, %v4732_v53  ;;  %v1492_v22 = vmul.f32 %v6939_v18, %v6756_v34  ;;  %v1510_v34 = vsel %vm7715_vm1, %v1494_v52, 0.0 }
 0x45f   : > { %4332 = vset.pattern.permute.xlu1 %v7719_v62 }
 0x460   : > { %1525 = vperm.xlu1 %4332, %v1499_v1   ;;  %v3298_v33 = vpop.permute.xlu1 %3297  ;;  %v3350_v10 = vsel %vm7707_vm8, %v3334_v46, 0.0  ;;  %v1488_v1 = vmul.f32 %v6919_v8, %v6740_v14 }
 0x461   : > { %4342 = vset.pattern.permute.xlu0 %v7720_v19  ;;  %v3300_v4 = vpop.permute.xlu0 %3299  ;;  %v3335_v55 = vmul.f32 %v6933_v17, %v3298_v33 }
 0x462   : > { %3364 = vperm.xlu0 %4342, %v3342_v16   ;;  %v1504_v63 = vsel %vm7703_vm0, %v1488_v1, 0.0  ;;  %v3332_v16 = vmul.f32 %v6919_v8, %v3292_v7  ;;  %v3333_v8 = vmul.f32 %v6923_v58, %v3294_v42  ;;  %v1508_v58 = vsel %vm7711_vm2, %v1492_v22, 0.0 }
 0x463   : > { %v3351_v50 = vsel %vm7705_vm10, %v3335_v55, 0.0  ;;  %v3336_v40 = vmul.f32 %v6939_v18, %v3300_v4 }
 0x464   : > { %1530 = vperm.xlu1 %4332, %v1500_v31   ;;  %v3302_v51 = vpop.permute.xlu1 %3301  ;;  %v3348_v14 = vsel %vm7703_vm0, %v3332_v16, 0.0  ;;  %v1506_v31 = vsel %vm7707_vm8, %v1490_v6, 0.0  ;;  %v3349_v7 = vsel %vm5645_vm13, %v3333_v8, 0.0 }
 0x465   : > { %v3304_v60 = vpop.permute.xlu0 %3303  ;;  %v3352_v20 = vsel %vm7711_vm2, %v3336_v40, 0.0  ;;  %v3337_v17 = vmul.f32 %v6943_v23, %v3302_v51 }
 0x466   : > { %3369 = vperm.xlu0 %4342, %v3343_v57   ;;  %v3338_v41 = vmul.f32 %v6949_v24, %v3304_v60  ;;  %v1496_v24 = vmul.f32 %v6959_v27, %v6771_v45 }
 0x467   : > { %v3353_v18 = vsel %vm7709_vm14, %v3337_v17, 0.0 }
 0x468   : > { %4333 = vset.pattern.permute.xlu1 %v7720_v19  ;;  %v3306_v54 = vpop.permute.xlu1 %3305  ;;  %v3354_v12 = vsel %vm7715_vm1, %v3338_v41, 0.0  ;;  %v1512_v42 = vsel %vm7718_vm15, %v1496_v24, 0.0 }
 0x469   : > { %3374 = vperm.xlu1 %4333, %v3344_v5   ;;  %v3339_v56 = vmul.f32 %v6953_v3, %v3306_v54  ;;  %v3308_v23 = vpop.permute.xlu0 %3307 }
 0x46a   : > { %3384 = vperm.xlu0 %4342, %v3346_v59   ;;  %v3340_v61 = vmul.f32 %v6959_v27, %v3308_v23 }
 0x46b   : > { %v3355_v32 = vsel %vm7713_vm12, %v3339_v56, 0.0 }
 0x46c   : > { %v3356_v3 = vsel %vm7718_vm15, %v3340_v61, 0.0 }
 0x46d   : > { %4334 = vset.pattern.permute.xlu1 %v7719_v62 }
 0x46e   : > { %1540 = vperm.xlu1 %4334, %v1502_v48   ;;  %3389 = vperm.xlu0 %4342, %v3347_v9  }
 0x472   : > { %4335 = vset.pattern.permute.xlu1 %v7720_v19  ;;  %3404 = vperm.xlu0 %4342, %v3350_v10  }
 0x473   : > { %3379 = vperm.xlu1 %4335, %v3345_v37  }
 0x476   : > { %3409 = vperm.xlu0 %4342, %v3351_v50  }
 0x477   : > { %4336 = vset.pattern.permute.xlu1 %v7719_v62 }
 0x478   : > { %1545 = vperm.xlu1 %4336, %v1503_v38  }
 0x47a   : > { %3424 = vperm.xlu0 %4342, %v3354_v12  }
 0x47c   : > { %1550 = vperm.xlu1 %4336, %v1504_v63  }
 0x47e   : > { %3429 = vperm.xlu0 %4342, %v3355_v32  }
 0x480   : > { %4337 = vset.pattern.permute.xlu1 %v7720_v19 }
 0x481   : > { %3394 = vperm.xlu1 %4337, %v3348_v14  }
 0x485   : > { %4338 = vset.pattern.permute.xlu1 %v7719_v62 }
 0x486   : > { %1560 = vperm.xlu1 %4338, %v1506_v31  }
 0x48a   : > { %4339 = vset.pattern.permute.xlu1 %v7720_v19 }
 0x48b   : > { %3399 = vperm.xlu1 %4339, %v3349_v7  }
 0x48f   : > { %4340 = vset.pattern.permute.xlu1 %v7719_v62 }
 0x490   : > { %1565 = vperm.xlu1 %4340, %v1507_v26  }
 0x494   : > { %1570 = vperm.xlu1 %4340, %v1508_v58  }
 0x498   : > { %4341 = vset.pattern.permute.xlu1 %v7720_v19 }
 0x499   : > { %3414 = vperm.xlu1 %4341, %v3352_v20  }
 0x49d   : > { %4343 = vset.pattern.permute.xlu1 %v7719_v62 }
 0x49e   : > { %1580 = vperm.xlu1 %4343, %v1510_v34  }
 0x4a2   : > { %4344 = vset.pattern.permute.xlu1 %v7720_v19 }
 0x4a3   : > { %3419 = vperm.xlu1 %4344, %v3353_v18  }
 0x4a7   : > { %4345 = vset.pattern.permute.xlu1 %v7719_v62 }
 0x4a8   : > { %v7102_v28 = vpop.f32.mrb[0].mxu1  ;;  %1585 = vperm.xlu1 %4345, %v1511_v35  }
 0x4a9   : > { %v1354_v13 = vpop.f32.mrb[1].mxu1 }
 0x4aa   : > { %v7104_v44 = vpop.f32.mrb[2].mxu1 }
 0x4ab   : > { %v1357_v36 = vpop.f32.mrb[3].mxu1 }
 0x4ac   : > { %1590 = vperm.xlu1 %4345, %v1512_v42  }
 0x4af   : > { %v2376_v15 = vpop.permute.xlu0 %2375 }
 0x4b0   : > { %v7111_v49 = vpop.f32.mrb[4].mxu1  ;;  %v2371_v45 = vpop.permute.xlu1 %2370  ;;  %4346 = vset.pattern.permute.xlu1 %v7720_v19 }
 0x4b1   : > { %v7114_v62 = vpop.f32.mrb[5].mxu1  ;;  %3434 = vperm.xlu1 %4346, %v3356_v3  }
 0x4b2   : > { %v7116_v57 = vpop.f32.mrb[6].mxu1 }
 0x4b3   : > { %v7118_v21 = vpop.f32.mrb[7].mxu1 }
 0x4b4   : > { %v2381_v5 = vpop.permute.xlu1 %2380 }
 0x4b7   : > { %v2391_v59 = vpop.permute.xlu0 %2390 }
 0x4b8   : > { %v7120_v27 = vpop.f32.mrb[8].mxu1  ;;  %v2386_v30 = vpop.permute.xlu1 %2385 }
 0x4b9   : > { %v7122_v11 = vpop.f32.mrb[9].mxu1 }
 0x4ba   : > { %v7124_v47 = vpop.f32.mrb[10].mxu1 }
 0x4bb   : > { %v7126_v33 = vpop.f32.mrb[11].mxu1  ;;  %v2401_v19 = vpop.permute.xlu0 %2400 }
 0x4bc   : > { %v2396_v4 = vpop.permute.xlu1 %2395 }
 0x4bf   : > { %v2411_v9 = vpop.permute.xlu0 %2410 }
 0x4c0   : > { %v7128_v46 = vpop.f32.mrb[12].mxu1  ;;  %v2406_v48 = vpop.permute.xlu1 %2405 }
 0x4c1   : > { %v7130_v39 = vpop.f32.mrb[13].mxu1 }
 0x4c2   : > { %v7132_v51 = vpop.f32.mrb[14].mxu1 }
 0x4c3   : > { %v7134_v10 = vpop.f32.mrb[15].mxu1  ;;  %v2421_v55 = vpop.permute.xlu0 %2420 }
 0x4c4   : > { %v2416_v37 = vpop.permute.xlu1 %2415 }
 0x4c7   : > { %v7136_v60 = vpop.permute.xlu0 %2430 }
 0x4c8   : > { %v2426_v43 = vpop.permute.xlu1 %2425 }
 0x4c9   : > { %v3895_v50 = vpop.f32.mrb[16].mxu0 }
 0x4ca   : > { %v2209_v41 = vpop.f32.mrb[17].mxu0  ;;  %v2450_v38 = vmul.f32 %v3895_v50, %v2381_v5 }
 0x4cb   : > { %v3896_v54 = vpop.f32.mrb[18].mxu0  ;;  %v2448_v63 = vmul.f32 %v2371_v45, %v2209_v41  ;;  %v2441_v32 = vpop.permute.xlu0 %2440 }
 0x4cc   : > { %v2451_v1 = vmul.f32 %v3896_v54, %v2386_v30  ;;  %v2212_v12 = vpop.f32.mrb[19].mxu0  ;;  %v2436_v56 = vpop.permute.xlu1 %2435 }
 0x4cd   : > { %v2449_v16 = vmul.f32 %v2376_v15, %v2212_v12 }
 0x4ce   : > { %v4058_v14 = vpack.c.bf16 %v2451_v1, %v2450_v38 }
 0x4cf   : > { %v4054_v6 = vpack.c.bf16 %v2449_v16, %v2448_v63 }
 0x4d0   : > { %v2446_v31 = vpop.permute.xlu1 %2445  ;;  %v1516_v2 = vpop.permute.xlu0 %1515 }
 0x4d1   : > { %v3899_v8 = vpop.f32.mrb[20].mxu0  ;;  %4055 = vmatprep.subr.bf16.mxu1 %v4054_v6  ;;  %v1593_v17 = vmul.f32 %v1516_v2, %v1354_v13 }
 0x4d2   : > { %v2225_v7 = vpop.f32.mrb[21].mxu0  ;;  %4057 = vmatpush3.bf16.msra.mxu1 %v4054_v6  ;;  %v2454_v22 = vmul.f32 %v3899_v8, %v2401_v19 }
 0x4d3   : > { %v3900_v26 = vpop.f32.mrb[22].mxu0  ;;  %4059 = vmatprep.subr.bf16.mxu1 %v4058_v14  ;;  %v2452_v20 = vmul.f32 %v2391_v59, %v2225_v7 }
 0x4d4   : > { %v2455_v58 = vmul.f32 %v3900_v26, %v2406_v48  ;;  %v2228_v40 = vpop.f32.mrb[23].mxu0  ;;  %v1536_v45 = vpop.permute.xlu0 %1535 }
 0x4d5   : > { %v2453_v52 = vmul.f32 %v2396_v4, %v2228_v40  ;;  %v1521_v34 = vpop.permute.xlu1 %1520 }
 0x4d6   : > { %v4066_v18 = vpack.c.bf16 %v2455_v58, %v2454_v22  ;;  %v1594_v0 = vmul.f32 %v1521_v34, %v1357_v36  ;;  %4061 = vmatpush3.bf16.msra.mxu1 %v4058_v14 }
 0x4d7   : > { %v4062_v35 = vpack.c.bf16 %v2453_v52, %v2452_v20 }
 0x4d8   : > { %v4086_v24 = vpack.c.bf16 %v1594_v0, %v1593_v17  ;;  %v7138_v50 = vpop.permute.xlu0 %1555 }
 0x4d9   : > { %v3903_v23 = vpop.f32.mrb[24].mxu0  ;;  %4063 = vmatprep.subr.bf16.mxu1 %v4062_v35 }
 0x4da   : > { %v2241_v42 = vpop.f32.mrb[25].mxu0  ;;  %4065 = vmatpush3.bf16.msra.mxu1 %v4062_v35  ;;  %v3360_v61 = vpop.permute.xlu1 %3359  ;;  %v2458_v15 = vmul.f32 %v3903_v23, %v2421_v55 }
 0x4db   : > { %v3904_v3 = vpop.f32.mrb[26].mxu0  ;;  %4067 = vmatprep.subr.bf16.mxu1 %v4066_v18  ;;  %v2456_v59 = vmul.f32 %v2411_v9, %v2241_v42 }
 0x4dc   : > { %v2459_v5 = vmul.f32 %v3904_v3, %v2426_v43  ;;  %v2244_v30 = vpop.f32.mrb[27].mxu0  ;;  %v7143_v8 = vpop.permute.xlu0 %1575 }
 0x4dd   : > { %v2457_v19 = vmul.f32 %v2416_v37, %v2244_v30 }
 0x4de   : > { %v4074_v4 = vpack.c.bf16 %v2459_v5, %v2458_v15  ;;  %4069 = vmatpush3.bf16.msra.mxu1 %v4066_v18 }
 0x4df   : > { %v4070_v13 = vpack.c.bf16 %v2457_v19, %v2456_v59  ;;  %v1526_v36 = vpop.permute.xlu1 %1525 }
 0x4e0   : > { %v1595_v1 = vmul.f32 %v7102_v28, %v1526_v36  ;;  %v1597_v28 = vmul.f32 %v1536_v45, %v7114_v62 }
 0x4e1   : > { %v3907_v48 = vpop.f32.mrb[28].mxu0  ;;  %4071 = vmatprep.subr.bf16.mxu1 %v4070_v13 }
 0x4e2   : > { %v2257_v41 = vpop.f32.mrb[29].mxu0  ;;  %4073 = vmatpush3.bf16.msra.mxu1 %v4070_v13  ;;  %v2462_v55 = vmul.f32 %v3907_v48, %v2441_v32  ;;  %v3365_v32 = vpop.permute.xlu0 %3364 }
 0x4e3   : > { %v3908_v54 = vpop.f32.mrb[30].mxu0  ;;  %4075 = vmatprep.subr.bf16.mxu1 %v4074_v4  ;;  %v1531_v38 = vpop.permute.xlu1 %1530  ;;  %v2460_v37 = vmul.f32 %v7136_v60, %v2257_v41 }
 0x4e4   : > { %v2463_v43 = vmul.f32 %v3908_v54, %v2446_v31  ;;  %v2260_v12 = vpop.f32.mrb[31].mxu0  ;;  %v1596_v9 = vmul.f32 %v7104_v44, %v1531_v38  ;;  %v7723_v44 = vld [vmem:[#allocation55_spill] sm:$0xff]  ;;  %v1601_v54 = vmul.f32 %v7138_v50, %v7122_v11 }
 0x4e5   : > { %v2461_v63 = vmul.f32 %v2436_v56, %v2260_v12  ;;  %vm798_vm4 = vcmp.eq.s32.totalorder %v7723_v44, %v7721_v25 }
 0x4e6   : > { %v4082_v16 = vpack.c.bf16 %v2463_v43, %v2462_v55  ;;  %v4090_v14 = vpack.c.bf16 %v1596_v9, %v1595_v1  ;;  %4077 = vmatpush3.bf16.msra.mxu1 %v4074_v4  ;;  %v3370_v62 = vpop.permute.xlu0 %3369 }
 0x4e7   : > { %v4078_v6 = vpack.c.bf16 %v2461_v63, %v2460_v37 }
 0x4e8   : > { %v3375_v7 = vpop.permute.xlu1 %3374 }
 0x4e9   : > { %4079 = vmatprep.subr.bf16.mxu1 %v4078_v6 }
 0x4ea   : > { %4081 = vmatpush3.bf16.msra.mxu1 %v4078_v6  ;;  %v3385_v0 = vpop.permute.xlu0 %3384 }
 0x4eb   : > { %4083 = vmatprep.subr.bf16.mxu1 %v4082_v16 }
 0x4ed   : > { %v1541_v2 = vpop.permute.xlu1 %1540 }
 0x4ee   : > { %v1598_v31 = vmul.f32 %v1541_v2, %v7118_v21  ;;  %4085 = vmatpush3.bf16.msra.mxu1 %v4082_v16  ;;  %v3390_v30 = vpop.permute.xlu0 %3389 }
 0x4ef   : > { %4087 = vmatprep.subr.bf16.mxu1 %v4086_v24 }
 0x4f0   : > { %v4094_v60 = vpack.c.bf16 %v1598_v31, %v1597_v28 }
 0x4f1   : > { %3942 = vmatmul.mubr.msk.f32.vlgmr.msra.gmra.mrb[16].mxu1 %vm798_vm4, %v4732_v53 }
 0x4f2   : > { %4089 = vmatpush3.bf16.msra.mxu1 %v4086_v24  ;;  %v3380_v56 = vpop.permute.xlu1 %3379  ;;  %3976 = vmatprep.mubr.msk.f32.mxu1 %vm797_vm3, %v4732_v53  ;;  %v3405_v12 = vpop.permute.xlu0 %3404 }
 0x4f3   : > { %4091 = vmatprep.subr.bf16.mxu1 %v4090_v14 }
 0x4f4   : > { %v3997_v21 = vpop.f32.mrb[32].mxu0 }
 0x4f5   : > { %v3214_v26 = vpop.f32.mrb[33].mxu0  ;;  %v3439_v58 = vmul.f32 %v3997_v21, %v3370_v62 }
 0x4f6   : > { %4093 = vmatpush3.bf16.msra.mxu1 %v4090_v14  ;;  %v3998_v22 = vpop.f32.mrb[34].mxu0  ;;  %v3437_v34 = vmul.f32 %v3360_v61, %v3214_v26  ;;  %v3410_v31 = vpop.permute.xlu0 %3409 }
 0x4f7   : > { %4095 = vmatprep.subr.bf16.mxu1 %v4094_v60  ;;  %v3440_v40 = vmul.f32 %v3998_v22, %v3375_v7  ;;  %v3217_v20 = vpop.f32.mrb[35].mxu0  ;;  %v1546_v52 = vpop.permute.xlu1 %1545  ;;  %v1605_v22 = vmul.f32 %v7143_v8, %v7130_v39 }
 0x4f8   : > { %v3438_v17 = vmul.f32 %v3365_v32, %v3217_v20  ;;  %v1599_v29 = vmul.f32 %v7111_v49, %v1546_v52 }
 0x4f9   : > { %v4122_v18 = vpack.c.bf16 %v3440_v40, %v3439_v58 }
 0x4fa   : > { %v4118_v35 = vpack.c.bf16 %v3438_v17, %v3437_v34  ;;  %4097 = vmatpush3.bf16.msra.mxu1 %v4094_v60 }
 0x4fb   : > { %v1551_v24 = vpop.permute.xlu1 %1550 }
 0x4fc   : > { %v1600_v23 = vmul.f32 %v7116_v57, %v1551_v24  ;;  %v4001_v42 = vpop.f32.mrb[36].mxu0  ;;  %4119 = vmatprep.subr.bf16.mxu0 %v4118_v35 }
 0x4fd   : > { %v3230_v3 = vpop.f32.mrb[37].mxu0  ;;  %4121 = vmatpush3.bf16.msra.mxu0 %v4118_v35  ;;  %v3443_v4 = vmul.f32 %v4001_v42, %v3390_v30 }
 0x4fe   : > { %v4098_v45 = vpack.c.bf16 %v1600_v23, %v1599_v29  ;;  %v4002_v15 = vpop.f32.mrb[38].mxu0  ;;  %4123 = vmatprep.subr.bf16.mxu0 %v4122_v18  ;;  %v3441_v61 = vmul.f32 %v3380_v56, %v3230_v3 }
 0x4ff   : > { %v3233_v5 = vpop.f32.mrb[39].mxu0 }
 0x500   : > { %v3442_v59 = vmul.f32 %v3385_v0, %v3233_v5  ;;  %v3395_v19 = vpop.permute.xlu1 %3394  ;;  %4099 = vmatprep.subr.bf16.mxu1 %v4098_v45 }
 0x501   : > { %v3444_v13 = vmul.f32 %v4002_v15, %v3395_v19  ;;  %4101 = vmatpush3.bf16.msra.mxu1 %v4098_v45  ;;  %4125 = vmatpush3.bf16.msra.mxu0 %v4122_v18 }
 0x502   : > { %v4126_v49 = vpack.c.bf16 %v3442_v59, %v3441_v61 }
 0x503   : > { %v4130_v36 = vpack.c.bf16 %v3444_v13, %v3443_v4 }
 0x504   : > { %v4005_v57 = vpop.f32.mrb[40].mxu0  ;;  %4127 = vmatprep.subr.bf16.mxu0 %v4126_v49 }
 0x505   : > { %v3246_v48 = vpop.f32.mrb[41].mxu0  ;;  %v1561_v41 = vpop.permute.xlu1 %1560  ;;  %4129 = vmatpush3.bf16.msra.mxu0 %v4126_v49  ;;  %v3447_v56 = vmul.f32 %v4005_v57, %v3410_v31 }
 0x506   : > { %v1602_v38 = vmul.f32 %v1561_v41, %v7126_v33  ;;  %v4006_v1 = vpop.f32.mrb[42].mxu0  ;;  %4131 = vmatprep.subr.bf16.mxu0 %v4130_v36 }
 0x507   : > { %v3249_v55 = vpop.f32.mrb[43].mxu0 }
 0x508   : > { %v4102_v43 = vpack.c.bf16 %v1602_v38, %v1601_v54  ;;  %v3446_v37 = vmul.f32 %v3405_v12, %v3249_v55 }
 0x509   : > { %4133 = vmatpush3.bf16.msra.mxu0 %v4130_v36 }
 0x50a   : > { %v3400_v9 = vpop.permute.xlu1 %3399  ;;  %4103 = vmatprep.subr.bf16.mxu1 %v4102_v43 }
 0x50b   : > { %v3445_v63 = vmul.f32 %v3400_v9, %v3246_v48  ;;  %4105 = vmatpush3.bf16.msra.mxu1 %v4102_v43 }
 0x50c   : > { %v4009_v16 = vpop.f32.mrb[44].mxu0 }
 0x50d   : > { %v4134_v14 = vpack.c.bf16 %v3446_v37, %v3445_v63  ;;  %v3262_v6 = vpop.f32.mrb[45].mxu0 }
 0x50e   : > { %v4010_v7 = vpop.f32.mrb[46].mxu0 }
 0x50f   : > { %v3265_v2 = vpop.f32.mrb[47].mxu0  ;;  %v1566_v28 = vpop.permute.xlu1 %1565  ;;  %4135 = vmatprep.subr.bf16.mxu0 %v4134_v14 }
 0x510   : > { %4137 = vmatpush3.bf16.msra.mxu0 %v4134_v14  ;;  %v1603_v33 = vmul.f32 %v7120_v27, %v1566_v28  ;;  %v3425_v27 = vpop.permute.xlu0 %3424 }
 0x513   : > { %v1571_v11 = vpop.permute.xlu1 %1570 }
 0x514   : > { %v1604_v50 = vmul.f32 %v7124_v47, %v1571_v11  ;;  %v3450_v47 = vmul.f32 %v3425_v27, %v3265_v2 }
 0x516   : > { %v4106_v32 = vpack.c.bf16 %v1604_v50, %v1603_v33 }
 0x518   : > { %v3415_v60 = vpop.permute.xlu1 %3414  ;;  %4107 = vmatprep.subr.bf16.mxu1 %v4106_v32 }
 0x519   : > { %v3448_v62 = vmul.f32 %v4006_v1, %v3415_v60  ;;  %4109 = vmatpush3.bf16.msra.mxu1 %v4106_v32 }
 0x51b   : > { %v4138_v21 = vpack.c.bf16 %v3448_v62, %v3447_v56 }
 0x51d   : > { %v1581_v26 = vpop.permute.xlu1 %1580  ;;  %4139 = vmatprep.subr.bf16.mxu0 %v4138_v21 }
 0x51e   : > { %v1606_v58 = vmul.f32 %v1581_v26, %v7134_v10  ;;  %4141 = vmatpush3.bf16.msra.mxu0 %v4138_v21  ;;  %v3430_v10 = vpop.permute.xlu0 %3429 }
 0x51f   : > { %v3451_v24 = vmul.f32 %v4009_v16, %v3430_v10 }
 0x520   : > { %v4110_v40 = vpack.c.bf16 %v1606_v58, %v1605_v22 }
 0x522   : > { %v3420_v20 = vpop.permute.xlu1 %3419  ;;  %4111 = vmatprep.subr.bf16.mxu1 %v4110_v40 }
 0x523   : > { %v3449_v52 = vmul.f32 %v3420_v20, %v3262_v6  ;;  %4113 = vmatpush3.bf16.msra.mxu1 %v4110_v40 }
 0x525   : > { %v4142_v34 = vpack.c.bf16 %v3450_v47, %v3449_v52 }
 0x527   : > { %v1586_v17 = vpop.permute.xlu1 %1585  ;;  %4143 = vmatprep.subr.bf16.mxu0 %v4142_v34 }
 0x528   : > { %4145 = vmatpush3.bf16.msra.mxu0 %v4142_v34  ;;  %v1607_v0 = vmul.f32 %v7128_v46, %v1586_v17 }
 0x52b   : > { %v1591_v18 = vpop.permute.xlu1 %1590 }
 0x52c   : > { %v1608_v39 = vmul.f32 %v7132_v51, %v1591_v18 }
 0x52e   : > { %v4114_v8 = vpack.c.bf16 %v1608_v39, %v1607_v0 }
 0x530   : > { %v3435_v35 = vpop.permute.xlu1 %3434  ;;  %4115 = vmatprep.subr.bf16.mxu1 %v4114_v8 }
 0x531   : > { %v3452_v29 = vmul.f32 %v4010_v7, %v3435_v35  ;;  %4117 = vmatpush3.bf16.msra.mxu1 %v4114_v8 }
 0x533   : > { %v4146_v23 = vpack.c.bf16 %v3452_v29, %v3451_v24 }
 0x534   : > { %3977 = vmatmul.mubr.msk.f32.vlgmr.msra.gmra.mrb[16].mxu1 %vm798_vm4, %v4732_v53 }
 0x535   : > { %4147 = vmatprep.subr.bf16.mxu0 %v4146_v23 }
 0x536   : > { %4149 = vmatpush3.bf16.msra.mxu0 %v4146_v23 }
 0x539   : > { %4044 = vmatmul.mubr.msk.f32.vlgmr.msra.gmra.mrb[48].mxu0 %vm798_vm4, %v4732_v53 }
 0x607   : > { %v3978_v46 = vpop.f32.mrb[16].mxu1 }
 0x608   : > { %v2605_v51 = vpop.f32.mrb[17].mxu1 }
 0x60c   : > { %v4045_v42 = vpop.f32.mrb[48].mxu0 }
 0x60d   : > { %v4150_v3 = vadd.f32 %v4045_v42, %v3978_v46  ;;  %v3519_v45 = vpop.f32.mrb[49].mxu0 }
 0x60e   : > { %v4151_v25 = vadd.f32 %v3519_v45, %v2605_v51 }
 0x60f   : > { %3531 = vst [vmem:[%s180_s4 + $0x8] sm:$0xff] %v4150_v3 }
 0x610   : > { %3530 = vst [vmem:[%s180_s4] sm:$0xff] %v4151_v25 }
 0x611   : > { %4668 = shalt.err (!%p4665_p3)
}
 0x612   : > { %s4669_s20 = scalar_lea.hbm %s7184_s9, 256  ;;  %s4673_s26 = scalar_lea.hbm %s7230_s3, 512 }
 0x613   : > { %p4670_p4 = scmp.ne.s32.totalorder %s7184_s9, %s4669_s20  ;;  %p4674_p9 = scmp.lt.u32.totalorder %s7184_s9, %s7230_s3 }
 0x614   : > { %p4675_p10 = scmp.lt.u32.totalorder %s4673_s26, %s4669_s20  ;;  %p4677_p12 = scmp.lt.u32.totalorder %s4669_s20, %s7184_s9 }
 0x615   : > { %p4671_p7 = pnand %p4670_p4, %p4794_p5 }
 0x616   : > { %p4676_p11 = por %p4675_p10, %p4674_p9 }
 0x617   : > { %p4672_p8 = pneg %p4671_p7 }
 0x618   : > { %p4678_p13 = por %p4677_p12, %p4676_p11 }
 0x61a   : > { %p4679_p0 = pnand %p4678_p13, %p4672_p8 }
 0x61c   : > { %4682 = shalt.err (!%p4679_p0)
}
 0x61d   : > { %s4734_s29 = smov 128   ;;  %s4735_s30 = smov 8  }
 0x61e   : > { %4154 = dma.vmem_to_hbm [thread:$0]  (%p4794_p5), %s7179_s5, 256, %s7184_s9, %s7186_s10, %s4734_s29, %s4734_s29, %s4735_s30  }
 0x61f PF: > { %p4160_p1 = scmp.ge.s32.totalorder %s4717_s15, 2  ;;  %s3561_s4 = sand.u32 1, %s4705_s12  }
 0x620   : > { %s3562_s6 = scalar_lea.sflag [#allocation3], %s3561_s4 }
 0x621   : > { %p4157_p2 = pnand %p4160_p1, %p4798_p6 }
 0x623   : > { %4700 = dma.done.wait (!%p4157_p2), %s3562_s6, 256  }
 0x624   : > { %4702 = vsyncadd (!%p4157_p2), %s3562_s6, 4294967040  ;;  %p13_p3 = scmp.ge.s32.totalorder %s4781_s18, 4   ;;  %s7724_s12 = smov %s4709_s13 }
 0x625   : > { %s7725_s13 = smov %s4713_s14  ;;  %s7726_s14 = smov %s4792_s21 }
 0x626   : > { %s7727_s15 = smov %s4781_s18  ;;  %15 = sbr.rel (!%p13_p3) target bundleno = 3 (0x3), region = 70 }
 0x62d   :  { %3567 = vsyncpa [#allocation3], 1 }
 0x62e   :  { %3569 = vsyncpa [#allocation3 + $0x1], 1 }

</bundles_post_ra>
